<compile_context>
chip_gen: v6e
topology: v6e:2x2x1
jax: 0.10.0
libtpu: 0.0.40
codegen_flags: <defaults>
</compile_context>

<pallas_src>
import functools

import jax
import jax.numpy as jnp
from jax import lax
from jax.experimental import pallas as pl
from jax.experimental.pallas import tpu as pltpu

EPS = 1e-5  # PyTorch InstanceNorm2d default eps (affine=False, biased variance)


# ---------------------------------------------------------------- kernel utils
def _conv3x3_inorm(t, wf, H, W):
    """Reflect-pad 3x3 conv (one fused MXU contraction) + InstanceNorm2d.

    t:  (C, H*W) f32 lane-dense spatial map.
    wf: (C, 9*C) bf16, contraction index ordered as (3x3 offset)*C + cin.
    returns (C, H*W) f32, normalized per channel.
    """
    C, HW = t.shape
    tm = t.reshape(C, H, W)
    # ReflectionPad2d(1)
    tp = jnp.concatenate([tm[:, 1:2, :], tm, tm[:, H - 2:H - 1, :]], axis=1)
    tp = jnp.concatenate([tp[:, :, 1:2], tp, tp[:, :, W - 2:W - 1]], axis=2)
    # im2col: stack the 9 shifted views -> (9*C, H*W); K index = offset*C + cin.
    patches = jnp.stack(
        [tp[:, di:di + H, dj:dj + W] for di in range(3) for dj in range(3)],
        axis=0,
    ).reshape(9 * C, HW)
    # Single fused matmul, bf16 inputs, f32 accumulation.
    z = jnp.dot(wf, patches.astype(jnp.bfloat16),
                preferred_element_type=jnp.float32)            # (C, HW)
    # Conv bias intentionally omitted: exactly cancelled by InstanceNorm below.
    m = jnp.mean(z, axis=-1, keepdims=True)
    zc = z - m
    v = jnp.mean(zc * zc, axis=-1, keepdims=True)
    return zc * lax.rsqrt(v + EPS)


def residual_block_kernel(x_ref, w1_ref, w2_ref, o_ref, *, H, W):
    w1 = w1_ref[...]                       # (C, 9C) bf16
    w2 = w2_ref[...]                       # (C, 9C) bf16
    nb = x_ref.shape[0]                    # static block-batch size
    for i in range(nb):
        x = x_ref[i].astype(jnp.float32)   # (C, HW) lane-dense
        h = jnp.maximum(_conv3x3_inorm(x, w1, H, W), 0.0)      # ReLU
        y = _conv3x3_inorm(h, w2, H, W)
        o_ref[i] = (x + y).astype(o_ref.dtype)


# ------------------------------------------------------------------- wrapper
def _pick_block_batch(N, C, HW):
    """Largest divisor of N that fits ~2 MiB/block but keeps >=2 grid steps."""
    cap = max(1, (2 << 20) // max(1, C * HW * 4))
    best = 1
    for d in range(1, N + 1):
        if N % d == 0 and d <= cap and (N // d) >= min(N, 2):
            best = d
    return best


def residual_block(x, w1, b1, w2, b2):
    """x: (N, C, H, W) f32; w*: (C, C, 3, 3); b*: (C,)  — NCHW in / NCHW out.

    Biases are accepted for interface fidelity but not used: InstanceNorm2d
    (affine=False) cancels a per-channel constant exactly.
    """
    del b1, b2
    N, C, H, W = x.shape
    HW = H * W

    # Lane-dense activations: (N, C, H*W) so the last dim is a multiple of 128.
    x2 = x.reshape(N, C, HW)
    # Fused-conv weights: (Cout, 9*Cin) with K ordered (di*3+dj)*Cin + cin,
    # pre-cast to bf16 for the single-pass MXU path.
    wf1 = jnp.transpose(w1, (0, 2, 3, 1)).reshape(C, 9 * C).astype(jnp.bfloat16)
    wf2 = jnp.transpose(w2, (0, 2, 3, 1)).reshape(C, 9 * C).astype(jnp.bfloat16)

    nb = _pick_block_batch(N, C, HW)
    grid = (N // nb,)

    out = pl.pallas_call(
        functools.partial(residual_block_kernel, H=H, W=W),
        out_shape=jax.ShapeDtypeStruct((N, C, HW), x.dtype),
        grid_spec=pltpu.PrefetchScalarGridSpec(
            num_scalar_prefetch=0,
            grid=grid,
            in_specs=[
                pl.BlockSpec((nb, C, HW), lambda n: (n, 0, 0)),
                pl.BlockSpec((C, 9 * C), lambda n: (0, 0)),
                pl.BlockSpec((C, 9 * C), lambda n: (0, 0)),
            ],
            out_specs=pl.BlockSpec((nb, C, HW), lambda n: (n, 0, 0)),
        ),
        compiler_params=pltpu.CompilerParams(
            dimension_semantics=("parallel",),
        ),
    )(x2, wf1, wf2)
    return out.reshape(N, C, H, W)


# ------------------------------------------------------------ pure-JAX reference
def residual_block_ref(x, w1, b1, w2, b2):
    def conv(t, w, b):
        tp = jnp.pad(t, ((0, 0), (0, 0), (1, 1), (1, 1)), mode="reflect")
        y = lax.conv_general_dilated(
            tp, w, (1, 1), "VALID",
            dimension_numbers=("NCHW", "OIHW", "NCHW"),
            precision=lax.Precision.HIGHEST,
        )
        return y + b[None, :, None, None]

    def inorm(t):
        m = jnp.mean(t, axis=(2, 3), keepdims=True)
        v = jnp.mean((t - m) ** 2, axis=(2, 3), keepdims=True)
        return (t - m) * lax.rsqrt(v + EPS)

    h = jax.nn.relu(inorm(conv(x, w1, b1)))
    return x + inorm(conv(h, w2, b2))


if __name__ == "__main__":
    N, C, H, W = 2, 4, 16, 16
    key = jax.random.PRNGKey(0)
    kx, kw1, kb1, kw2, kb2 = jax.random.split(key, 5)

    x = jax.random.normal(kx, (N, C, H, W), jnp.float32)

    # Deterministic Conv2d-style init: U(-1/sqrt(fan_in), 1/sqrt(fan_in)), fan_in = C*3*3.
    bound = 1.0 / jnp.sqrt(jnp.float32(C * 3 * 3))
    w1 = jax.random.uniform(kw1, (C, C, 3, 3), jnp.float32, -bound, bound)
    b1 = jax.random.uniform(kb1, (C,), jnp.float32, -bound, bound)
    w2 = jax.random.uniform(kw2, (C, C, 3, 3), jnp.float32, -bound, bound)
    b2 = jax.random.uniform(kb2, (C,), jnp.float32, -bound, bound)

    out = residual_block(x, w1, b1, w2, b2)
    out = jax.block_until_ready(out)

    ref = jax.block_until_ready(residual_block_ref(x, w1, b1, w2, b2))
    max_err = float(jnp.max(jnp.abs(out - ref)))
    assert out.shape == (N, C, H, W)
    assert bool(jnp.all(jnp.isfinite(out)))
    assert max_err < 5e-2, f"mismatch vs reference: {max_err}"

    print("KERNEL_OK")
</pallas_src>

<mosaic_0001>
module attributes {stable_mosaic.version = 11 : i64} {
  func.func @residual_block_kernel(%arg0: i32, %arg1: memref<1x4x256xf32, #tpu.memory_space<vmem>>, %arg2: memref<4x36xbf16, #tpu.memory_space<vmem>>, %arg3: memref<4x36xbf16, #tpu.memory_space<vmem>>, %arg4: memref<1x4x256xf32, #tpu.memory_space<vmem>>) attributes {dimension_semantics = [#tpu.dimension_semantics<parallel>], iteration_bounds = array<i64: 2>, scalar_prefetch = 0 : i64, scratch_operands = 0 : i64, tpu.core_type = #tpu.core_type<tc>, window_params = [{transform_indices = @transform_0, window_bounds = array<i64: 1, 4, 256>}, {pipeline_mode = #tpu.pipeline_mode<synchronous>, transform_indices = @transform_1, window_bounds = array<i64: 4, 36>}, {pipeline_mode = #tpu.pipeline_mode<synchronous>, transform_indices = @transform_2, window_bounds = array<i64: 4, 36>}, {transform_indices = @transform_3, window_bounds = array<i64: 1, 4, 256>}]} {
    %c0 = arith.constant 0 : index
    %c0_0 = arith.constant 0 : index
    %0 = vector.load %arg2[%c0, %c0_0] : memref<4x36xbf16, #tpu.memory_space<vmem>>, vector<4x36xbf16>
    %c0_1 = arith.constant 0 : index
    %c0_2 = arith.constant 0 : index
    %1 = vector.load %arg3[%c0_1, %c0_2] : memref<4x36xbf16, #tpu.memory_space<vmem>>, vector<4x36xbf16>
    %c0_3 = arith.constant 0 : index
    %c0_4 = arith.constant 0 : index
    %c0_5 = arith.constant 0 : index
    %2 = vector.load %arg1[%c0_3, %c0_4, %c0_5] : memref<1x4x256xf32, #tpu.memory_space<vmem>>, vector<1x4x256xf32>
    %3 = vector.shape_cast %2 : vector<1x4x256xf32> to vector<4x256xf32>
    %4 = vector.shape_cast %3 : vector<4x256xf32> to vector<4x16x16xf32>
    %5 = vector.extract_strided_slice %4 {offsets = [0, 1, 0], sizes = [4, 1, 16], strides = [1, 1, 1]} : vector<4x16x16xf32> to vector<4x1x16xf32>
    %6 = vector.extract_strided_slice %4 {offsets = [0, 14, 0], sizes = [4, 1, 16], strides = [1, 1, 1]} : vector<4x16x16xf32> to vector<4x1x16xf32>
    %7 = tpu.concatenate %5, %4, %6 in 1 : vector<4x1x16xf32>, vector<4x16x16xf32>, vector<4x1x16xf32> -> vector<4x18x16xf32>
    %8 = vector.extract_strided_slice %7 {offsets = [0, 0, 1], sizes = [4, 18, 1], strides = [1, 1, 1]} : vector<4x18x16xf32> to vector<4x18x1xf32>
    %9 = vector.extract_strided_slice %7 {offsets = [0, 0, 14], sizes = [4, 18, 1], strides = [1, 1, 1]} : vector<4x18x16xf32> to vector<4x18x1xf32>
    %10 = tpu.concatenate %8, %7, %9 in 2 : vector<4x18x1xf32>, vector<4x18x16xf32>, vector<4x18x1xf32> -> vector<4x18x18xf32>
    %11 = vector.extract_strided_slice %10 {offsets = [0, 0, 0], sizes = [4, 16, 16], strides = [1, 1, 1]} : vector<4x18x18xf32> to vector<4x16x16xf32>
    %12 = vector.extract_strided_slice %10 {offsets = [0, 0, 1], sizes = [4, 16, 16], strides = [1, 1, 1]} : vector<4x18x18xf32> to vector<4x16x16xf32>
    %13 = vector.extract_strided_slice %10 {offsets = [0, 0, 2], sizes = [4, 16, 16], strides = [1, 1, 1]} : vector<4x18x18xf32> to vector<4x16x16xf32>
    %14 = vector.extract_strided_slice %10 {offsets = [0, 1, 0], sizes = [4, 16, 16], strides = [1, 1, 1]} : vector<4x18x18xf32> to vector<4x16x16xf32>
    %15 = vector.extract_strided_slice %10 {offsets = [0, 1, 1], sizes = [4, 16, 16], strides = [1, 1, 1]} : vector<4x18x18xf32> to vector<4x16x16xf32>
    %16 = vector.extract_strided_slice %10 {offsets = [0, 1, 2], sizes = [4, 16, 16], strides = [1, 1, 1]} : vector<4x18x18xf32> to vector<4x16x16xf32>
    %17 = vector.extract_strided_slice %10 {offsets = [0, 2, 0], sizes = [4, 16, 16], strides = [1, 1, 1]} : vector<4x18x18xf32> to vector<4x16x16xf32>
    %18 = vector.extract_strided_slice %10 {offsets = [0, 2, 1], sizes = [4, 16, 16], strides = [1, 1, 1]} : vector<4x18x18xf32> to vector<4x16x16xf32>
    %19 = vector.extract_strided_slice %10 {offsets = [0, 2, 2], sizes = [4, 16, 16], strides = [1, 1, 1]} : vector<4x18x18xf32> to vector<4x16x16xf32>
    %20 = vector.shape_cast %11 : vector<4x16x16xf32> to vector<1x4x16x16xf32>
    %21 = vector.shape_cast %12 : vector<4x16x16xf32> to vector<1x4x16x16xf32>
    %22 = vector.shape_cast %13 : vector<4x16x16xf32> to vector<1x4x16x16xf32>
    %23 = vector.shape_cast %14 : vector<4x16x16xf32> to vector<1x4x16x16xf32>
    %24 = vector.shape_cast %15 : vector<4x16x16xf32> to vector<1x4x16x16xf32>
    %25 = vector.shape_cast %16 : vector<4x16x16xf32> to vector<1x4x16x16xf32>
    %26 = vector.shape_cast %17 : vector<4x16x16xf32> to vector<1x4x16x16xf32>
    %27 = vector.shape_cast %18 : vector<4x16x16xf32> to vector<1x4x16x16xf32>
    %28 = vector.shape_cast %19 : vector<4x16x16xf32> to vector<1x4x16x16xf32>
    %29 = tpu.concatenate %20, %21, %22, %23, %24, %25, %26, %27, %28 in 0 : vector<1x4x16x16xf32>, vector<1x4x16x16xf32>, vector<1x4x16x16xf32>, vector<1x4x16x16xf32>, vector<1x4x16x16xf32>, vector<1x4x16x16xf32>, vector<1x4x16x16xf32>, vector<1x4x16x16xf32>, vector<1x4x16x16xf32> -> vector<9x4x16x16xf32>
    %30 = vector.shape_cast %29 : vector<9x4x16x16xf32> to vector<36x256xf32>
    %31 = arith.truncf %30 : vector<36x256xf32> to vector<36x256xbf16>
    %cst = arith.constant dense<0.000000e+00> : vector<4x256xf32>
    %32 = tpu.matmul %0, %31, %cst {dimension_numbers = #tpu.dot_dimension_numbers<[1], [0], [0], [1], [0, 0, 1, 1], [], []>} : vector<4x36xbf16>, vector<36x256xbf16>, vector<4x256xf32> -> vector<4x256xf32>
    %cst_6 = arith.constant dense<0.000000e+00> : vector<4xf32>
    %33 = vector.multi_reduction <add>, %32, %cst_6 [1] : vector<4x256xf32> to vector<4xf32>
    %34 = vector.shape_cast %33 : vector<4xf32> to vector<4x1xf32>
    %cst_7 = arith.constant 2.560000e+02 : f32
    %35 = vector.broadcast %cst_7 : f32 to vector<4x1xf32>
    %36 = arith.divf %34, %35 : vector<4x1xf32>
    %37 = vector.broadcast %36 : vector<4x1xf32> to vector<4x256xf32>
    %38 = arith.subf %32, %37 : vector<4x256xf32>
    %39 = arith.mulf %38, %38 : vector<4x256xf32>
    %cst_8 = arith.constant dense<0.000000e+00> : vector<4xf32>
    %40 = vector.multi_reduction <add>, %39, %cst_8 [1] : vector<4x256xf32> to vector<4xf32>
    %41 = vector.shape_cast %40 : vector<4xf32> to vector<4x1xf32>
    %cst_9 = arith.constant 2.560000e+02 : f32
    %42 = vector.broadcast %cst_9 : f32 to vector<4x1xf32>
    %43 = arith.divf %41, %42 : vector<4x1xf32>
    %cst_10 = arith.constant 9.99999974E-6 : f32
    %44 = vector.broadcast %cst_10 : f32 to vector<4x1xf32>
    %45 = arith.addf %43, %44 : vector<4x1xf32>
    %46 = math.rsqrt %45 : vector<4x1xf32>
    %47 = vector.broadcast %46 : vector<4x1xf32> to vector<4x256xf32>
    %48 = arith.mulf %38, %47 : vector<4x256xf32>
    %cst_11 = arith.constant 0.000000e+00 : f32
    %49 = vector.broadcast %cst_11 : f32 to vector<4x256xf32>
    %50 = arith.maximumf %48, %49 : vector<4x256xf32>
    %51 = vector.shape_cast %50 : vector<4x256xf32> to vector<4x16x16xf32>
    %52 = vector.extract_strided_slice %51 {offsets = [0, 1, 0], sizes = [4, 1, 16], strides = [1, 1, 1]} : vector<4x16x16xf32> to vector<4x1x16xf32>
    %53 = vector.extract_strided_slice %51 {offsets = [0, 14, 0], sizes = [4, 1, 16], strides = [1, 1, 1]} : vector<4x16x16xf32> to vector<4x1x16xf32>
    %54 = tpu.concatenate %52, %51, %53 in 1 : vector<4x1x16xf32>, vector<4x16x16xf32>, vector<4x1x16xf32> -> vector<4x18x16xf32>
    %55 = vector.extract_strided_slice %54 {offsets = [0, 0, 1], sizes = [4, 18, 1], strides = [1, 1, 1]} : vector<4x18x16xf32> to vector<4x18x1xf32>
    %56 = vector.extract_strided_slice %54 {offsets = [0, 0, 14], sizes = [4, 18, 1], strides = [1, 1, 1]} : vector<4x18x16xf32> to vector<4x18x1xf32>
    %57 = tpu.concatenate %55, %54, %56 in 2 : vector<4x18x1xf32>, vector<4x18x16xf32>, vector<4x18x1xf32> -> vector<4x18x18xf32>
    %58 = vector.extract_strided_slice %57 {offsets = [0, 0, 0], sizes = [4, 16, 16], strides = [1, 1, 1]} : vector<4x18x18xf32> to vector<4x16x16xf32>
    %59 = vector.extract_strided_slice %57 {offsets = [0, 0, 1], sizes = [4, 16, 16], strides = [1, 1, 1]} : vector<4x18x18xf32> to vector<4x16x16xf32>
    %60 = vector.extract_strided_slice %57 {offsets = [0, 0, 2], sizes = [4, 16, 16], strides = [1, 1, 1]} : vector<4x18x18xf32> to vector<4x16x16xf32>
    %61 = vector.extract_strided_slice %57 {offsets = [0, 1, 0], sizes = [4, 16, 16], strides = [1, 1, 1]} : vector<4x18x18xf32> to vector<4x16x16xf32>
    %62 = vector.extract_strided_slice %57 {offsets = [0, 1, 1], sizes = [4, 16, 16], strides = [1, 1, 1]} : vector<4x18x18xf32> to vector<4x16x16xf32>
    %63 = vector.extract_strided_slice %57 {offsets = [0, 1, 2], sizes = [4, 16, 16], strides = [1, 1, 1]} : vector<4x18x18xf32> to vector<4x16x16xf32>
    %64 = vector.extract_strided_slice %57 {offsets = [0, 2, 0], sizes = [4, 16, 16], strides = [1, 1, 1]} : vector<4x18x18xf32> to vector<4x16x16xf32>
    %65 = vector.extract_strided_slice %57 {offsets = [0, 2, 1], sizes = [4, 16, 16], strides = [1, 1, 1]} : vector<4x18x18xf32> to vector<4x16x16xf32>
    %66 = vector.extract_strided_slice %57 {offsets = [0, 2, 2], sizes = [4, 16, 16], strides = [1, 1, 1]} : vector<4x18x18xf32> to vector<4x16x16xf32>
    %67 = vector.shape_cast %58 : vector<4x16x16xf32> to vector<1x4x16x16xf32>
    %68 = vector.shape_cast %59 : vector<4x16x16xf32> to vector<1x4x16x16xf32>
    %69 = vector.shape_cast %60 : vector<4x16x16xf32> to vector<1x4x16x16xf32>
    %70 = vector.shape_cast %61 : vector<4x16x16xf32> to vector<1x4x16x16xf32>
    %71 = vector.shape_cast %62 : vector<4x16x16xf32> to vector<1x4x16x16xf32>
    %72 = vector.shape_cast %63 : vector<4x16x16xf32> to vector<1x4x16x16xf32>
    %73 = vector.shape_cast %64 : vector<4x16x16xf32> to vector<1x4x16x16xf32>
    %74 = vector.shape_cast %65 : vector<4x16x16xf32> to vector<1x4x16x16xf32>
    %75 = vector.shape_cast %66 : vector<4x16x16xf32> to vector<1x4x16x16xf32>
    %76 = tpu.concatenate %67, %68, %69, %70, %71, %72, %73, %74, %75 in 0 : vector<1x4x16x16xf32>, vector<1x4x16x16xf32>, vector<1x4x16x16xf32>, vector<1x4x16x16xf32>, vector<1x4x16x16xf32>, vector<1x4x16x16xf32>, vector<1x4x16x16xf32>, vector<1x4x16x16xf32>, vector<1x4x16x16xf32> -> vector<9x4x16x16xf32>
    %77 = vector.shape_cast %76 : vector<9x4x16x16xf32> to vector<36x256xf32>
    %78 = arith.truncf %77 : vector<36x256xf32> to vector<36x256xbf16>
    %cst_12 = arith.constant dense<0.000000e+00> : vector<4x256xf32>
    %79 = tpu.matmul %1, %78, %cst_12 {dimension_numbers = #tpu.dot_dimension_numbers<[1], [0], [0], [1], [0, 0, 1, 1], [], []>} : vector<4x36xbf16>, vector<36x256xbf16>, vector<4x256xf32> -> vector<4x256xf32>
    %cst_13 = arith.constant dense<0.000000e+00> : vector<4xf32>
    %80 = vector.multi_reduction <add>, %79, %cst_13 [1] : vector<4x256xf32> to vector<4xf32>
    %81 = vector.shape_cast %80 : vector<4xf32> to vector<4x1xf32>
    %cst_14 = arith.constant 2.560000e+02 : f32
    %82 = vector.broadcast %cst_14 : f32 to vector<4x1xf32>
    %83 = arith.divf %81, %82 : vector<4x1xf32>
    %84 = vector.broadcast %83 : vector<4x1xf32> to vector<4x256xf32>
    %85 = arith.subf %79, %84 : vector<4x256xf32>
    %86 = arith.mulf %85, %85 : vector<4x256xf32>
    %cst_15 = arith.constant dense<0.000000e+00> : vector<4xf32>
    %87 = vector.multi_reduction <add>, %86, %cst_15 [1] : vector<4x256xf32> to vector<4xf32>
    %88 = vector.shape_cast %87 : vector<4xf32> to vector<4x1xf32>
    %cst_16 = arith.constant 2.560000e+02 : f32
    %89 = vector.broadcast %cst_16 : f32 to vector<4x1xf32>
    %90 = arith.divf %88, %89 : vector<4x1xf32>
    %cst_17 = arith.constant 9.99999974E-6 : f32
    %91 = vector.broadcast %cst_17 : f32 to vector<4x1xf32>
    %92 = arith.addf %90, %91 : vector<4x1xf32>
    %93 = math.rsqrt %92 : vector<4x1xf32>
    %94 = vector.broadcast %93 : vector<4x1xf32> to vector<4x256xf32>
    %95 = arith.mulf %85, %94 : vector<4x256xf32>
    %96 = arith.addf %3, %95 : vector<4x256xf32>
    %c0_18 = arith.constant 0 : index
    %c0_19 = arith.constant 0 : index
    %c0_20 = arith.constant 0 : index
    %97 = vector.load %arg4[%c0_18, %c0_19, %c0_20] : memref<1x4x256xf32, #tpu.memory_space<vmem>>, vector<1x4x256xf32>
    %98 = vector.shape_cast %97 : vector<1x4x256xf32> to vector<4x256xf32>
    %99 = vector.shape_cast %96 : vector<4x256xf32> to vector<1x4x256xf32>
    tpu.vector_store %arg4[%c0_18, %c0_19, %c0_20], %99 {strides = array<i32>} : memref<1x4x256xf32, #tpu.memory_space<vmem>>, vector<1x4x256xf32>,
    return
  }
  func.func @transform_0(%arg0: i32) -> (i32, i32, i32) {
    %c0_i32 = arith.constant 0 : i32
    %c0_i32_0 = arith.constant 0 : i32
    %c0_i32_1 = arith.constant 0 : i32
    return %arg0, %c0_i32, %c0_i32_0 : i32, i32, i32
  }
  func.func @transform_1(%arg0: i32) -> (i32, i32) {
    %c0_i32 = arith.constant 0 : i32
    %c0_i32_0 = arith.constant 0 : i32
    %c0_i32_1 = arith.constant 0 : i32
    return %c0_i32, %c0_i32_0 : i32, i32
  }
  func.func @transform_2(%arg0: i32) -> (i32, i32) {
    %c0_i32 = arith.constant 0 : i32
    %c0_i32_0 = arith.constant 0 : i32
    %c0_i32_1 = arith.constant 0 : i32
    return %c0_i32, %c0_i32_0 : i32, i32
  }
  func.func @transform_3(%arg0: i32) -> (i32, i32, i32) {
    %c0_i32 = arith.constant 0 : i32
    %c0_i32_0 = arith.constant 0 : i32
    %c0_i32_1 = arith.constant 0 : i32
    return %arg0, %c0_i32, %c0_i32_0 : i32, i32, i32
  }
}

</mosaic_0001>

<bundles_post_ra>
// kernel: tpu_custom_call.1
= control target key start
LH: loop header
LB: loop body
LE: loop exit
PB: predicated region body
PF: predicated region fallthrough
CT: control target
= control target key end

     0   :  { %8 = vsyncpa [#allocation3], 0  ;;  %s8085_s0 = inlined_call_operand.hbm [shape: f32[2,4,256], index: 0, kind: input, shape index: {}]   ;;  %s8086_s1 = inlined_call_operand.hbm [shape: bf16[4,36], index: 1, kind: input, shape index: {}]   ;;  %s8087_s2 = inlined_call_operand.vmem [shape: bf16[4,36], index: 2, kind: input, shape index: {}]   ;;  %s8088_s3 = inlined_call_operand.hbm [shape: f32[2,4,256], index: 3, kind: output, shape index: {}]  }
   0x1   :  { %10 = vsyncpa [#allocation3 + $0x1], 0 }
   0x2   :  { %11 = vsyncpa [#allocation6], 0 }
   0x3   :  { %12 = vsyncpa [#allocation4], 0 }
   0x4   :  { %14 = vsyncpa [#allocation4 + $0x1], 0  ;;  %s5440_s12 = smov 0   ;;  %s5442_s13 = smov 0  }
   0x5   :  { %s5444_s14 = smov 0   ;;  %s5446_s15 = smov 0  }
   0x6 LB: > { %s5461_s16 = sadd.s32 4294967295, %s5400_s15   ;;  %s4825_s17 = sadd.s32 4294967294, %s5400_s15   ;;  %s5400_s15 = sphi %s5446_s15, %s8390_s15   ;;  %s5396_s14 = sphi %s5444_s14, %s8389_s14   ;;  %s5392_s13 = sphi %s5442_s13, %s8388_s13   ;;  %s5388_s12 = sphi %s5440_s12, %s8387_s12  }
   0x7   : > { %p40_p0 = scmp.ne.s32.totalorder %s5392_s13, %s5388_s12  ;;  %p8089_p1 = scmp.eq.s32.totalorder %s5461_s16, 0 }
   0x8   : > { %p112_p3 = scmp.eq.s32.totalorder %s4825_s17, 1  ;;  %p4826_p5 = scmp.ge.s32.totalorder %s5400_s15, 1 }
   0x9   : > { %p5470_p4 = por %p8089_p1, %p40_p0  ;;  %p119_p7 = scmp.lt.s32.totalorder %s5400_s15, 3 }
   0xa   : > { %p5475_p6 = por %p112_p3, %p40_p0  ;;  %s5402_s21 = smov [#allocation5]  }
   0xb   : > { %s8165_s18 = scalar_select %p5470_p4, 1, 0 }
   0xc   : > { %s8166_s19 = scalar_select %p5475_p6, 1, 0 }
   0xd   : > { %p5480_p8 = pnand %p4826_p5, %p119_p7  ;;  %s132_s22 = sshll.u32 %s5402_s21, 4  ;;  %s133_s22 = int_to_ptr.vmem [resolvable:$true] %s132_s22 }
   0xe   : > { %s5488_s23 = sadd.s32 1, %s5400_s15   ;;  %s27_s27 = sadd.s32 1, %s5396_s14 }
   0xf   : > { %s8167_s20 = scalar_select %p5480_p8, 1, 0 }
  0x10   : > { %p4859_p10 = pneg %p5480_p8  ;;  %s24_s25 = ssub.s32 %s5400_s15, %s5488_s23 }
  0x11   : > { %p5498_p12 = scmp.eq.s32.totalorder %s24_s25, 0  ;;  %p34_p13 = scmp.ne.s32.totalorder %s5396_s14, %s5392_s13 }
  0x12   : > { %p5492_p11 = pnand %p4859_p10, %p8089_p1  ;;  %s5289_s28 = scalar_lea.vmem %s133_s22, 32 }
  0x13   : > { %p5290_p3 = scmp.ne.s32.totalorder %s133_s22, %s5289_s28  ;;  %p5297_p9 = scmp.lt.s32.totalorder %s133_s22, %s133_s22 }
  0x14   : > { %p5280_p0 = pneg %p5492_p11  ;;  %p5298_p2 = scmp.lt.s32.totalorder %s5289_s28, %s5289_s28 }
  0x16   : > { %p5292_p5 = pnand %p5290_p3, %p5280_p0  ;;  %p5299_p10 = por %p5298_p2, %p5297_p9 }
  0x18   : > { %p5293_p7 = pneg %p5292_p5 }
  0x1a   : > { %p5300_p1 = pnand %p5299_p10, %p5293_p7 }
  0x1c   : > { %5303 = shalt.err (!%p5300_p1)
}
  0x1d   : > { %4862 = dma.hbm_to_vmem [thread:$0]  (!%p5492_p11), %s8086_s1, 32, %s133_s22, [#allocation6]  }
  0x1e   : > { %s5515_s4 = scalar_select %p5498_p12, %s5396_s14, %s27_s27  }
  0x1f   : > { %p35_p1 = scmp.eq.s32.totalorder %s5400_s15, 0  ;;  %p8170_p2 = scmp.eq.s32.totalorder %s5461_s16, 1 }
  0x20   : > { %p4872_p0 = scmp.lt.s32.totalorder %s5400_s15, 2  ;;  %s146_s6 = sand.u32 1, %s5396_s14  }
  0x21   : > { %p5523_p9 = por %p8170_p2, %p34_p13  ;;  %p36_p3 = por %p35_p1, %p34_p13 }
  0x22   : > { %s4829_s7 = sshll.u32 %s146_s6, 3  ;;  %s4849_s8 = sshll.u32 %s5400_s15, 7 }
  0x23   : > { %s8171_s5 = scalar_select %p5523_p9, 1, 0 }
  0x24   : > { %s5536_s11 = scalar_lea.hbm %s8085_s0, %s4849_s8  ;;  %s150_s17 = scalar_lea.vmem [#allocation2], %s4829_s7 }
  0x25   : > { %s158_s21 = sshll.u32 %s150_s17, 4  ;;  %p5538_p11 = pnand %p4872_p0, %p36_p3  ;;  %s159_s21 = int_to_ptr.vmem [resolvable:$true] %s158_s21 }
  0x26   : > { %s147_s24 = scalar_lea.sflag [#allocation3], %s146_s6  ;;  %s5304_s25 = scalar_lea.hbm %s5536_s11, 128 }
  0x27   : > { %p5305_p12 = scmp.ne.s32.totalorder %s5536_s11, %s5304_s25  ;;  %p5306_p13 = pneg %p5538_p11 }
  0x28   : > { %s5309_s28 = scalar_lea.hbm %s8085_s0, 256  ;;  %p5310_p10 = scmp.lt.s32.totalorder %s5536_s11, %s8085_s0 }
  0x29   : > { %p5307_p5 = pnand %p5306_p13, %p5305_p12  ;;  %p5311_p1 = scmp.lt.s32.totalorder %s5309_s28, %s5304_s25 }
  0x2b   : > { %p5308_p7 = pneg %p5307_p5  ;;  %p5312_p2 = por %p5311_p1, %p5310_p10 }
  0x2d   : > { %p5313_p0 = pnand %p5312_p2, %p5308_p7 }
  0x2f   : > { %5316 = shalt.err (!%p5313_p0)
}
  0x30   : > { %s5317_s7 = scalar_lea.vmem %s159_s21, 128  ;;  %s5403_s6 = smov [#allocation2]  }
  0x31   : > { %p5318_p3 = scmp.ne.s32.totalorder %s159_s21, %s5317_s7  ;;  %s5322_s8 = sshll.u32 %s5403_s6, 4  ;;  %s5323_s8 = int_to_ptr.vmem [resolvable:$false] %s5322_s8 }
  0x32   : > { %s5324_s9 = scalar_lea.vmem %s5323_s8, 256  ;;  %p5325_p12 = scmp.lt.s32.totalorder %s159_s21, %s5323_s8 }
  0x33   : > { %p5320_p6 = pnand %p5318_p3, %p5306_p13  ;;  %p5326_p5 = scmp.lt.s32.totalorder %s5324_s9, %s5317_s7 }
  0x35   : > { %p5321_p9 = pneg %p5320_p6  ;;  %p5327_p4 = por %p5326_p5, %p5325_p12 }
  0x37   : > { %p5328_p8 = pnand %p5327_p4, %p5321_p9 }
  0x39   : > { %5331 = shalt.err (!%p5328_p8)
}
  0x3a   : > { %4866 = dma.hbm_to_vmem [thread:$0]  (!%p5538_p11), %s5536_s11, 128, %s159_s21, %s147_s24  }
  0x3b   : > { %p8173_p7 = scmp.ne.s32.totalorder %s8167_s20, 0 }
  0x3d   : > { %167 = sbr.rel (%p8173_p7) target bundleno = 2555 (0x9fb), region = 32 }
  0x42   : > { %s5559_s10 = sand.u32 1, %s5392_s13   ;;  %p8174_p4 = scmp.ne.s32.totalorder %s8165_s18, 0 }
  0x43   : > { %s4833_s17 = sshll.u32 %s5559_s10, 3  ;;  %s170_s25 = scalar_lea.sflag [#allocation3], %s5559_s10 }
  0x44   : > { %s5565_s26 = scalar_lea.vmem [#allocation2], %s4833_s17 }
  0x45   : > { %5375 = dma.done.wait (%p8174_p4), %s170_s25, 128  }
  0x46   : > { %5377 = vsyncadd (%p8174_p4), %s170_s25, 4294967168  ;;  %p8175_p6 = scmp.eq.s32.totalorder %s5461_s16, 0 }
  0x48   : > { %5379 = dma.done.wait (%p8175_p6), [#allocation6], 32   ;;  %p8176_p8 = pmov %p8175_p6 }
  0x49   : > { %v5576_v0 = vld [vmem:[%s5565_s26] sm:$0xff]  ;;  %s5404_s20 = smov 80   ;;  %s5405_s11 = smov 112   ;;  %v5411_v1 = vmov 1983009808   ;;  %v246_v3 = vlaneseq  ;;  %v8093_v33 = vmov 0.0  }
  0x4a   : > { %5381 = vsyncadd (%p8176_p8), [#allocation6], 4294967264  ;;  %215 = vrot.lane.b32.xlu1 %v5576_v0, %s5404_s20  ;;  %207 = vrot.lane.b32.xlu0 %v5576_v0, %s5405_s11  ;;  %s5406_s21 = smov 64   ;;  %s5407_s18 = smov 96   ;;  %v244_v2 = vunpack.c.l.s4 %v5411_v1  ;;  %v5412_v8 = vmov 1934713408  }
  0x4b   : > { %s5408_s22 = smov 32   ;;  %s5409_s24 = smov 48   ;;  %v5596_v7 = vshrl.u32 %v246_v3, 7  ;;  %v261_v9 = vunpack.c.l.s4 %v5412_v8  ;;  %v205_v38 = vrot.slane %v5576_v0, 4  ;;  %vm422_vm0 = vcmask 1040384  }
  0x4c   : > { %s5410_s27 = smov 16   ;;  %v245_v6 = vunpack.c.0.s8 %v244_v2  ;;  %s5414_s28 = smov 127   ;;  %vm587_vm1 = vcmask 7168   ;;  %vm600_vm2 = vcmask 138240   ;;  %vm750_vm3 = vcmask 1045504  }
  0x4d   : > { %v262_v15 = vunpack.c.0.s8 %v261_v9  ;;  %v384_v31 = vsub.s32 1, %v5596_v7  ;;  %s5415_s29 = smov 1   ;;  %s5416_s30 = smov 3   ;;  %vm673_vm4 = vcmask 1046528   ;;  %vm2331_vm5 = vcmask 130048  }
  0x4e   : > { %219 = vrot.lane.b32.xlu1 %v5576_v0, %s5406_s21  ;;  %211 = vrot.lane.b32.xlu0 %v5576_v0, %s5407_s18  ;;  %v5599_v12 = vsub.s32 %v245_v6, %v5596_v7  ;;  %s5417_s7 = smov 126   ;;  %vm2337_vm6 = vcmask 261120   ;;  %vm2343_vm7 = vcmask 392192   ;;  %vm2349_vm8 = vcmask 523264   ;;  %s4850_s9 = sshll.u32 %s5461_s16, 7 }
  0x4f   : > { %v5607_v20 = vsub.s32 %v262_v15, %v5596_v7  ;;  %v445_v15 = vsub.s32 2, %v5596_v7  ;;  %vm2355_vm9 = vcmask 654336   ;;  %vm2361_vm10 = vcmask 785408   ;;  %s199_s25 = scalar_lea.vmem [#allocation7], %s4833_s17  ;;  %p8384_p11 = scmp.ne.s32.totalorder %s8171_s5, 0 }
  0x50   : > { %vm2367_vm11 = vcmask 916480   ;;  %vm2418_vm12 = vcmask 1041408   ;;  %vm2414_vm13 = vcmask 293888   ;;  %vm2466_vm14 = vcmask 1043456  }
  0x52   : > { %227 = vrot.lane.b32.xlu1 %v5576_v0, %s5408_s22  ;;  %223 = vrot.lane.b32.xlu0 %v5576_v0, %s5409_s24 }
  0x56   : > { %231 = vrot.lane.b32.xlu0 %v5576_v0, %s5410_s27 }
  0xbc   : > { %v5592_v4 = vpop.permute.xlu1 %215  ;;  %v5594_v5 = vpop.permute.xlu0 %207 }
  0xbd   : > { %v250_v13 = vcombine.low %v5594_v5, %v5592_v4  ;;  %v217_v52 = vrot.slane %v5592_v4, 4  ;;  %v209_v53 = vrot.slane %v5594_v5, 4 }
  0xbf   : > { %v257_v19 = vrot.slane %v250_v13, %v5599_v12  ;;  %v318_v63 = vcombine.low %v209_v53, %v217_v52 }
  0xc0   : > { %v220_v10 = vpop.permute.xlu1 %219  ;;  %v212_v11 = vpop.permute.xlu0 %211 }
  0xc1   : > { %v242_v14 = vcombine.low %v5576_v0, %v212_v11  ;;  %v221_v37 = vrot.slane %v220_v10, 4  ;;  %v213_v40 = vrot.slane %v212_v11, 4  ;;  %v325_v5 = vrot.slane %v318_v63, %v5599_v12 }
  0xc3   : > { %v249_v16 = vrot.slane %v242_v14, %v5599_v12  ;;  %v310_v59 = vcombine.low %v205_v38, %v213_v40 }
  0xc4   : > { %v228_v17 = vpop.permute.xlu1 %227  ;;  %v224_v18 = vpop.permute.xlu0 %223 }
  0xc5   : > { %v258_v21 = vcombine.low %v249_v16, %v257_v19  ;;  %v276_v22 = vcombine.low %v220_v10, %v228_v17  ;;  %v259_v25 = vcombine.high %v249_v16, %v257_v19  ;;  %v229_v41 = vrot.slane %v228_v17, 4 }
  0xc6   : > { %v225_v44 = vrot.slane %v224_v18, 4  ;;  %v317_v3 = vrot.slane %v310_v59, %v5599_v12 }
  0xc7   : > { %v266_v26 = vrot.slane %v258_v21, %v5607_v20  ;;  %v283_v27 = vrot.slane %v276_v22, %v5599_v12  ;;  %v273_v32 = vrot.slane %v259_v25, %v5607_v20  ;;  %v344_v60 = vcombine.low %v221_v37, %v229_v41 }
  0xc8   : > { %v232_v23 = vpop.permute.xlu0 %231  ;;  %v326_v8 = vcombine.low %v317_v3, %v325_v5  ;;  %v327_v14 = vcombine.high %v317_v3, %v325_v5 }
  0xc9   : > { %v284_v24 = vcombine.low %v224_v18, %v232_v23  ;;  %v274_v34 = vcombine.high %v266_v26, %v8093_v33  ;;  %v233_v39 = vrot.slane %v232_v23, 4  ;;  %v385_v45 = vrot.slane %v266_v26, %v384_v31 }
  0xca   : > { %v275_v51 = vcombine.high %v273_v32, %v8093_v33  ;;  %v393_v62 = vrot.slane %v273_v32, %v384_v31  ;;  %v351_v4 = vrot.slane %v344_v60, %v5599_v12  ;;  %v334_v10 = vrot.slane %v326_v8, %v5607_v20 }
  0xcb   : > { %v291_v28 = vrot.slane %v284_v24, %v5599_v12  ;;  %v389_v48 = vrot.slane %v274_v34, %v384_v31  ;;  %v352_v54 = vcombine.low %v225_v44, %v233_v39  ;;  %v341_v21 = vrot.slane %v327_v14, %v5607_v20 }
  0xcc   : > { %v397_v61 = vrot.slane %v275_v51, %v384_v31 }
  0xcd   : > { %v292_v29 = vcombine.low %v283_v27, %v291_v28  ;;  %v293_v30 = vcombine.high %v283_v27, %v291_v28  ;;  %v359_v0 = vrot.slane %v352_v54, %v5599_v12 }
  0xcf   : > { %v300_v35 = vrot.slane %v292_v29, %v5607_v20  ;;  %v307_v36 = vrot.slane %v293_v30, %v5607_v20  ;;  %v360_v6 = vcombine.low %v351_v4, %v359_v0  ;;  %v361_v11 = vcombine.high %v351_v4, %v359_v0 }
  0xd1   : > { %v4836_v42 = vcombine.high %v266_v26, %v300_v35  ;;  %v414_v43 = vcombine.low %v266_v26, %v300_v35  ;;  %v4838_v46 = vcombine.high %v273_v32, %v307_v36  ;;  %v418_v47 = vcombine.low %v273_v32, %v307_v36 }
  0xd2   : > { %v368_v9 = vrot.slane %v360_v6, %v5607_v20  ;;  %v375_v16 = vrot.slane %v361_v11, %v5607_v20 }
  0xd3   : > { %v426_v49 = vrot.slane %v4836_v42, 7  ;;  %v423_v50 = vrot.slane %v414_v43, 7  ;;  %v5623_v57 = vrot.slane %v4838_v46, 7  ;;  %v429_v58 = vrot.slane %v418_v47, 7 }
  0xd4   : > { %v415_v13 = vcombine.low %v334_v10, %v368_v9  ;;  %v4837_v18 = vcombine.high %v334_v10, %v368_v9  ;;  %v376_v19 = vcombine.high %v368_v9, %v8093_v33  ;;  %v446_v22 = vrot.slane %v368_v9, %v445_v15 }
  0xd5   : > { %v464_v55 = vsel %vm422_vm0, %v389_v48, %v426_v49  ;;  %v463_v56 = vsel %vm422_vm0, %v385_v45, %v423_v50  ;;  %v466_v1 = vsel %vm422_vm0, %v397_v61, %v5623_v57  ;;  %v465_v2 = vsel %vm422_vm0, %v393_v62, %v429_v58 }
  0xd6   : > { %485 = vrot.lane.b32.xlu0 %v464_v55, %s5414_s28  ;;  %479 = vrot.lane.b32.xlu1 %v463_v56, %s5414_s28  ;;  %v424_v17 = vrot.slane %v415_v13, 7  ;;  %v419_v23 = vcombine.low %v341_v21, %v375_v16  ;;  %v427_v26 = vrot.slane %v4837_v18, 7  ;;  %v450_v7 = vrot.slane %v376_v19, %v445_v15 }
  0xd7   : > { %v4839_v30 = vcombine.high %v341_v21, %v375_v16  ;;  %v377_v31 = vcombine.high %v375_v16, %v8093_v33  ;;  %v454_v32 = vrot.slane %v375_v16, %v445_v15 }
  0xd8   : > { %v467_v24 = vsel %vm422_vm0, %v424_v17, %v446_v22  ;;  %v425_v25 = vsel %vm422_vm0, %v423_v50, %v424_v17  ;;  %v430_v27 = vrot.slane %v419_v23, 7  ;;  %v428_v28 = vsel %vm422_vm0, %v426_v49, %v427_v26 }
  0xd9   : > { %v468_v29 = vsel %vm422_vm0, %v427_v26, %v450_v7  ;;  %v433_v36 = vrot.slane %v4839_v30, 7  ;;  %v458_v37 = vrot.slane %v377_v31, %v445_v15 }
  0xda   : > { %497 = vrot.lane.b32.xlu0 %v466_v1, %s5414_s28  ;;  %491 = vrot.lane.b32.xlu1 %v465_v2, %s5414_s28  ;;  %v469_v34 = vsel %vm422_vm0, %v430_v27, %v454_v32  ;;  %v431_v35 = vsel %vm422_vm0, %v429_v58, %v430_v27 }
  0xdb   : > { %v434_v38 = vsel %vm422_vm0, %v5623_v57, %v433_v36  ;;  %v470_v39 = vsel %vm422_vm0, %v433_v36, %v458_v37 }
  0xde   : > { %521 = vrot.lane.b32.xlu0 %v464_v55, %s5415_s29  ;;  %515 = vrot.lane.b32.xlu1 %v463_v56, %s5415_s29 }
  0xe2   : > { %533 = vrot.lane.b32.xlu0 %v466_v1, %s5415_s29  ;;  %527 = vrot.lane.b32.xlu1 %v465_v2, %s5415_s29 }
  0xe6   : > { %557 = vrot.lane.b32.xlu0 %v464_v55, %s5416_s30  ;;  %551 = vrot.lane.b32.xlu1 %v463_v56, %s5416_s30 }
  0xea   : > { %569 = vrot.lane.b32.xlu0 %v466_v1, %s5416_s30  ;;  %563 = vrot.lane.b32.xlu1 %v465_v2, %s5416_s30 }
  0xee   : > { %483 = vrot.lane.b32.xlu1 %v467_v24, %s5414_s28  ;;  %481 = vrot.lane.b32.xlu0 %v425_v25, %s5414_s28 }
  0xf2   : > { %487 = vrot.lane.b32.xlu1 %v428_v28, %s5414_s28  ;;  %489 = vrot.lane.b32.xlu0 %v468_v29, %s5414_s28 }
  0xf6   : > { %495 = vrot.lane.b32.xlu1 %v469_v34, %s5414_s28  ;;  %493 = vrot.lane.b32.xlu0 %v431_v35, %s5414_s28 }
  0xfa   : > { %499 = vrot.lane.b32.xlu1 %v434_v38, %s5414_s28  ;;  %501 = vrot.lane.b32.xlu0 %v470_v39, %s5414_s28 }
  0xfe   : > { %519 = vrot.lane.b32.xlu1 %v467_v24, %s5415_s29  ;;  %517 = vrot.lane.b32.xlu0 %v425_v25, %s5415_s29 }
 0x102   : > { %523 = vrot.lane.b32.xlu1 %v428_v28, %s5415_s29  ;;  %525 = vrot.lane.b32.xlu0 %v468_v29, %s5415_s29 }
 0x106   : > { %531 = vrot.lane.b32.xlu1 %v469_v34, %s5415_s29  ;;  %529 = vrot.lane.b32.xlu0 %v431_v35, %s5415_s29 }
 0x10a   : > { %535 = vrot.lane.b32.xlu1 %v434_v38, %s5415_s29  ;;  %537 = vrot.lane.b32.xlu0 %v470_v39, %s5415_s29 }
 0x10e   : > { %555 = vrot.lane.b32.xlu1 %v467_v24, %s5416_s30  ;;  %553 = vrot.lane.b32.xlu0 %v425_v25, %s5416_s30 }
 0x112   : > { %559 = vrot.lane.b32.xlu1 %v428_v28, %s5416_s30  ;;  %561 = vrot.lane.b32.xlu0 %v468_v29, %s5416_s30 }
 0x116   : > { %567 = vrot.lane.b32.xlu1 %v469_v34, %s5416_s30  ;;  %565 = vrot.lane.b32.xlu0 %v431_v35, %s5416_s30 }
 0x11a   : > { %571 = vrot.lane.b32.xlu1 %v434_v38, %s5416_s30  ;;  %573 = vrot.lane.b32.xlu0 %v470_v39, %s5416_s30 }
 0x148   : > { %v486_v40 = vpop.permute.xlu0 %485  ;;  %v480_v41 = vpop.permute.xlu1 %479 }
 0x14c   : > { %v498_v42 = vpop.permute.xlu0 %497  ;;  %v492_v43 = vpop.permute.xlu1 %491 }
 0x150   : > { %v522_v44 = vpop.permute.xlu0 %521  ;;  %v516_v45 = vpop.permute.xlu1 %515 }
 0x151   : > { %v591_v48 = vsel %vm587_vm1, %v486_v40, %v522_v44  ;;  %v588_v49 = vsel %vm587_vm1, %v480_v41, %v516_v45 }
 0x154   : > { %v534_v46 = vpop.permute.xlu0 %533  ;;  %v528_v47 = vpop.permute.xlu1 %527 }
 0x155   : > { %v597_v54 = vsel %vm587_vm1, %v498_v42, %v534_v46  ;;  %v594_v55 = vsel %vm587_vm1, %v492_v43, %v528_v47 }
 0x158   : > { %v558_v50 = vpop.permute.xlu0 %557  ;;  %v552_v51 = vpop.permute.xlu1 %551 }
 0x159   : > { %v5687_v52 = vsel %vm600_vm2, %v591_v48, %v558_v50  ;;  %v5690_v53 = vsel %vm600_vm2, %v588_v49, %v552_v51 }
 0x15a   : > { %621 = vrot.lane.b32.xlu1 %v5690_v53, %s5414_s28  ;;  %625 = vrot.lane.b32.xlu0 %v5687_v52, %s5414_s28  ;;  %v751_v31 = vrot.slane %v5690_v53, 2  ;;  %v756_v32 = vrot.slane %v5687_v52, 2  ;;  %v674_v39 = vrot.slane %v5690_v53, 1  ;;  %v679_v43 = vrot.slane %v5687_v52, 1 }
 0x15c   : > { %v570_v56 = vpop.permute.xlu0 %569  ;;  %v564_v57 = vpop.permute.xlu1 %563 }
 0x15d   : > { %v5699_v58 = vsel %vm600_vm2, %v597_v54, %v570_v56  ;;  %v5702_v59 = vsel %vm600_vm2, %v594_v55, %v564_v57 }
 0x15e   : > { %v843_v60 = vcombine.low %v5687_v52, %v5699_v58  ;;  %v844_v61 = vcombine.high %v5687_v52, %v5699_v58  ;;  %v827_v62 = vcombine.low %v5690_v53, %v5702_v59  ;;  %v828_v63 = vcombine.high %v5690_v53, %v5702_v59  ;;  %629 = vrot.lane.b32.xlu1 %v5702_v59, %s5414_s28 }
 0x15f   : > { %633 = vrot.lane.b32.xlu0 %v5699_v58, %s5414_s28  ;;  %v761_v45 = vrot.slane %v5702_v59, 2  ;;  %v766_v46 = vrot.slane %v5699_v58, 2  ;;  %v684_v47 = vrot.slane %v5702_v59, 1 }
 0x160   : > { %v484_v0 = vpop.permute.xlu1 %483  ;;  %v482_v1 = vpop.permute.xlu0 %481  ;;  %v5717_v2 = vrot.slane %v828_v63, %v5599_v12  ;;  %v5720_v3 = vrot.slane %v844_v61, %v5599_v12  ;;  %v5723_v4 = vrot.slane %v827_v62, %v5599_v12  ;;  %v5726_v5 = vrot.slane %v843_v60, %v5599_v12 }
 0x162   : > { %645 = vrot.lane.b32.xlu1 %v5690_v53, %s5417_s7  ;;  %v891_v8 = vcombine.low %v5723_v4, %v5726_v5 }
 0x163   : > { %649 = vrot.lane.b32.xlu0 %v5687_v52, %s5417_s7 }
 0x164   : > { %v488_v11 = vpop.permute.xlu1 %487  ;;  %v490_v13 = vpop.permute.xlu0 %489 }
 0x168   : > { %v496_v14 = vpop.permute.xlu1 %495  ;;  %v494_v15 = vpop.permute.xlu0 %493 }
 0x16c   : > { %v500_v16 = vpop.permute.xlu1 %499  ;;  %v502_v17 = vpop.permute.xlu0 %501 }
 0x170   : > { %v520_v18 = vpop.permute.xlu1 %519  ;;  %v518_v19 = vpop.permute.xlu0 %517 }
 0x171   : > { %v589_v7 = vsel %vm587_vm1, %v482_v1, %v518_v19  ;;  %v590_v30 = vsel %vm587_vm1, %v484_v0, %v520_v18 }
 0x174   : > { %v524_v21 = vpop.permute.xlu1 %523  ;;  %v526_v22 = vpop.permute.xlu0 %525 }
 0x175   : > { %v592_v34 = vsel %vm587_vm1, %v488_v11, %v524_v21  ;;  %v593_v35 = vsel %vm587_vm1, %v490_v13, %v526_v22 }
 0x178   : > { %v532_v23 = vpop.permute.xlu1 %531  ;;  %v530_v24 = vpop.permute.xlu0 %529 }
 0x179   : > { %v596_v44 = vsel %vm587_vm1, %v496_v14, %v532_v23  ;;  %v595_v48 = vsel %vm587_vm1, %v494_v15, %v530_v24 }
 0x17c   : > { %v536_v25 = vpop.permute.xlu1 %535  ;;  %v538_v26 = vpop.permute.xlu0 %537 }
 0x17d   : > { %v598_v53 = vsel %vm587_vm1, %v500_v16, %v536_v25  ;;  %v599_v54 = vsel %vm587_vm1, %v502_v17, %v538_v26 }
 0x180   : > { %v556_v27 = vpop.permute.xlu1 %555  ;;  %v554_v28 = vpop.permute.xlu0 %553 }
 0x181   : > { %v5742_v29 = vsel %vm600_vm2, %v589_v7, %v554_v28  ;;  %v603_v36 = vsel %vm600_vm2, %v590_v30, %v556_v27 }
 0x182   : > { %623 = vrot.lane.b32.xlu1 %v5742_v29, %s5414_s28  ;;  %v752_v42 = vrot.slane %v5742_v29, 2  ;;  %v677_v49 = vrot.slane %v603_v36, 1  ;;  %v754_v50 = vrot.slane %v603_v36, 2  ;;  %v675_v51 = vrot.slane %v5742_v29, 1 }
 0x184   : > { %v560_v37 = vpop.permute.xlu1 %559  ;;  %v562_v38 = vpop.permute.xlu0 %561  ;;  %v5775_v0 = vsel %vm750_vm3, %v751_v31, %v752_v42  ;;  %v5785_v15 = vsel %vm750_vm3, %v752_v42, %v754_v50  ;;  %v5789_v17 = vsel %vm673_vm4, %v675_v51, %v677_v49  ;;  %v5792_v18 = vsel %vm673_vm4, %v674_v39, %v675_v51 }
 0x185   : > { %v5754_v40 = vsel %vm600_vm2, %v592_v34, %v560_v37  ;;  %v606_v41 = vsel %vm600_vm2, %v593_v35, %v562_v38 }
 0x186   : > { %627 = vrot.lane.b32.xlu0 %v5754_v40, %s5414_s28  ;;  %v759_v55 = vrot.slane %v606_v41, 2  ;;  %v757_v60 = vrot.slane %v5754_v40, 2  ;;  %v682_v61 = vrot.slane %v606_v41, 1  ;;  %v680_v14 = vrot.slane %v5754_v40, 1 }
 0x188   : > { %v568_v56 = vpop.permute.xlu1 %567  ;;  %v566_v57 = vpop.permute.xlu0 %565  ;;  %v5795_v23 = vsel %vm750_vm3, %v756_v32, %v757_v60  ;;  %v5798_v24 = vsel %vm750_vm3, %v757_v60, %v759_v55  ;;  %v5822_v34 = vsel %vm673_vm4, %v680_v14, %v682_v61 }
 0x189   : > { %v609_v62 = vsel %vm600_vm2, %v596_v44, %v568_v56  ;;  %v5772_v63 = vsel %vm600_vm2, %v595_v48, %v566_v57 }
 0x18a   : > { %v764_v1 = vrot.slane %v609_v62, 2  ;;  %v1439_v11 = vcombine.low %v5742_v29, %v5772_v63  ;;  %v1440_v13 = vcombine.high %v5742_v29, %v5772_v63  ;;  %631 = vrot.lane.b32.xlu1 %v5772_v63, %s5414_s28  ;;  %v762_v16 = vrot.slane %v5772_v63, 2 }
 0x18b   : > { %v687_v19 = vrot.slane %v609_v62, 1  ;;  %v685_v25 = vrot.slane %v5772_v63, 1 }
 0x18c   : > { %v572_v21 = vpop.permute.xlu1 %571  ;;  %v574_v22 = vpop.permute.xlu0 %573  ;;  %v5806_v27 = vsel %vm750_vm3, %v761_v45, %v762_v16  ;;  %v5809_v28 = vsel %vm750_vm3, %v762_v16, %v764_v1  ;;  %v5833_v39 = vrot.slane %v1439_v11, %v5599_v12  ;;  %v5953_v52 = vrot.slane %v1440_v13, %v5599_v12 }
 0x18d   : > { %v5802_v26 = vsel %vm600_vm2, %v598_v53, %v572_v21  ;;  %v612_v7 = vsel %vm600_vm2, %v599_v54, %v574_v22  ;;  %v1235_v35 = vcombine.low %v5775_v0, %v5806_v27  ;;  %v1236_v36 = vcombine.high %v5775_v0, %v5806_v27 }
 0x18e   : > { %v1455_v30 = vcombine.low %v5754_v40, %v5802_v26  ;;  %v1456_v31 = vcombine.high %v5754_v40, %v5802_v26  ;;  %v769_v32 = vrot.slane %v612_v7, 2  ;;  %635 = vrot.lane.b32.xlu0 %v5802_v26, %s5414_s28  ;;  %647 = vrot.lane.b32.xlu1 %v5742_v29, %s5417_s7  ;;  %v1847_v37 = vcombine.low %v5785_v15, %v5809_v28 }
 0x18f   : > { %v1848_v38 = vcombine.high %v5785_v15, %v5809_v28  ;;  %v692_v42 = vrot.slane %v612_v7, 1  ;;  %v767_v44 = vrot.slane %v5802_v26, 2  ;;  %v5840_v45 = vrot.slane %v1235_v35, %v5599_v12 }
 0x190   : > { %v5836_v41 = vrot.slane %v1455_v30, %v5599_v12  ;;  %v5843_v48 = vrot.slane %v1236_v36, %v5599_v12  ;;  %v5846_v49 = vrot.slane %v1847_v37, %v5599_v12  ;;  %v5849_v50 = vsel %vm673_vm4, %v685_v25, %v687_v19 }
 0x191   : > { %v5858_v53 = vsel %vm750_vm3, %v766_v46, %v767_v44  ;;  %v5861_v54 = vsel %vm750_vm3, %v767_v44, %v769_v32  ;;  %v690_v55 = vrot.slane %v5802_v26, 1  ;;  %v5873_v46 = vrot.slane %v1848_v38, %v5599_v12 }
 0x192   : > { %8177 = vst [vmem:[#allocation11_spill] sm:$0xff] %v5843_v48  ;;  %v1503_v51 = vcombine.low %v5833_v39, %v5836_v41  ;;  %651 = vrot.lane.b32.xlu0 %v5754_v40, %s5417_s7  ;;  %655 = vrot.lane.b32.xlu1 %v5772_v63, %s5417_s7  ;;  %v1251_v56 = vcombine.low %v5795_v23, %v5858_v53  ;;  %v689_v35 = vrot.slane %v5699_v58, 1 }
 0x193   : > { %v1252_v57 = vcombine.high %v5795_v23, %v5858_v53  ;;  %v1863_v60 = vcombine.low %v5798_v24, %v5861_v54  ;;  %v1864_v61 = vcombine.high %v5798_v24, %v5861_v54  ;;  %8178 = vst [vmem:[#allocation12_spill] sm:$0xff] %v5873_v46  ;;  %v1607_v62 = vcombine.low %v5789_v17, %v5849_v50 }
 0x194   : > { %v1608_v1 = vcombine.high %v5789_v17, %v5849_v50  ;;  %v693_v11 = vsel %vm673_vm4, %v690_v55, %v692_v42  ;;  %v5881_v16 = vrot.slane %v1251_v56, %v5599_v12  ;;  %v686_v32 = vsel %vm673_vm4, %v684_v47, %v685_v25 }
 0x195   : > { %v5884_v19 = vrot.slane %v1252_v57, %v5599_v12  ;;  %v5887_v21 = vrot.slane %v1863_v60, %v5599_v12  ;;  %v5890_v22 = vrot.slane %v1864_v61, %v5599_v12  ;;  %v5897_v7 = vrot.slane %v1607_v62, %v5599_v12 }
 0x196   : > { %659 = vrot.lane.b32.xlu0 %v5802_v26, %s5417_s7  ;;  %803 = vrot.lane.b32.xlu1 %v5775_v0, %s5417_s7  ;;  %v1623_v30 = vcombine.low %v5822_v34, %v693_v11  ;;  %v1624_v56 = vcombine.high %v5822_v34, %v693_v11  ;;  %v995_v60 = vcombine.low %v5792_v18, %v686_v32 }
 0x197   : > { %8179 = vst [vmem:[#allocation13_spill] sm:$0xff] %v5884_v19  ;;  %8180 = vst [vmem:[#allocation14_spill] sm:$0xff] %v5890_v22  ;;  %v996_v61 = vcombine.high %v5792_v18, %v686_v32  ;;  %v5927_v62 = vrot.slane %v1456_v31, %v5599_v12  ;;  %v691_v38 = vsel %vm673_vm4, %v689_v35, %v690_v55 }
 0x198   : > { %v5922_v57 = vrot.slane %v1623_v30, %v5599_v12  ;;  %v681_v30 = vsel %vm673_vm4, %v679_v43, %v680_v14  ;;  %v5940_v44 = vrot.slane %v1608_v1, %v5599_v12  ;;  %v5943_v31 = vrot.slane %v1624_v56, %v5599_v12 }
 0x199   : > { %v1011_v40 = vcombine.low %v681_v30, %v691_v38  ;;  %v1012_v43 = vcombine.high %v681_v30, %v691_v38  ;;  %v5960_v1 = vrot.slane %v995_v60, %v5599_v12  ;;  %v1504_v35 = vcombine.high %v5833_v39, %v5836_v41 }
 0x19a   : > { %805 = vrot.lane.b32.xlu0 %v5785_v15, %s5417_s7  ;;  %807 = vrot.lane.b32.xlu1 %v5795_v23, %s5417_s7  ;;  %v1671_v25 = vcombine.low %v5897_v7, %v5922_v57  ;;  %v1672_v37 = vcombine.high %v5897_v7, %v5922_v57  ;;  %v1687_v14 = vcombine.low %v5940_v44, %v5943_v31 }
 0x19b   : > { %v1688_v55 = vcombine.high %v5940_v44, %v5943_v31  ;;  %v5969_v29 = vrot.slane %v996_v61, %v5599_v12  ;;  %v5972_v63 = vrot.slane %v1011_v40, %v5599_v12  ;;  %v5975_v13 = vrot.slane %v1012_v43, %v5599_v12 }
 0x19c   : > { %v1519_v56 = vcombine.low %v5953_v52, %v5927_v62  ;;  %v1520_v40 = vcombine.high %v5953_v52, %v5927_v62  ;;  %v6082_v10 = vrot.slane %v1503_v51, %v5607_v20  ;;  %v6095_v51 = vrot.slane %v1671_v25, %v5607_v20 }
 0x19d   : > { %v1518_v25 = vrot.slane %v1504_v35, %v5607_v20  ;;  %v1695_v39 = vrot.slane %v1687_v14, %v5607_v20  ;;  %v1702_v41 = vrot.slane %v1688_v55, %v5607_v20 }
 0x19e   : > { %809 = vrot.lane.b32.xlu0 %v5798_v24, %s5417_s7  ;;  %811 = vrot.lane.b32.xlu1 %v5806_v27, %s5417_s7  ;;  %8183 = vst [vmem:[#allocation17_spill] sm:$0xff] %v6082_v10  ;;  %8185 = vst [vmem:[#allocation19_spill] sm:$0xff] %v6095_v51  ;;  %v1534_v44 = vrot.slane %v1520_v40, %v5607_v20 }
 0x1a2   : > { %813 = vrot.lane.b32.xlu0 %v5809_v28, %s5417_s7  ;;  %815 = vrot.lane.b32.xlu1 %v5858_v53, %s5417_s7 }
 0x1a6   : > { %704 = vrot.lane.b32.xlu1 %v5789_v17, %s5414_s28  ;;  %817 = vrot.lane.b32.xlu0 %v5861_v54, %s5417_s7 }
 0x1aa   : > { %712 = vrot.lane.b32.xlu1 %v5849_v50, %s5414_s28  ;;  %708 = vrot.lane.b32.xlu0 %v5822_v34, %s5414_s28 }
 0x1ae   : > { %728 = vrot.lane.b32.xlu1 %v5789_v17, %s5417_s7  ;;  %716 = vrot.lane.b32.xlu0 %v693_v11, %s5414_s28 }
 0x1b2   : > { %736 = vrot.lane.b32.xlu1 %v5849_v50, %s5417_s7  ;;  %732 = vrot.lane.b32.xlu0 %v5822_v34, %s5417_s7 }
 0x1b6   : > { %781 = vrot.lane.b32.xlu1 %v5785_v15, %s5414_s28  ;;  %740 = vrot.lane.b32.xlu0 %v693_v11, %s5417_s7 }
 0x1ba   : > { %789 = vrot.lane.b32.xlu1 %v5809_v28, %s5414_s28  ;;  %785 = vrot.lane.b32.xlu0 %v5798_v24, %s5414_s28 }
 0x1be   : > { %702 = vrot.lane.b32.xlu1 %v5792_v18, %s5414_s28  ;;  %793 = vrot.lane.b32.xlu0 %v5861_v54, %s5414_s28 }
 0x1c2   : > { %710 = vrot.lane.b32.xlu1 %v686_v32, %s5414_s28  ;;  %706 = vrot.lane.b32.xlu0 %v681_v30, %s5414_s28 }
 0x1c6   : > { %726 = vrot.lane.b32.xlu1 %v5792_v18, %s5417_s7  ;;  %714 = vrot.lane.b32.xlu0 %v691_v38, %s5414_s28 }
 0x1ca   : > { %734 = vrot.lane.b32.xlu1 %v686_v32, %s5417_s7  ;;  %730 = vrot.lane.b32.xlu0 %v681_v30, %s5417_s7 }
 0x1cc   : > { %v6026_v15 = vpop.permute.xlu1 %621  ;;  %v6028_v17 = vpop.permute.xlu0 %625 }
 0x1ce   : > { %779 = vrot.lane.b32.xlu1 %v5775_v0, %s5414_s28  ;;  %738 = vrot.lane.b32.xlu0 %v691_v38, %s5417_s7 }
 0x1d0   : > { %v6033_v24 = vpop.permute.xlu1 %629 }
 0x1d1   : > { %v859_v18 = vcombine.low %v6026_v15, %v6033_v24  ;;  %v6037_v28 = vpop.permute.xlu0 %633 }
 0x1d2   : > { %v875_v34 = vcombine.low %v6028_v17, %v6037_v28  ;;  %787 = vrot.lane.b32.xlu1 %v5806_v27, %s5414_s28  ;;  %783 = vrot.lane.b32.xlu0 %v5795_v23, %s5414_s28  ;;  %v6061_v23 = vrot.slane %v891_v8, %v5607_v20 }
 0x1d3   : > { %v6046_v0 = vrot.slane %v859_v18, %v5599_v12 }
 0x1d4   : > { %v6049_v50 = vrot.slane %v875_v34, %v5599_v12  ;;  %8181 = vst [vmem:[#allocation15_spill] sm:$0xff] %v6061_v23  ;;  %v6070_v32 = vpop.permute.xlu1 %645 }
 0x1d6   : > { %v923_v54 = vcombine.low %v6046_v0, %v6049_v50  ;;  %653 = vrot.lane.b32.xlu1 %v5702_v59, %s5417_s7  ;;  %791 = vrot.lane.b32.xlu0 %v5858_v53, %s5414_s28  ;;  %v6072_v59 = vpop.permute.xlu0 %649 }
 0x1d8   : > { %v6064_v27 = vrot.slane %v923_v54, %v5607_v20 }
 0x1da   : > { %8182 = vst [vmem:[#allocation16_spill] sm:$0xff] %v6064_v27  ;;  %657 = vrot.lane.b32.xlu0 %v5699_v58, %s5417_s7 }
 0x1f4   : > { %v624_v53 = vpop.permute.xlu1 %623 }
 0x1f8   : > { %v628_v38 = vpop.permute.xlu0 %627 }
 0x1fc   : > { %v632_v30 = vpop.permute.xlu1 %631 }
 0x1fd   : > { %v1471_v43 = vcombine.low %v624_v53, %v632_v30  ;;  %v1472_v54 = vcombine.high %v624_v53, %v632_v30 }
 0x1ff   : > { %v1479_v60 = vrot.slane %v1471_v43, %v5599_v12  ;;  %v1486_v36 = vrot.slane %v1472_v54, %v5599_v12 }
 0x200   : > { %v648_v18 = vpop.permute.xlu1 %647  ;;  %v636_v8 = vpop.permute.xlu0 %635 }
 0x201   : > { %v1487_v34 = vcombine.low %v628_v38, %v636_v8  ;;  %v1488_v33 = vcombine.high %v628_v38, %v636_v8 }
 0x203   : > { %v1495_v11 = vrot.slane %v1487_v34, %v5599_v12  ;;  %v1502_v61 = vrot.slane %v1488_v33, %v5599_v12 }
 0x204   : > { %v656_v58 = vpop.permute.xlu1 %655  ;;  %v652_v47 = vpop.permute.xlu0 %651 }
 0x205   : > { %v1535_v26 = vcombine.low %v1479_v60, %v1495_v11  ;;  %v1575_v53 = vcombine.low %v648_v18, %v656_v58  ;;  %v1576_v30 = vcombine.high %v648_v18, %v656_v58  ;;  %v1536_v43 = vcombine.high %v1479_v60, %v1495_v11 }
 0x206   : > { %v1551_v8 = vcombine.low %v1486_v36, %v1502_v61  ;;  %v1552_v42 = vcombine.high %v1486_v36, %v1502_v61  ;;  %v1686_v61 = vrot.slane %v1672_v37, %v5607_v20 }
 0x207   : > { %v6085_v38 = vrot.slane %v1535_v26, %v5607_v20  ;;  %v1583_v26 = vrot.slane %v1575_v53, %v5599_v12  ;;  %v1590_v60 = vrot.slane %v1576_v30, %v5599_v12  ;;  %v1550_v58 = vrot.slane %v1536_v43, %v5607_v20 }
 0x208   : > { %v6087_v34 = vpop.permute.xlu1 %803  ;;  %v660_v33 = vpop.permute.xlu0 %659  ;;  %v1559_v9 = vrot.slane %v1551_v8, %v5607_v20  ;;  %v1566_v8 = vrot.slane %v1552_v42, %v5607_v20 }
 0x209   : > { %8184 = vst [vmem:[#allocation18_spill] sm:$0xff] %v6085_v38  ;;  %v1591_v54 = vcombine.low %v652_v47, %v660_v33  ;;  %v1592_v6 = vcombine.high %v652_v47, %v660_v33  ;;  %v1527_v33 = vrot.slane %v1519_v56, %v5607_v20  ;;  %v1568_v14 = vcombine.high %v6082_v10, %v6085_v38 }
 0x20b   : > { %v1599_v11 = vrot.slane %v1591_v54, %v5599_v12  ;;  %v1606_v18 = vrot.slane %v1592_v6, %v5599_v12  ;;  %v1569_v54 = vcombine.low %v1518_v25, %v1550_v58 }
 0x20c   : > { %v6103_v47 = vpop.permute.xlu1 %807  ;;  %v6105_v36 = vpop.permute.xlu0 %805 }
 0x20d   : > { %v1639_v53 = vcombine.low %v1583_v26, %v1599_v11  ;;  %v1640_v6 = vcombine.high %v1583_v26, %v1599_v11  ;;  %v1655_v30 = vcombine.low %v1590_v60, %v1606_v18  ;;  %v1656_v43 = vcombine.high %v1590_v60, %v1606_v18 }
 0x20e   : > { %v1570_v26 = vcombine.high %v1518_v25, %v1550_v58  ;;  %v1571_v60 = vcombine.low %v1527_v33, %v1559_v9  ;;  %v1572_v11 = vcombine.high %v1527_v33, %v1559_v9  ;;  %v1573_v58 = vcombine.low %v1534_v44, %v1566_v8 }
 0x20f   : > { %v6129_v7 = vrot.slane %v1639_v53, %v5607_v20  ;;  %v1654_v37 = vrot.slane %v1640_v6, %v5607_v20  ;;  %v1663_v42 = vrot.slane %v1655_v30, %v5607_v20  ;;  %v1670_v57 = vrot.slane %v1656_v43, %v5607_v20 }
 0x210   : > { %v6134_v35 = vpop.permute.xlu1 %811  ;;  %v6136_v56 = vpop.permute.xlu0 %809 }
 0x211   : > { %8186 = vst [vmem:[#allocation20_spill] sm:$0xff] %v6129_v7  ;;  %v1704_v55 = vcombine.high %v6129_v7, %v6095_v51  ;;  %v1705_v18 = vcombine.low %v1654_v37, %v1686_v61  ;;  %v1706_v53 = vcombine.high %v1654_v37, %v1686_v61  ;;  %v1707_v6 = vcombine.low %v1663_v42, %v1695_v39 }
 0x212   : > { %v1708_v30 = vcombine.high %v1663_v42, %v1695_v39  ;;  %v1709_v25 = vcombine.low %v1670_v57, %v1702_v41  ;;  %v1574_v61 = vcombine.high %v1534_v44, %v1566_v8  ;;  %v1710_v33 = vcombine.high %v1670_v57, %v1702_v41 }
 0x213   : > { %v6148_v43 = vpack.i.bf16 %v1704_v55, %v1568_v14  ;;  %v6154_v52 = vpack.i.bf16 %v1705_v18, %v1569_v54  ;;  %v6156_v40 = vpack.i.bf16 %v1706_v53, %v1570_v26  ;;  %v6158_v31 = vpack.i.bf16 %v1707_v6, %v1571_v60 }
 0x214   : > { %v6150_v38 = vpop.permute.xlu1 %815  ;;  %v6152_v62 = vpop.permute.xlu0 %813  ;;  %v6160_v10 = vpack.i.bf16 %v1708_v30, %v1572_v11  ;;  %v6162_v9 = vpack.i.bf16 %v1709_v25, %v1573_v58  ;;  %v6168_v42 = vpack.i.bf16 %v1710_v33, %v1574_v61 }
 0x215   : > { %8187 = vst [vmem:[#allocation21_spill] sm:$0xff] %v6156_v40  ;;  %8188 = vst [vmem:[#allocation22_spill] sm:$0xff] %v6158_v31 }
 0x216   : > { %8189 = vst [vmem:[#allocation23_spill] sm:$0xff] %v6160_v10  ;;  %8190 = vst [vmem:[#allocation24_spill] sm:$0xff] %v6162_v9  ;;  %v8209_v9 = vcombine.low %v5846_v49, %v5887_v21 }
 0x217   : > { %8192 = vst [vmem:[#allocation26_spill] sm:$0xff] %v6168_v42 }
 0x218   : > { %v6164_v39 = vpop.permute.xlu1 %704  ;;  %v6166_v37 = vpop.permute.xlu0 %817 }
 0x219   : > { %8191 = vst [vmem:[#allocation25_spill] sm:$0xff] %v6164_v39 }
 0x21c   : > { %v6170_v14 = vpop.permute.xlu1 %712  ;;  %v6172_v54 = vpop.permute.xlu0 %708 }
 0x21d   : > { %8193 = vst [vmem:[#allocation27_spill] sm:$0xff] %v6170_v14  ;;  %8194 = vst [vmem:[#allocation28_spill] sm:$0xff] %v6172_v54  ;;  %v1711_v41 = vcombine.low %v6164_v39, %v6170_v14  ;;  %v860_v14 = vcombine.high %v6026_v15, %v6033_v24 }
 0x21f   : > { %v6196_v6 = vrot.slane %v1711_v41, %v5599_v12 }
 0x220   : > { %v6174_v26 = vpop.permute.xlu1 %728  ;;  %v6176_v55 = vpop.permute.xlu0 %716 }
 0x221   : > { %8195 = vst [vmem:[#allocation29_spill] sm:$0xff] %v6174_v26  ;;  %8196 = vst [vmem:[#allocation30_spill] sm:$0xff] %v6176_v55  ;;  %v1727_v60 = vcombine.low %v6172_v54, %v6176_v55  ;;  %v8226_v55 = vcombine.low %v5840_v45, %v5881_v16 }
 0x223   : > { %v6187_v57 = vrot.slane %v1727_v60, %v5599_v12 }
 0x224   : > { %v6180_v11 = vpop.permute.xlu1 %736  ;;  %v6182_v8 = vpop.permute.xlu0 %732 }
 0x225   : > { %8197 = vst [vmem:[#allocation31_spill] sm:$0xff] %v6180_v11  ;;  %8198 = vst [vmem:[#allocation32_spill] sm:$0xff] %v6182_v8  ;;  %v1743_v44 = vcombine.low %v6174_v26, %v6180_v11  ;;  %v1775_v58 = vcombine.low %v6196_v6, %v6187_v57 }
 0x227   : > { %v6203_v25 = vrot.slane %v1743_v44, %v5599_v12  ;;  %v6215_v51 = vrot.slane %v1775_v58, %v5607_v20 }
 0x228   : > { %v6191_v18 = vpop.permute.xlu1 %781  ;;  %v6193_v53 = vpop.permute.xlu0 %740 }
 0x229   : > { %8199 = vst [vmem:[#allocation33_spill] sm:$0xff] %v6191_v18  ;;  %8200 = vst [vmem:[#allocation34_spill] sm:$0xff] %v6193_v53  ;;  %v1759_v30 = vcombine.low %v6182_v8, %v6193_v53 }
 0x22a   : > { %8203 = vst [vmem:[#allocation37_spill] sm:$0xff] %v6215_v51  ;;  %v6246_v51 = vrot.slane %v8209_v9, %v5607_v20  ;;  %v876_v9 = vcombine.high %v6028_v17, %v6037_v28 }
 0x22b   : > { %v6206_v61 = vrot.slane %v1759_v30, %v5599_v12 }
 0x22c   : > { %v6208_v33 = vpop.permute.xlu1 %789  ;;  %v6210_v60 = vpop.permute.xlu0 %785  ;;  %8210 = vst [vmem:[#allocation43_spill] sm:$0xff] %v6246_v51  ;;  %v874_v51 = vrot.slane %v860_v14, %v5599_v12  ;;  %v890_v15 = vrot.slane %v876_v9, %v5599_v12 }
 0x22d   : > { %8201 = vst [vmem:[#allocation35_spill] sm:$0xff] %v6208_v33  ;;  %8202 = vst [vmem:[#allocation36_spill] sm:$0xff] %v6210_v60  ;;  %v1807_v41 = vcombine.low %v6203_v25, %v6206_v61  ;;  %v1879_v44 = vcombine.low %v6191_v18, %v6208_v33  ;;  %v924_v33 = vcombine.high %v6046_v0, %v6049_v50 }
 0x22e   : > { %v939_v9 = vcombine.low %v874_v51, %v890_v15  ;;  %v940_v8 = vcombine.high %v874_v51, %v890_v15  ;;  %v8223_v0 = vcombine.low %v5717_v2, %v5720_v3  ;;  %v8224_v51 = vcombine.high %v5723_v4, %v5726_v5 }
 0x22f   : > { %v6218_v7 = vrot.slane %v1807_v41, %v5607_v20  ;;  %v6231_v46 = vrot.slane %v1879_v44, %v5599_v12  ;;  %v8227_v4 = vcombine.low %v5969_v29, %v5975_v13 }
 0x230   : > { %v6222_v42 = vpop.permute.xlu1 %702  ;;  %v6224_v30 = vpop.permute.xlu0 %793  ;;  %v6310_v54 = vrot.slane %v939_v9, %v5607_v20  ;;  %v6320_v50 = vrot.slane %v8223_v0, %v5607_v20  ;;  %v6326_v15 = vrot.slane %v8224_v51, %v5607_v20  ;;  %v6347_v51 = vrot.slane %v924_v33, %v5607_v20 }
 0x231   : > { %8204 = vst [vmem:[#allocation38_spill] sm:$0xff] %v6218_v7  ;;  %8205 = vst [vmem:[#allocation39_spill] sm:$0xff] %v6222_v42  ;;  %v1895_v22 = vcombine.low %v6210_v60, %v6224_v30  ;;  %v1083_v5 = vrot.slane %v8227_v4, %v5607_v20  ;;  %v8230_v4 = vcombine.high %v5969_v29, %v5975_v13 }
 0x232   : > { %8206 = vst [vmem:[#allocation40_spill] sm:$0xff] %v6224_v30  ;;  %v956_v29 = vcombine.high %v6061_v23, %v6064_v27  ;;  %v960_v13 = vcombine.high %v6320_v50, %v6310_v54  ;;  %v958_v27 = vcombine.high %v6326_v15, %v6347_v51  ;;  %v1388_v23 = vcombine.high %v6103_v47, %v6150_v38 }
 0x233   : > { %v6234_v58 = vrot.slane %v1895_v22, %v5599_v12  ;;  %v6366_v33 = vrot.slane %v8230_v4, %v5607_v20 }
 0x234   : > { %v6236_v41 = vpop.permute.xlu1 %710  ;;  %v6238_v19 = vpop.permute.xlu0 %706 }
 0x235   : > { %8207 = vst [vmem:[#allocation41_spill] sm:$0xff] %v6236_v41  ;;  %8208 = vst [vmem:[#allocation42_spill] sm:$0xff] %v6238_v19  ;;  %v1943_v48 = vcombine.low %v6231_v46, %v6234_v58  ;;  %v1099_v11 = vcombine.low %v6222_v42, %v6236_v41 }
 0x237   : > { %v6249_v7 = vrot.slane %v1943_v48, %v5607_v20  ;;  %v6281_v28 = vrot.slane %v1099_v11, %v5599_v12 }
 0x238   : > { %v6251_v44 = vpop.permute.xlu1 %726  ;;  %v6253_v22 = vpop.permute.xlu0 %714 }
 0x239   : > { %8211 = vst [vmem:[#allocation44_spill] sm:$0xff] %v6249_v7  ;;  %8212 = vst [vmem:[#allocation45_spill] sm:$0xff] %v6251_v44  ;;  %v1115_v39 = vcombine.low %v6238_v19, %v6253_v22  ;;  %v959_v19 = vcombine.low %v6320_v50, %v6310_v54  ;;  %v1371_v50 = vcombine.low %v6087_v34, %v6134_v35 }
 0x23a   : > { %8213 = vst [vmem:[#allocation46_spill] sm:$0xff] %v6253_v22  ;;  %8219 = vst [vmem:[#allocation52_spill] sm:$0xff] %v6281_v28  ;;  %v957_v22 = vcombine.low %v6326_v15, %v6347_v51 }
 0x23b   : > { %v6270_v31 = vrot.slane %v1115_v39, %v5599_v12 }
 0x23c   : > { %v6263_v26 = vpop.permute.xlu1 %734  ;;  %v6265_v48 = vpop.permute.xlu0 %730 }
 0x23d   : > { %8214 = vst [vmem:[#allocation47_spill] sm:$0xff] %v6263_v26  ;;  %8215 = vst [vmem:[#allocation48_spill] sm:$0xff] %v6265_v48  ;;  %v1131_v10 = vcombine.low %v6251_v44, %v6263_v26  ;;  %v1163_v39 = vcombine.low %v6281_v28, %v6270_v31  ;;  %v6338_v26 = vrot.slane %v8226_v55, %v5607_v20 }
 0x23e   : > { %8216 = vst [vmem:[#allocation49_spill] sm:$0xff] %v6270_v31 }
 0x23f   : > { %v6288_v42 = vrot.slane %v1131_v10, %v5599_v12  ;;  %v6302_v53 = vrot.slane %v1163_v39, %v5607_v20  ;;  %v8225_v39 = vcombine.high %v5717_v2, %v5720_v3  ;;  %v6350_v2 = vrot.slane %v940_v8, %v5607_v20 }
 0x240   : > { %v6276_v24 = vpop.permute.xlu1 %779  ;;  %v6278_v17 = vpop.permute.xlu0 %738  ;;  %v8228_v3 = vcombine.low %v5960_v1, %v5972_v63  ;;  %v1999_v8 = vcombine.low %v6136_v56, %v6166_v37 }
 0x241   : > { %8217 = vst [vmem:[#allocation50_spill] sm:$0xff] %v6276_v24  ;;  %8218 = vst [vmem:[#allocation51_spill] sm:$0xff] %v6278_v17  ;;  %v1147_v7 = vcombine.low %v6265_v48, %v6278_v17  ;;  %v6332_v9 = vrot.slane %v8225_v39, %v5607_v20  ;;  %v8229_v39 = vcombine.high %v5960_v1, %v5972_v63 }
 0x242   : > { %8220 = vst [vmem:[#allocation53_spill] sm:$0xff] %v6288_v42  ;;  %v6356_v55 = vrot.slane %v8228_v3, %v5607_v20  ;;  %v2007_v60 = vrot.slane %v1999_v8, %v5599_v12 }
 0x243   : > { %v6291_v14 = vrot.slane %v1147_v7, %v5599_v12  ;;  %v1074_v28 = vrot.slane %v8229_v39, %v5607_v20  ;;  %v961_v54 = vcombine.low %v6332_v9, %v6350_v2 }
 0x244   : > { %v6293_v41 = vpop.permute.xlu1 %787  ;;  %v6295_v18 = vpop.permute.xlu0 %783 }
 0x245   : > { %8221 = vst [vmem:[#allocation54_spill] sm:$0xff] %v6291_v14  ;;  %8222 = vst [vmem:[#allocation55_spill] sm:$0xff] %v6293_v41  ;;  %v1195_v11 = vcombine.low %v6288_v42, %v6291_v14  ;;  %v1267_v7 = vcombine.low %v6276_v24, %v6293_v41 }
 0x247   : > { %v6305_v10 = vrot.slane %v1195_v11, %v5607_v20  ;;  %v6371_v31 = vrot.slane %v1267_v7, %v5599_v12  ;;  %v1387_v7 = vcombine.low %v6103_v47, %v6150_v38  ;;  %v2000_v38 = vcombine.high %v6136_v56, %v6166_v37 }
 0x248   : > { %v6314_v44 = vpop.permute.xlu0 %791  ;;  %v654_v11 = vpop.permute.xlu1 %653 }
 0x249   : > { %v1283_v0 = vcombine.low %v6295_v18, %v6314_v44  ;;  %v963_v1 = vcombine.low %v6070_v32, %v654_v11  ;;  %v964_v63 = vcombine.high %v6070_v32, %v654_v11 }
 0x24b   : > { %v6374_v3 = vrot.slane %v1283_v0, %v5599_v12  ;;  %v1983_v0 = vcombine.low %v6105_v36, %v6152_v62  ;;  %v971_v40 = vrot.slane %v963_v1, %v5599_v12 }
 0x24c   : > { %v658_v39 = vpop.permute.xlu0 %657 }
 0x24d   : > { %v1331_v4 = vcombine.low %v6371_v31, %v6374_v3  ;;  %v979_v32 = vcombine.low %v6072_v59, %v658_v39  ;;  %v980_v11 = vcombine.high %v6072_v59, %v658_v39  ;;  %v978_v59 = vrot.slane %v964_v63, %v5599_v12 }
 0x24e   : > { %v1395_v39 = vrot.slane %v1387_v7, %v5599_v12  ;;  %v1991_v24 = vrot.slane %v1983_v0, %v5599_v12  ;;  %v1372_v63 = vcombine.high %v6087_v34, %v6134_v35  ;;  %v962_v7 = vcombine.high %v6332_v9, %v6350_v2 }
 0x24f   : > { %v6404_v30 = vrot.slane %v1331_v4, %v5607_v20  ;;  %v987_v15 = vrot.slane %v979_v32, %v5599_v12  ;;  %v994_v51 = vrot.slane %v980_v11, %v5599_v12  ;;  %v1379_v32 = vrot.slane %v1371_v50, %v5599_v12 }
 0x250   : > { %v2015_v11 = vcombine.low %v1991_v24, %v2007_v60  ;;  %v1984_v34 = vcombine.high %v6105_v36, %v6152_v62  ;;  %v2014_v35 = vrot.slane %v2000_v38, %v5599_v12 }
 0x251   : > { %v1027_v8 = vcombine.low %v971_v40, %v987_v15  ;;  %v1028_v4 = vcombine.high %v971_v40, %v987_v15  ;;  %v1043_v41 = vcombine.low %v978_v59, %v994_v51  ;;  %v1044_v1 = vcombine.high %v978_v59, %v994_v51 }
 0x252   : > { %v1402_v59 = vrot.slane %v1388_v23, %v5599_v12  ;;  %v1403_v15 = vcombine.low %v1379_v32, %v1395_v39  ;;  %v2016_v51 = vcombine.high %v1991_v24, %v2007_v60  ;;  %v6437_v36 = vrot.slane %v2015_v11, %v5607_v20 }
 0x253   : > { %v1058_v0 = vrot.slane %v1044_v1, %v5607_v20  ;;  %v1051_v56 = vrot.slane %v1043_v41, %v5607_v20  ;;  %v6424_v37 = vrot.slane %v1027_v8, %v5607_v20  ;;  %v1042_v40 = vrot.slane %v1028_v4, %v5607_v20 }
 0x254   : > { %v1998_v62 = vrot.slane %v1984_v34, %v5599_v12  ;;  %v1404_v17 = vcombine.high %v1379_v32, %v1395_v39  ;;  %v6445_v60 = vrot.slane %v1403_v15, %v5607_v20  ;;  %v1386_v24 = vrot.slane %v1372_v63, %v5599_v12 }
 0x255   : > { %v1095_v50 = vcombine.low %v1051_v56, %v1083_v5  ;;  %v1092_v9 = vcombine.high %v6424_v37, %v6356_v55  ;;  %v1091_v41 = vcombine.low %v6424_v37, %v6356_v55  ;;  %v1096_v2 = vcombine.high %v1051_v56, %v1083_v5 }
 0x256   : > { %v1093_v8 = vcombine.low %v1042_v40, %v1074_v28  ;;  %v1094_v1 = vcombine.high %v1042_v40, %v1074_v28  ;;  %v1097_v4 = vcombine.low %v1058_v0, %v6366_v33  ;;  %v2031_v28 = vcombine.low %v1998_v62, %v2014_v35 }
 0x257   : > { %v4938_v23 = vpack.i.bf16 %v1095_v50, %v959_v19  ;;  %v4923_v47 = vpack.i.bf16 %v1092_v9, %v956_v29  ;;  %v4943_v42 = vpack.i.bf16 %v1096_v2, %v960_v13  ;;  %v1098_v19 = vcombine.high %v1058_v0, %v6366_v33 }
 0x258   : > { %v4928_v38 = vpack.i.bf16 %v1093_v8, %v957_v22  ;;  %v4933_v14 = vpack.i.bf16 %v1094_v1, %v958_v27  ;;  %v6440_v48 = vpack.i.bf16 %v1097_v4, %v961_v54  ;;  %v8231_v5 = vmov 0.0   ;;  %v8234_v1 = vld [vmem:[#allocation51_spill] sm:$0xff]  ;;  %v8235_v4 = vld [vmem:[#allocation48_spill] sm:$0xff] }
 0x259   : > { %4939 = vrot.lane.b32.xlu1 %v4938_v23, %s5406_s21  ;;  %4924 = vrot.lane.b32.xlu0 %v4923_v47, %s5410_s27  ;;  %v2047_v29 = vcombine.high %v6437_v36, %v8231_v5  ;;  %v6452_v27 = vrot.slane %v2016_v51, %v5607_v20  ;;  %v6454_v22 = vpack.i.bf16 %v1098_v19, %v962_v7  ;;  %v8240_v19 = vld [vmem:[#allocation21_spill] sm:$0xff] }
 0x25a   : > { %v1419_v13 = vcombine.low %v1386_v24, %v1402_v59  ;;  %v1435_v54 = vcombine.high %v6445_v60, %v8231_v5  ;;  %v6461_v33 = vrot.slane %v1404_v17, %v5607_v20  ;;  %v6464_v39 = vrot.slane %v2031_v28, %v5607_v20  ;;  %v8242_v28 = vld [vmem:[#allocation36_spill] sm:$0xff] }
 0x25b   : > { %v2048_v63 = vcombine.high %v6452_v27, %v8231_v5  ;;  %v1944_v17 = vcombine.high %v6231_v46, %v6234_v58  ;;  %v1420_v0 = vcombine.high %v1386_v24, %v1402_v59  ;;  %v1808_v56 = vcombine.high %v6203_v25, %v6206_v61  ;;  %v8241_v24 = vld [vmem:[#allocation40_spill] sm:$0xff] }
 0x25c   : > { %v4988_v47 = vpack.i.bf16 %v2047_v29, %v1435_v54  ;;  %v6469_v32 = vrot.slane %v1419_v13, %v5607_v20  ;;  %v2049_v7 = vcombine.high %v6464_v39, %v8231_v5  ;;  %v2032_v40 = vcombine.high %v1998_v62, %v2014_v35 }
 0x25d   : > { %4944 = vrot.lane.b32.xlu1 %v4943_v42, %s5404_s20  ;;  %4929 = vrot.lane.b32.xlu0 %v4928_v38, %s5408_s22  ;;  %v1436_v42 = vcombine.high %v6461_v33, %v8231_v5  ;;  %v1776_v46 = vcombine.high %v6196_v6, %v6187_v57  ;;  %v6489_v58 = vrot.slane %v1944_v17, %v5607_v20 }
 0x25e   : > { %v1364_v59 = vcombine.high %v6338_v26, %v6404_v30  ;;  %v6494_v25 = vrot.slane %v1420_v0, %v5607_v20  ;;  %v6497_v61 = vrot.slane %v1808_v56, %v5607_v20  ;;  %v1228_v57 = vcombine.high %v6302_v53, %v6305_v10 }
 0x25f   : > { %v4993_v11 = vpack.i.bf16 %v2048_v63, %v1436_v42  ;;  %v6511_v6 = vrot.slane %v2032_v40, %v5607_v20  ;;  %v6514_v35 = vrot.slane %v1776_v46, %v5607_v20  ;;  %v8233_v51 = vcombine.high %v5840_v45, %v5881_v16  ;;  %v8243_v45 = vld [vmem:[#allocation46_spill] sm:$0xff]  ;;  %v8245_v63 = vld [vmem:[#allocation49_spill] sm:$0xff]  ;;  %v8246_v42 = vld [vmem:[#allocation52_spill] sm:$0xff] }
 0x260   : > { %v5008_v9 = vpack.i.bf16 %v1364_v59, %v1228_v57  ;;  %v1438_v2 = vcombine.high %v6494_v25, %v8231_v5  ;;  %v1148_v23 = vcombine.high %v8235_v4, %v8234_v1  ;;  %v1896_v29 = vcombine.high %v8242_v28, %v8241_v24  ;;  %v8244_v16 = vld [vmem:[#allocation42_spill] sm:$0xff]  ;;  %v8250_v46 = vld [vmem:[#allocation28_spill] sm:$0xff]  ;;  %v8256_v1 = vld [vmem:[#allocation39_spill] sm:$0xff] }
 0x261   : > { %4989 = vrot.lane.b32.xlu1 %v4988_v47, %s5410_s27  ;;  %4934 = vrot.lane.b32.xlu0 %v4933_v14, %s5409_s24  ;;  %v1437_v14 = vcombine.high %v6469_v32, %v8231_v5  ;;  %v6530_v8 = vrot.slane %v8233_v51, %v5607_v20  ;;  %v1116_v13 = vcombine.high %v8244_v16, %v8243_v45  ;;  %v8249_v40 = vld [vmem:[#allocation30_spill] sm:$0xff]  ;;  %v8255_v51 = vld [vmem:[#allocation41_spill] sm:$0xff] }
 0x262   : > { %v2050_v47 = vcombine.high %v6511_v6, %v8231_v5  ;;  %v1164_v17 = vcombine.high %v8246_v42, %v8245_v63  ;;  %v8251_v59 = vld [vmem:[#allocation34_spill] sm:$0xff]  ;;  %v1100_v4 = vcombine.high %v8256_v1, %v8255_v51  ;;  %v1910_v24 = vrot.slane %v1896_v29, %v5599_v12  ;;  %v8261_v63 = vld [vmem:[#allocation25_spill] sm:$0xff] }
 0x263   : > { %v4998_v15 = vpack.i.bf16 %v2049_v7, %v1437_v14  ;;  %v8248_v7 = vld [vmem:[#allocation45_spill] sm:$0xff]  ;;  %v6581_v28 = vrot.slane %v1116_v13, %v5599_v12 }
 0x264   : > { %v8264_v51 = vld [vmem:[#allocation13_spill] sm:$0xff] }
 0x265   : > { %4994 = vrot.lane.b32.xlu1 %v4993_v11, %s5409_s24  ;;  %4949 = vrot.lane.b32.xlu0 %v6148_v43, %s5410_s27  ;;  %v8232_v43 = vcombine.high %v5846_v49, %v5887_v21  ;;  %v1284_v49 = vcombine.high %v6295_v18, %v6314_v44  ;;  %v1332_v21 = vcombine.high %v6371_v31, %v6374_v3  ;;  %v8236_v18 = vld [vmem:[#allocation54_spill] sm:$0xff]  ;;  %v8237_v44 = vld [vmem:[#allocation53_spill] sm:$0xff]  ;;  %v8238_v31 = vld [vmem:[#allocation55_spill] sm:$0xff] }
 0x266   : > { %v1196_v62 = vcombine.high %v8237_v44, %v8236_v18  ;;  %v8239_v3 = vld [vmem:[#allocation50_spill] sm:$0xff]  ;;  %v8247_v11 = vld [vmem:[#allocation47_spill] sm:$0xff]  ;;  %v6566_v18 = vrot.slane %v1148_v23, %v5599_v12  ;;  %v5023_v23 = vpack.i.bf16 %v2050_v47, %v1438_v2  ;;  %v6598_v2 = vrot.slane %v1100_v4, %v5599_v12 }
 0x267   : > { %v6503_v34 = vrot.slane %v8232_v43, %v5607_v20  ;;  %v1268_v38 = vcombine.high %v8239_v3, %v8238_v31  ;;  %v1132_v0 = vcombine.high %v8248_v7, %v8247_v11  ;;  %v6552_v56 = vrot.slane %v1284_v49, %v5599_v12  ;;  %v8252_v43 = vld [vmem:[#allocation32_spill] sm:$0xff]  ;;  %v8257_v44 = vld [vmem:[#allocation22_spill] sm:$0xff]  ;;  %v8258_v31 = vld [vmem:[#allocation31_spill] sm:$0xff] }
 0x268   : > { %v6555_v14 = vrot.slane %v1332_v21, %v5607_v20  ;;  %v1760_v57 = vcombine.high %v8252_v43, %v8251_v59  ;;  %v6569_v49 = vrot.slane %v1196_v62, %v5607_v20  ;;  %v8259_v3 = vld [vmem:[#allocation29_spill] sm:$0xff]  ;;  %v6584_v62 = vrot.slane %v1164_v17, %v5607_v20  ;;  %v8262_v17 = vld [vmem:[#allocation23_spill] sm:$0xff] }
 0x269   : > { %4999 = vrot.lane.b32.xlu1 %v4998_v15, %s5404_s20  ;;  %4954 = vrot.lane.b32.xlu0 %v6154_v52, %s5408_s22  ;;  %v1977_v50 = vcombine.low %v6503_v34, %v6489_v58  ;;  %v1841_v52 = vcombine.low %v6514_v35, %v6497_v61  ;;  %v1728_v15 = vcombine.high %v8250_v46, %v8249_v40 }
 0x26a   : > { %v6572_v21 = vrot.slane %v1268_v38, %v5599_v12  ;;  %v6587_v38 = vrot.slane %v1132_v0, %v5599_v12  ;;  %v1366_v16 = vcombine.high %v6530_v8, %v6555_v14  ;;  %v1774_v29 = vrot.slane %v1760_v57, %v5599_v12 }
 0x26b   : > { %v5013_v54 = vpack.i.bf16 %v1977_v50, %v1841_v52  ;;  %v8253_v50 = vld [vmem:[#allocation35_spill] sm:$0xff]  ;;  %v1230_v11 = vcombine.high %v6584_v62, %v6569_v49  ;;  %v1742_v7 = vrot.slane %v1728_v15, %v5599_v12  ;;  %v1179_v46 = vcombine.low %v6598_v2, %v6581_v28 }
 0x26c   : > { %v1347_v45 = vcombine.low %v6572_v21, %v6552_v56  ;;  %v1211_v47 = vcombine.low %v6587_v38, %v6566_v18  ;;  %v4973_v57 = vpack.i.bf16 %v6452_v27, %v6461_v33  ;;  %v8263_v15 = vld [vmem:[#allocation11_spill] sm:$0xff]  ;;  %v4978_v27 = vpack.i.bf16 %v6464_v39, %v6469_v32  ;;  %v8269_v32 = vld [vmem:[#allocation44_spill] sm:$0xff] }
 0x26d   : > { %5009 = vrot.lane.b32.xlu1 %v5008_v9, %s5410_s27  ;;  %4959 = vrot.lane.b32.xlu0 %v8240_v19, %s5409_s24  ;;  %v8254_v9 = vld [vmem:[#allocation33_spill] sm:$0xff]  ;;  %v1744_v19 = vcombine.high %v8259_v3, %v8258_v31  ;;  %v5033_v43 = vpack.i.bf16 %v1366_v16, %v1230_v11  ;;  %v8265_v1 = vcombine.low %v8263_v15, %v8264_v51 }
 0x26e   : > { %v1880_v52 = vcombine.high %v8254_v9, %v8253_v50  ;;  %v1355_v59 = vrot.slane %v1347_v45, %v5607_v20  ;;  %v1187_v3 = vrot.slane %v1179_v46, %v5607_v20  ;;  %v8267_v45 = vld [vmem:[#allocation14_spill] sm:$0xff]  ;;  %v4983_v39 = vpack.i.bf16 %v6511_v6, %v6494_v25 }
 0x26f   : > { %v1758_v0 = vrot.slane %v1744_v19, %v5599_v12  ;;  %v1323_v4 = vrot.slane %v8265_v1, %v5607_v20 }
 0x270   : > { %v1894_v13 = vrot.slane %v1880_v52, %v5599_v12  ;;  %v1219_v52 = vrot.slane %v1211_v47, %v5607_v20 }
 0x271   : > { %5014 = vrot.lane.b32.xlu1 %v5013_v54, %s5408_s22  ;;  %4964 = vrot.lane.b32.xlu0 %v8257_v44, %s5406_s21  ;;  %v8260_v54 = vld [vmem:[#allocation27_spill] sm:$0xff]  ;;  %v1823_v9 = vcombine.low %v1758_v0, %v1774_v29  ;;  %v1367_v33 = vcombine.low %v1323_v4, %v1355_v59  ;;  %v1368_v6 = vcombine.high %v1323_v4, %v1355_v59 }
 0x272   : > { %v1712_v42 = vcombine.high %v8261_v63, %v8260_v54  ;;  %v1959_v40 = vcombine.low %v1894_v13, %v1910_v24  ;;  %v1231_v63 = vcombine.low %v1187_v3, %v1219_v52  ;;  %v1960_v47 = vcombine.high %v1894_v13, %v1910_v24 }
 0x273   : > { %v1831_v19 = vrot.slane %v1823_v9, %v5607_v20  ;;  %v8272_v9 = vld [vmem:[#allocation37_spill] sm:$0xff]  ;;  %v1978_v59 = vcombine.high %v6503_v34, %v6489_v58  ;;  %v1842_v58 = vcombine.high %v6514_v35, %v6497_v61 }
 0x274   : > { %v1726_v50 = vrot.slane %v1712_v42, %v5599_v12  ;;  %v1967_v31 = vrot.slane %v1959_v40, %v5607_v20  ;;  %v5058_v11 = vpack.i.bf16 %v1367_v33, %v1231_v63  ;;  %v8270_v40 = vld [vmem:[#allocation43_spill] sm:$0xff]  ;;  %v1974_v24 = vrot.slane %v1960_v47, %v5607_v20 }
 0x275   : > { %5024 = vrot.lane.b32.xlu1 %v5023_v23, %s5405_s11  ;;  %4969 = vrot.lane.b32.xlu0 %v8262_v17, %s5404_s20  ;;  %v8266_v23 = vld [vmem:[#allocation12_spill] sm:$0xff]  ;;  %v1976_v46 = vcombine.high %v8270_v40, %v8269_v32 }
 0x276   : > { %v1791_v44 = vcombine.low %v1726_v50, %v1742_v7  ;;  %v8268_v16 = vcombine.low %v8266_v23, %v8267_v45  ;;  %v8273_v33 = vcombine.high %v8266_v23, %v8267_v45  ;;  %v5028_v23 = vpack.i.bf16 %v1978_v59, %v1842_v58 }
 0x278   : > { %v1935_v54 = vrot.slane %v8268_v16, %v5607_v20  ;;  %v1799_v42 = vrot.slane %v1791_v44, %v5607_v20  ;;  %v1348_v44 = vcombine.high %v6572_v21, %v6552_v56  ;;  %v1942_v16 = vrot.slane %v8273_v33, %v5607_v20 }
 0x279   : > { %5034 = vrot.lane.b32.xlu1 %v5033_v43, %s5409_s24  ;;  %4974 = vrot.lane.b32.xlu0 %v4973_v57, %s5408_s22  ;;  %v1824_v43 = vcombine.high %v1758_v0, %v1774_v29  ;;  %v1365_v29 = vcombine.low %v6530_v8, %v6555_v14  ;;  %v1232_v56 = vcombine.high %v1187_v3, %v1219_v52 }
 0x27a   : > { %v1980_v17 = vcombine.high %v1935_v54, %v1967_v31  ;;  %v1844_v57 = vcombine.high %v1799_v42, %v1831_v19  ;;  %v1229_v21 = vcombine.low %v6584_v62, %v6569_v49  ;;  %v1981_v14 = vcombine.low %v1942_v16, %v1974_v24 }
 0x27b   : > { %v1838_v0 = vrot.slane %v1824_v43, %v5607_v20  ;;  %v1362_v4 = vrot.slane %v1348_v44, %v5607_v20  ;;  %v8274_v52 = vcombine.high %v8263_v15, %v8264_v51  ;;  %v1979_v34 = vcombine.low %v1935_v54, %v1967_v31  ;;  %v8275_v54 = vld [vmem:[#allocation24_spill] sm:$0xff] }
 0x27c   : > { %v5063_v13 = vpack.i.bf16 %v1980_v17, %v1844_v57  ;;  %v1843_v51 = vcombine.low %v1799_v42, %v1831_v19  ;;  %v1982_v17 = vcombine.high %v1942_v16, %v1974_v24  ;;  %v8276_v42 = vld [vmem:[#allocation26_spill] sm:$0xff] }
 0x27d   : > { %5049 = vrot.lane.b32.xlu1 %v6440_v48, %s5407_s18  ;;  %4979 = vrot.lane.b32.xlu0 %v4978_v27, %s5406_s21  ;;  %v8271_v48 = vld [vmem:[#allocation38_spill] sm:$0xff]  ;;  %v1792_v27 = vcombine.high %v1726_v50, %v1742_v7  ;;  %v1212_v7 = vcombine.high %v6587_v38, %v6566_v18  ;;  %v1180_v50 = vcombine.high %v6598_v2, %v6581_v28 }
 0x27e   : > { %v1840_v1 = vcombine.high %v8272_v9, %v8271_v48  ;;  %v5068_v18 = vpack.i.bf16 %v1368_v6, %v1232_v56  ;;  %v5018_v38 = vpack.i.bf16 %v1365_v29, %v1229_v21  ;;  %v1330_v3 = vrot.slane %v8274_v52, %v5607_v20 }
 0x27f   : > { %v1806_v8 = vrot.slane %v1792_v27, %v5607_v20  ;;  %v1226_v49 = vrot.slane %v1212_v7, %v5607_v20  ;;  %v1194_v28 = vrot.slane %v1180_v50, %v5607_v20  ;;  %v5038_v47 = vpack.i.bf16 %v1979_v34, %v1843_v51 }
 0x280   : > { %v5003_v25 = vpack.i.bf16 %v1976_v46, %v1840_v1  ;;  %v1369_v45 = vcombine.low %v1330_v3, %v1362_v4  ;;  %v1370_v31 = vcombine.high %v1330_v3, %v1362_v4 }
 0x281   : > { %5059 = vrot.lane.b32.xlu1 %v5058_v11, %s5406_s21  ;;  %4984 = vrot.lane.b32.xlu0 %v4983_v39, %s5407_s18  ;;  %v1845_v62 = vcombine.low %v1806_v8, %v1838_v0  ;;  %v1233_v15 = vcombine.low %v1194_v28, %v1226_v49  ;;  %v1846_v61 = vcombine.high %v1806_v8, %v1838_v0  ;;  %v5418_v39 = vmov 0  }
 0x282   : > { %v1234_v11 = vcombine.high %v1194_v28, %v1226_v49  ;;  %2457 = vmatprep.mubr.bf16.mxu0 %v5418_v39  ;;  %4695 = vmatprep.mubr.bf16.mxu1 %v5418_v39 }
 0x283   : > { %v5073_v2 = vpack.i.bf16 %v1981_v14, %v1845_v62  ;;  %v5078_v63 = vpack.i.bf16 %v1369_v45, %v1233_v15  ;;  %v5083_v35 = vpack.i.bf16 %v1982_v17, %v1846_v61  ;;  %v8278_v17 = vld [vmem:[#allocation16_spill] sm:$0xff] }
 0x284   : > { %v5088_v19 = vpack.i.bf16 %v1370_v31, %v1234_v11 }
 0x285   : > { %5064 = vrot.lane.b32.xlu1 %v5063_v13, %s5404_s20  ;;  %5004 = vrot.lane.b32.xlu0 %v5003_v25, %s5410_s27 }
 0x289   : > { %5069 = vrot.lane.b32.xlu1 %v5068_v18, %s5404_s20  ;;  %5019 = vrot.lane.b32.xlu0 %v5018_v38, %s5408_s22 }
 0x28d   : > { %5074 = vrot.lane.b32.xlu1 %v5073_v2, %s5407_s18  ;;  %5029 = vrot.lane.b32.xlu0 %v5028_v23, %s5409_s24 }
 0x291   : > { %5079 = vrot.lane.b32.xlu1 %v5078_v63, %s5407_s18  ;;  %5039 = vrot.lane.b32.xlu0 %v5038_v47, %s5406_s21  ;;  %v8277_v47 = vld [vmem:[#allocation15_spill] sm:$0xff] }
 0x292   : > { %v8279_v61 = vcombine.low %v8277_v47, %v8278_v17  ;;  %v8280_v47 = vld [vmem:[#allocation20_spill] sm:$0xff]  ;;  %v8281_v17 = vld [vmem:[#allocation19_spill] sm:$0xff] }
 0x295   : > { %5084 = vrot.lane.b32.xlu1 %v5083_v35, %s5405_s11  ;;  %5044 = vrot.lane.b32.xlu0 %v8275_v54, %s5407_s18 }
 0x299   : > { %5089 = vrot.lane.b32.xlu1 %v5088_v19, %s5405_s11  ;;  %5054 = vrot.lane.b32.xlu0 %v8276_v42, %s5405_s11 }
 0x29d   : > { %5094 = vrot.lane.b32.xlu1 %v6454_v22, %s5405_s11 }
 0x2cb   : > { %v6687_v46 = vpop.permute.xlu1 %4939  ;;  %v4925_v43 = vpop.permute.xlu0 %4924 }
 0x2cc   : > { %v4927_v38 = vunpack.i.h.bf16 %v4925_v43  ;;  %v4926_v52 = vunpack.i.l.bf16 %v4925_v43 }
 0x2ce   : > { %v2332_v35 = vsel %vm2331_vm5, %v8279_v61, %v4926_v52  ;;  %v2333_v31 = vsel %vm2331_vm5, %v1091_v41, %v4927_v38  ;;  %v8282_v61 = vcombine.low %v8280_v47, %v8281_v17 }
 0x2cf   : > { %v6689_v57 = vpop.permute.xlu1 %4944  ;;  %v4930_v1 = vpop.permute.xlu0 %4929 }
 0x2d0   : > { %v4932_v62 = vunpack.i.h.bf16 %v4930_v1  ;;  %v4931_v58 = vunpack.i.l.bf16 %v4930_v1 }
 0x2d2   : > { %v2338_v39 = vsel %vm2337_vm6, %v2332_v35, %v4931_v58  ;;  %v2339_v19 = vsel %vm2337_vm6, %v2333_v31, %v4932_v62  ;;  %v4946_v62 = vunpack.i.l.bf16 %v6689_v57 }
 0x2d3   : > { %v4990_v27 = vpop.permute.xlu1 %4989  ;;  %v4935_v24 = vpop.permute.xlu0 %4934 }
 0x2d4   : > { %v4992_v56 = vunpack.i.h.bf16 %v4990_v27  ;;  %v4991_v21 = vunpack.i.l.bf16 %v4990_v27  ;;  %v4937_v45 = vunpack.i.h.bf16 %v4935_v24 }
 0x2d6   : > { %v2377_v4 = vsel %vm2331_vm5, %v6437_v36, %v4992_v56  ;;  %v2336_v18 = vsel %vm2331_vm5, %v6445_v60, %v4991_v21  ;;  %v4936_v36 = vunpack.i.l.bf16 %v4935_v24 }
 0x2d7   : > { %v4995_v13 = vpop.permute.xlu1 %4994  ;;  %v6691_v44 = vpop.permute.xlu0 %4949 }
 0x2d8   : > { %v4997_v34 = vunpack.i.h.bf16 %v4995_v13  ;;  %v4996_v28 = vunpack.i.l.bf16 %v4995_v13  ;;  %v2344_v24 = vsel %vm2343_vm7, %v2338_v39, %v4936_v36  ;;  %v2345_v13 = vsel %vm2343_vm7, %v2339_v19, %v4937_v45  ;;  %v8284_v39 = vld [vmem:[#allocation18_spill] sm:$0xff] }
 0x2d9   : > { %v4952_v38 = vunpack.i.h.bf16 %v6691_v44 }
 0x2db   : > { %v5000_v25 = vpop.permute.xlu1 %4999  ;;  %v6693_v6 = vpop.permute.xlu0 %4954  ;;  %v2374_v35 = vsel %vm2331_vm5, %v8282_v61, %v4952_v38 }
 0x2dc   : > { %v5002_v42 = vunpack.i.h.bf16 %v5000_v25  ;;  %v5001_v43 = vunpack.i.l.bf16 %v5000_v25  ;;  %v4941_v25 = vunpack.i.l.bf16 %v6687_v46 }
 0x2de   : > { %v6751_v58 = vsel %vm2349_vm8, %v2344_v24, %v4941_v25 }
 0x2df   : > { %v6695_v29 = vpop.permute.xlu1 %5009  ;;  %v6697_v0 = vpop.permute.xlu0 %4959 }
 0x2e3   : > { %v6699_v33 = vpop.permute.xlu1 %5014  ;;  %v6701_v22 = vpop.permute.xlu0 %4964 }
 0x2e4   : > { %v4966_v31 = vunpack.i.l.bf16 %v6701_v22  ;;  %v5017_v25 = vunpack.i.h.bf16 %v6699_v33 }
 0x2e7   : > { %v6703_v16 = vpop.permute.xlu1 %5024  ;;  %v6705_v7 = vpop.permute.xlu0 %4969 }
 0x2e8   : > { %v5027_v41 = vunpack.i.h.bf16 %v6703_v16  ;;  %v5026_v56 = vunpack.i.l.bf16 %v6703_v16 }
 0x2eb   : > { %v6707_v8 = vpop.permute.xlu1 %5034  ;;  %v4975_v14 = vpop.permute.xlu0 %4974 }
 0x2ec   : > { %v4977_v59 = vunpack.i.h.bf16 %v4975_v14  ;;  %v4976_v50 = vunpack.i.l.bf16 %v4975_v14 }
 0x2ee   : > { %v2382_v3 = vsel %vm2337_vm6, %v2377_v4, %v4977_v59  ;;  %v2342_v49 = vsel %vm2337_vm6, %v2336_v18, %v4976_v50  ;;  %v4942_v59 = vunpack.i.h.bf16 %v6687_v46  ;;  %v4947_v18 = vunpack.i.h.bf16 %v6689_v57 }
 0x2ef   : > { %v6715_v2 = vpop.permute.xlu1 %5049  ;;  %v4980_v23 = vpop.permute.xlu0 %4979  ;;  %v2348_v60 = vsel %vm2343_vm7, %v2342_v49, %v4996_v28  ;;  %v2387_v63 = vsel %vm2343_vm7, %v2382_v3, %v4997_v34  ;;  %v4951_v34 = vunpack.i.l.bf16 %v6691_v44  ;;  %v4957_v28 = vunpack.i.h.bf16 %v6693_v6 }
 0x2f0   : > { %v4982_v15 = vunpack.i.h.bf16 %v4980_v23  ;;  %v4981_v51 = vunpack.i.l.bf16 %v4980_v23  ;;  %v6754_v46 = vsel %vm2349_vm8, %v2345_v13, %v4942_v59  ;;  %v4956_v23 = vunpack.i.l.bf16 %v6693_v6 }
 0x2f1   : > { %v4967_v44 = vunpack.i.h.bf16 %v6701_v22  ;;  %v2379_v22 = vsel %vm2337_vm6, %v2374_v35, %v4957_v28 }
 0x2f2   : > { %v2354_v54 = vsel %vm2349_vm8, %v2348_v60, %v4981_v51  ;;  %v2392_v11 = vsel %vm2349_vm8, %v2387_v63, %v4982_v15  ;;  %v5012_v15 = vunpack.i.h.bf16 %v6695_v29  ;;  %v5011_v51 = vunpack.i.l.bf16 %v6695_v29 }
 0x2f3   : > { %v6731_v1 = vpop.permute.xlu1 %5059  ;;  %v4985_v27 = vpop.permute.xlu0 %4984  ;;  %v2397_v21 = vsel %vm2355_vm9, %v2392_v11, %v5002_v42  ;;  %v2360_v14 = vsel %vm2355_vm9, %v2354_v54, %v5001_v43  ;;  %v4962_v60 = vunpack.i.h.bf16 %v6697_v0  ;;  %v4961_v63 = vunpack.i.l.bf16 %v6697_v0  ;;  %v8283_v11 = vld [vmem:[#allocation17_spill] sm:$0xff] }
 0x2f4   : > { %v4987_v55 = vunpack.i.h.bf16 %v4985_v27  ;;  %v4986_v37 = vunpack.i.l.bf16 %v4985_v27  ;;  %v8285_v19 = vcombine.low %v8283_v11, %v8284_v39  ;;  %v4971_v42 = vunpack.i.l.bf16 %v6705_v7 }
 0x2f5   : > { %v2384_v59 = vsel %vm2343_vm7, %v2379_v22, %v4962_v60 }
 0x2f6   : > { %v2402_v50 = vsel %vm2361_vm10, %v2397_v21, %v4987_v55  ;;  %v2366_v4 = vsel %vm2361_vm10, %v2360_v14, %v4986_v37  ;;  %v2373_v0 = vsel %vm2331_vm5, %v8285_v19, %v4951_v34  ;;  %v8286_v37 = vcombine.low %v6338_v26, %v6404_v30 }
 0x2f7   : > { %v6745_v52 = vpop.permute.xlu1 %5064  ;;  %v5005_v3 = vpop.permute.xlu0 %5004  ;;  %v2407_v16 = vsel %vm2367_vm11, %v2402_v50, %v5027_v41  ;;  %v2372_v49 = vsel %vm2367_vm11, %v2366_v4, %v5026_v56  ;;  %v2378_v24 = vsel %vm2337_vm6, %v2373_v0, %v4956_v23  ;;  %v8287_v56 = vcombine.low %v6302_v53, %v6305_v10 }
 0x2f8   : > { %v2413_v45 = vpack.c.bf16 %v2407_v16, %v2407_v16  ;;  %v2412_v36 = vpack.c.bf16 %v2372_v49, %v2372_v49  ;;  %v5007_v43 = vunpack.i.h.bf16 %v5005_v3  ;;  %v5006_v27 = vunpack.i.l.bf16 %v5005_v3 }
 0x2f9   : > { %v2335_v41 = vsel %vm2331_vm5, %v8286_v37, %v5012_v15  ;;  %v2334_v21 = vsel %vm2331_vm5, %v8287_v56, %v5011_v51  ;;  %v2383_v14 = vsel %vm2343_vm7, %v2378_v24, %v4961_v63  ;;  %v5016_v50 = vunpack.i.l.bf16 %v6699_v33 }
 0x2fa   : > { %4840 = vmatprep.subr.msk.bf16.mxu0 %vm2418_vm12, %v2413_v45  ;;  %v2420_v29 = vsel %vm2418_vm12, %v2412_v36, 0  ;;  %v2388_v4 = vsel %vm2349_vm8, %v2383_v14, %v4966_v31  ;;  %v2389_v38 = vsel %vm2349_vm8, %v2384_v59, %v4967_v44  ;;  %v4972_v3 = vunpack.i.h.bf16 %v6705_v7 }
 0x2fb   : > { %v6770_v6 = vpop.permute.xlu1 %5069  ;;  %v5020_v54 = vpop.permute.xlu0 %5019  ;;  %2436 = vmatpush1.bf16.msra.mxu0 %v2420_v29  ;;  %v2393_v53 = vsel %vm2355_vm9, %v2388_v4, %v4971_v42  ;;  %v8288_v10 = vcombine.low %v8270_v40, %v8269_v32  ;;  %v8289_v49 = vcombine.low %v8272_v9, %v8271_v48  ;;  %v5037_v7 = vunpack.i.h.bf16 %v6707_v8 }
 0x2fc   : > { %v5022_v13 = vunpack.i.h.bf16 %v5020_v54  ;;  %v5021_v55 = vunpack.i.l.bf16 %v5020_v54  ;;  %v5036_v36 = vunpack.i.l.bf16 %v6707_v8  ;;  %v5062_v15 = vunpack.i.h.bf16 %v6731_v1 }
 0x2fd   : > { %v2376_v16 = vsel %vm2331_vm5, %v8288_v10, %v5007_v43  ;;  %v2375_v33 = vsel %vm2331_vm5, %v8289_v49, %v5006_v27  ;;  %v5061_v32 = vunpack.i.l.bf16 %v6731_v1  ;;  %v5067_v40 = vunpack.i.h.bf16 %v6745_v52 }
 0x2fe   : > { %v2341_v34 = vsel %vm2337_vm6, %v2335_v41, %v5022_v13  ;;  %v2340_v28 = vsel %vm2337_vm6, %v2334_v21, %v5021_v55  ;;  %v5066_v48 = vunpack.i.l.bf16 %v6745_v52  ;;  %v2380_v9 = vsel %vm2337_vm6, %v2375_v33, %v5016_v50 }
 0x2ff   : > { %v5075_v26 = vpop.permute.xlu1 %5074  ;;  %v5030_v30 = vpop.permute.xlu0 %5029  ;;  %v2381_v51 = vsel %vm2337_vm6, %v2376_v16, %v5017_v25  ;;  %v2347_v47 = vsel %vm2343_vm7, %v2341_v34, %v5037_v7  ;;  %v2346_v17 = vsel %vm2343_vm7, %v2340_v28, %v5036_v36  ;;  %v5072_v35 = vunpack.i.h.bf16 %v6770_v6 }
 0x300   : > { %v5032_v23 = vunpack.i.h.bf16 %v5030_v30  ;;  %v5031_v45 = vunpack.i.l.bf16 %v5030_v30  ;;  %v5071_v1 = vunpack.i.l.bf16 %v6770_v6  ;;  %v5077_v31 = vunpack.i.h.bf16 %v5075_v26 }
 0x301   : > { %v5076_v54 = vunpack.i.l.bf16 %v5075_v26  ;;  %v2352_v43 = vsel %vm2349_vm8, %v2346_v17, %v5061_v32  ;;  %v2353_v6 = vsel %vm2349_vm8, %v2347_v47, %v5062_v15  ;;  %v2394_v21 = vsel %vm2355_vm9, %v2389_v38, %v4972_v3 }
 0x302   : > { %v2385_v44 = vsel %vm2343_vm7, %v2380_v9, %v5031_v45  ;;  %v2386_v52 = vsel %vm2343_vm7, %v2381_v51, %v5032_v23  ;;  %v5052_v14 = vunpack.i.h.bf16 %v6715_v2  ;;  %v5051_v50 = vunpack.i.l.bf16 %v6715_v2 }
 0x303   : > { %v5080_v60 = vpop.permute.xlu1 %5079  ;;  %v5040_v63 = vpop.permute.xlu0 %5039  ;;  %v2358_v10 = vsel %vm2355_vm9, %v2352_v43, %v5071_v1  ;;  %v2359_v16 = vsel %vm2355_vm9, %v2353_v6, %v5072_v35  ;;  %v201_v35 = vld [vmem:[#allocation5] sm:$0x3] }
 0x304   : > { %v5042_v61 = vunpack.i.h.bf16 %v5040_v63  ;;  %v5041_v8 = vunpack.i.l.bf16 %v5040_v63  ;;  %v5082_v27 = vunpack.i.h.bf16 %v5080_v60  ;;  %v5081_v24 = vunpack.i.l.bf16 %v5080_v60 }
 0x305   : > { %v2357_v60 = vsel %vm2355_vm9, %v6754_v46, %v4947_v18 }
 0x306   : > { %v2390_v29 = vsel %vm2349_vm8, %v2385_v44, %v5041_v8  ;;  %v2391_v11 = vsel %vm2349_vm8, %v2386_v52, %v5042_v61  ;;  %v2364_v38 = vsel %vm2361_vm10, %v2358_v10, %v5081_v24  ;;  %v2365_v3 = vsel %vm2361_vm10, %v2359_v16, %v5082_v27 }
 0x307   : > { %v5085_v39 = vpop.permute.xlu1 %5084  ;;  %v5045_v19 = vpop.permute.xlu0 %5044  ;;  %v2395_v0 = vsel %vm2355_vm9, %v2390_v29, %v5066_v48  ;;  %v2396_v42 = vsel %vm2355_vm9, %v2391_v11, %v5067_v40  ;;  %v2363_v47 = vsel %vm2361_vm10, %v2357_v60, %v5052_v14 }
 0x308   : > { %v5087_v22 = vunpack.i.h.bf16 %v5085_v39  ;;  %v5086_v13 = vunpack.i.l.bf16 %v5085_v39  ;;  %v5047_v55 = vunpack.i.h.bf16 %v5045_v19  ;;  %v5046_v37 = vunpack.i.l.bf16 %v5045_v19 }
 0x309   : > { %v2400_v41 = vsel %vm2361_vm10, %v2395_v0, %v5076_v54  ;;  %v2401_v56 = vsel %vm2361_vm10, %v2396_v42, %v5077_v31 }
 0x30a   : > { %v2405_v59 = vsel %vm2367_vm11, %v2400_v41, %v5086_v13  ;;  %v2406_v25 = vsel %vm2367_vm11, %v2401_v56, %v5087_v22  ;;  %v2398_v23 = vsel %vm2361_vm10, %v2393_v53, %v5046_v37  ;;  %v2399_v2 = vsel %vm2361_vm10, %v2394_v21, %v5047_v55 }
 0x30b   : > { %v5090_v4 = vpop.permute.xlu1 %5089  ;;  %v5055_v26 = vpop.permute.xlu0 %5054  ;;  %v2411_v30 = vpack.c.bf16 %v2406_v25, %v2405_v59  ;;  %v2356_v53 = vsel %vm2355_vm9, %v6751_v58, %v4946_v62 }
 0x30c   : > { %v5092_v49 = vunpack.i.h.bf16 %v5090_v4  ;;  %v5091_v33 = vunpack.i.l.bf16 %v5090_v4  ;;  %v5057_v34 = vunpack.i.h.bf16 %v5055_v26  ;;  %v5056_v28 = vunpack.i.l.bf16 %v5055_v26 }
 0x30d   : > { %2437 = vmatprep.subr.bf16.mxu0 %v2411_v30  ;;  %v2362_v63 = vsel %vm2361_vm10, %v2356_v53, %v5051_v50 }
 0x30e   : > { %v2370_v45 = vsel %vm2367_vm11, %v2364_v38, %v5091_v33  ;;  %v2371_v7 = vsel %vm2367_vm11, %v2365_v3, %v5092_v49  ;;  %v2403_v36 = vsel %vm2367_vm11, %v2398_v23, %v5056_v28  ;;  %v2404_v15 = vsel %vm2367_vm11, %v2399_v2, %v5057_v34 }
 0x30f   : > { %v5095_v32 = vpop.permute.xlu1 %5094  ;;  %v2410_v40 = vpack.c.bf16 %v2371_v7, %v2370_v45  ;;  %v2409_v48 = vpack.c.bf16 %v2404_v15, %v2403_v36 }
 0x310   : > { %v5097_v9 = vunpack.i.h.bf16 %v5095_v32  ;;  %v5096_v51 = vunpack.i.l.bf16 %v5095_v32 }
 0x311   : > { %2438 = vmatpush1.bf16.msra.mxu0 %v2410_v40 }
 0x312   : > { %2439 = vmatprep.subr.bf16.mxu0 %v2409_v48  ;;  %v2368_v17 = vsel %vm2367_vm11, %v2362_v63, %v5096_v51  ;;  %v2369_v61 = vsel %vm2367_vm11, %v2363_v47, %v5097_v9 }
 0x313   : > { %v2408_v8 = vpack.c.bf16 %v2369_v61, %v2368_v17 }
 0x315   : > { %2440 = vmatpush1.bf16.msra.mxu0 %v2408_v8 }
 0x318   : > { %4841 = vmatmul.mubr.msk.bf16.vlgmr.msra.gmra.mxu0 %vm2414_vm13, %v201_v35 }
 0x3d8   : > { %v2459_v57 = vpop.f32.mrf.mxu0 }
 0x3d9   : > { %v2467_v18 = vsel %vm2466_vm14, %v2459_v57, 0.0 }
 0x3da   : > { %v2461_v62 = vpop.f32.mrf.mxu0 }
 0x3db   : > { %v2468_v58 = vsel %vm2466_vm14, %v2461_v62, 0.0 }
 0x3dc   : > { %v2469_v46 = vadd.f32 %v2468_v58, %v2467_v18  ;;  %v2463_v1 = vpop.f32.mrf.mxu0 }
 0x3de   : > { %2470 = vadd.xlane.f32.xlu0 %v2469_v46  ;;  %v2464_v44 = vpop.f32.mrf.mxu0 }
 0x467   : > { %v2471_v52 = vpop.xlane.xlu0 %2470 }
 0x468   : > { %v2473_v31 = vmul.f32 0.00390625, %v2471_v52 }
 0x46a   : > { %v2474_v54 = vsub.f32 %v2459_v57, %v2473_v31  ;;  %v2475_v29 = vsub.f32 %v2461_v62, %v2473_v31 }
 0x46c   : > { %v2476_v11 = vmul.f32 %v2474_v54, %v2474_v54  ;;  %v2477_v39 = vmul.f32 %v2475_v29, %v2475_v29 }
 0x46e   : > { %v2478_v19 = vsel %vm2466_vm14, %v2476_v11, 0.0  ;;  %v2479_v0 = vsel %vm2466_vm14, %v2477_v39, 0.0 }
 0x46f   : > { %v2480_v42 = vadd.f32 %v2479_v0, %v2478_v19 }
 0x471   : > { %2481 = vadd.xlane.f32.xlu1 %v2480_v42 }
 0x4fa   : > { %v2482_v43 = vpop.xlane.xlu1 %2481 }
 0x4fb   : > { %v2483_v6 = vmul.f32 0.00390625, %v2482_v43 }
 0x4fd   : > { %v2484_v27 = vadd.f32 1e-05, %v2483_v6 }
 0x4ff   : > { %5273 = vrsqrt.f32 %v2484_v27 }
 0x50c   : > { %v5274_v24 = vpop.eup %5273 }
 0x50d   : > { %v2486_v22 = vmul.f32 %v5274_v24, %v2474_v54  ;;  %v2487_v55 = vmul.f32 %v5274_v24, %v2475_v29 }
 0x50f   : > { %v2488_v13 = vmax.f32 %v2486_v22, 0.0  ;;  %v2489_v37 = vmax.f32 %v2487_v55, 0.0 }
 0x511   : > { %2494 = vrot.lane.b32.xlu1 %v2488_v13, %s5407_s18  ;;  %2491 = vrot.lane.b32.xlu0 %v2488_v13, %s5405_s11 }
 0x515   : > { %2500 = vrot.lane.b32.xlu1 %v2488_v13, %s5406_s21  ;;  %2497 = vrot.lane.b32.xlu0 %v2488_v13, %s5404_s20 }
 0x519   : > { %2506 = vrot.lane.b32.xlu1 %v2488_v13, %s5408_s22  ;;  %2503 = vrot.lane.b32.xlu0 %v2488_v13, %s5409_s24 }
 0x51d   : > { %2513 = vrot.lane.b32.xlu1 %v2489_v37, %s5405_s11  ;;  %2509 = vrot.lane.b32.xlu0 %v2488_v13, %s5410_s27 }
 0x521   : > { %2519 = vrot.lane.b32.xlu1 %v2489_v37, %s5404_s20  ;;  %2516 = vrot.lane.b32.xlu0 %v2489_v37, %s5407_s18 }
 0x525   : > { %2525 = vrot.lane.b32.xlu1 %v2489_v37, %s5409_s24  ;;  %2522 = vrot.lane.b32.xlu0 %v2489_v37, %s5406_s21 }
 0x529   : > { %2531 = vrot.lane.b32.xlu1 %v2489_v37, %s5410_s27  ;;  %2528 = vrot.lane.b32.xlu0 %v2489_v37, %s5408_s22 }
 0x583   : > { %v2495_v41 = vpop.permute.xlu1 %2494  ;;  %v2492_v56 = vpop.permute.xlu0 %2491 }
 0x584   : > { %v2534_v4 = vcombine.low %v2488_v13, %v2495_v41 }
 0x586   : > { %v2541_v49 = vrot.slane %v2534_v4, %v5599_v12 }
 0x587   : > { %v2501_v21 = vpop.permute.xlu1 %2500  ;;  %v2498_v14 = vpop.permute.xlu0 %2497 }
 0x588   : > { %v2542_v59 = vcombine.low %v2492_v56, %v2498_v14 }
 0x58a   : > { %v2549_v26 = vrot.slane %v2542_v59, %v5599_v12 }
 0x58b   : > { %v2507_v25 = vpop.permute.xlu1 %2506  ;;  %v2504_v50 = vpop.permute.xlu0 %2503 }
 0x58c   : > { %v2550_v30 = vcombine.low %v2501_v21, %v2507_v25  ;;  %v2566_v34 = vcombine.low %v2541_v49, %v2549_v26  ;;  %v2567_v46 = vcombine.high %v2541_v49, %v2549_v26 }
 0x58e   : > { %v2557_v28 = vrot.slane %v2550_v30, %v5599_v12  ;;  %v2574_v45 = vrot.slane %v2566_v34, %v5607_v20  ;;  %v2581_v39 = vrot.slane %v2567_v46, %v5607_v20 }
 0x58f   : > { %v2514_v10 = vpop.permute.xlu1 %2513  ;;  %v2510_v16 = vpop.permute.xlu0 %2509 }
 0x590   : > { %v2558_v33 = vcombine.low %v2504_v50, %v2510_v16 }
 0x592   : > { %v2565_v38 = vrot.slane %v2558_v33, %v5599_v12 }
 0x593   : > { %v2520_v3 = vpop.permute.xlu1 %2519  ;;  %v2517_v23 = vpop.permute.xlu0 %2516 }
 0x594   : > { %v2582_v2 = vcombine.low %v2557_v28, %v2565_v38  ;;  %v2610_v36 = vcombine.low %v2514_v10, %v2520_v3  ;;  %v2602_v15 = vcombine.low %v2489_v37, %v2517_v23  ;;  %v2583_v18 = vcombine.high %v2557_v28, %v2565_v38 }
 0x596   : > { %v2590_v7 = vrot.slane %v2582_v2, %v5607_v20  ;;  %v2617_v9 = vrot.slane %v2610_v36, %v5599_v12  ;;  %v2609_v51 = vrot.slane %v2602_v15, %v5599_v12  ;;  %v2597_v52 = vrot.slane %v2583_v18, %v5607_v20 }
 0x597   : > { %v2526_v32 = vpop.permute.xlu1 %2525  ;;  %v2523_v40 = vpop.permute.xlu0 %2522 }
 0x598   : > { %v2598_v48 = vcombine.low %v2574_v45, %v2590_v7  ;;  %v2634_v35 = vcombine.low %v2609_v51, %v2617_v9  ;;  %v2599_v31 = vcombine.high %v2574_v45, %v2590_v7  ;;  %v2635_v19 = vcombine.high %v2609_v51, %v2617_v9 }
 0x599   : > { %v2600_v43 = vcombine.low %v2581_v39, %v2597_v52  ;;  %v2601_v50 = vcombine.high %v2581_v39, %v2597_v52 }
 0x59a   : > { %v2674_v53 = vrot.slane %v2598_v48, 1  ;;  %v2686_v60 = vrot.slane %v2598_v48, 7  ;;  %v2642_v1 = vrot.slane %v2634_v35, %v5607_v20  ;;  %v2689_v6 = vrot.slane %v2599_v31, 7 }
 0x59b   : > { %v2532_v63 = vpop.permute.xlu1 %2531  ;;  %v2529_v47 = vpop.permute.xlu0 %2528  ;;  %v2675_v27 = vrot.slane %v2599_v31, 1  ;;  %v2649_v37 = vrot.slane %v2635_v19, %v5607_v20  ;;  %v2676_v41 = vrot.slane %v2600_v43, 1  ;;  %v2692_v56 = vrot.slane %v2600_v43, 7 }
 0x59c   : > { %v2626_v17 = vcombine.low %v2526_v32, %v2532_v63  ;;  %v2618_v61 = vcombine.low %v2523_v40, %v2529_v47  ;;  %v6883_v8 = vsel %vm422_vm0, %v2674_v53, %v2686_v60  ;;  %v2695_v49 = vrot.slane %v2601_v50, 7 }
 0x59d   : > { %2730 = vrot.lane.b32.xlu0 %v6883_v8, %s5414_s28  ;;  %v2715_v59 = vsel %vm422_vm0, %v2675_v27, %v2689_v6  ;;  %v2716_v4 = vsel %vm422_vm0, %v2676_v41, %v2692_v56  ;;  %v2677_v38 = vrot.slane %v2601_v50, 1 }
 0x59e   : > { %v2633_v57 = vrot.slane %v2626_v17, %v5599_v12  ;;  %v2625_v62 = vrot.slane %v2618_v61, %v5599_v12 }
 0x59f   : > { %v2717_v23 = vsel %vm422_vm0, %v2677_v38, %v2695_v49 }
 0x5a0   : > { %v2650_v58 = vcombine.low %v2625_v62, %v2633_v57  ;;  %v2651_v54 = vcombine.high %v2625_v62, %v2633_v57 }
 0x5a2   : > { %v2658_v44 = vrot.slane %v2650_v58, %v5607_v20  ;;  %v2665_v24 = vrot.slane %v2651_v54, %v5607_v20 }
 0x5a4   : > { %v2666_v29 = vcombine.low %v2642_v1, %v2658_v44  ;;  %v2667_v11 = vcombine.high %v2642_v1, %v2658_v44  ;;  %v2668_v21 = vcombine.low %v2649_v37, %v2665_v24  ;;  %v2669_v26 = vcombine.high %v2649_v37, %v2665_v24 }
 0x5a6   : > { %v2687_v0 = vrot.slane %v2666_v29, 7  ;;  %v2706_v42 = vrot.slane %v2666_v29, 5  ;;  %v2690_v55 = vrot.slane %v2667_v11, 7  ;;  %v2707_v25 = vrot.slane %v2667_v11, 5 }
 0x5a7   : > { %v2693_v10 = vrot.slane %v2668_v21, 7  ;;  %v2708_v16 = vrot.slane %v2668_v21, 5  ;;  %v2696_v28 = vrot.slane %v2669_v26, 7  ;;  %v2709_v2 = vrot.slane %v2669_v26, 5 }
 0x5a8   : > { %v2718_v22 = vsel %vm422_vm0, %v2687_v0, %v2706_v42  ;;  %v2688_v13 = vsel %vm422_vm0, %v2686_v60, %v2687_v0  ;;  %v2691_v14 = vsel %vm422_vm0, %v2689_v6, %v2690_v55  ;;  %v2719_v30 = vsel %vm422_vm0, %v2690_v55, %v2707_v25 }
 0x5a9   : > { %2734 = vrot.lane.b32.xlu0 %v2718_v22, %s5414_s28  ;;  %2732 = vrot.lane.b32.xlu1 %v2688_v13, %s5414_s28  ;;  %v2720_v33 = vsel %vm422_vm0, %v2693_v10, %v2708_v16  ;;  %v2694_v34 = vsel %vm422_vm0, %v2692_v56, %v2693_v10  ;;  %v2697_v3 = vsel %vm422_vm0, %v2695_v49, %v2696_v28 }
 0x5aa   : > { %v2721_v45 = vsel %vm422_vm0, %v2696_v28, %v2709_v2 }
 0x5ad   : > { %2738 = vrot.lane.b32.xlu0 %v2691_v14, %s5414_s28  ;;  %2736 = vrot.lane.b32.xlu1 %v2715_v59, %s5414_s28 }
 0x5b1   : > { %2742 = vrot.lane.b32.xlu0 %v2716_v4, %s5414_s28  ;;  %2740 = vrot.lane.b32.xlu1 %v2719_v30, %s5414_s28 }
 0x5b5   : > { %2746 = vrot.lane.b32.xlu0 %v2720_v33, %s5414_s28  ;;  %2744 = vrot.lane.b32.xlu1 %v2694_v34, %s5414_s28 }
 0x5b9   : > { %2750 = vrot.lane.b32.xlu0 %v2697_v3, %s5414_s28  ;;  %2748 = vrot.lane.b32.xlu1 %v2717_v23, %s5414_s28 }
 0x5bd   : > { %2766 = vrot.lane.b32.xlu0 %v6883_v8, %s5415_s29  ;;  %2752 = vrot.lane.b32.xlu1 %v2721_v45, %s5414_s28 }
 0x5c1   : > { %2770 = vrot.lane.b32.xlu0 %v2718_v22, %s5415_s29  ;;  %2768 = vrot.lane.b32.xlu1 %v2688_v13, %s5415_s29 }
 0x5c5   : > { %2774 = vrot.lane.b32.xlu0 %v2691_v14, %s5415_s29  ;;  %2772 = vrot.lane.b32.xlu1 %v2715_v59, %s5415_s29 }
 0x5c9   : > { %2778 = vrot.lane.b32.xlu0 %v2716_v4, %s5415_s29  ;;  %2776 = vrot.lane.b32.xlu1 %v2719_v30, %s5415_s29 }
 0x5cd   : > { %2782 = vrot.lane.b32.xlu0 %v2720_v33, %s5415_s29  ;;  %2780 = vrot.lane.b32.xlu1 %v2694_v34, %s5415_s29 }
 0x5d1   : > { %2786 = vrot.lane.b32.xlu0 %v2697_v3, %s5415_s29  ;;  %2784 = vrot.lane.b32.xlu1 %v2717_v23, %s5415_s29 }
 0x5d5   : > { %2802 = vrot.lane.b32.xlu0 %v6883_v8, %s5416_s30  ;;  %2788 = vrot.lane.b32.xlu1 %v2721_v45, %s5415_s29 }
 0x5d9   : > { %2806 = vrot.lane.b32.xlu0 %v2718_v22, %s5416_s30  ;;  %2804 = vrot.lane.b32.xlu1 %v2688_v13, %s5416_s30 }
 0x5dd   : > { %2810 = vrot.lane.b32.xlu0 %v2691_v14, %s5416_s30  ;;  %2808 = vrot.lane.b32.xlu1 %v2715_v59, %s5416_s30 }
 0x5e1   : > { %2814 = vrot.lane.b32.xlu0 %v2716_v4, %s5416_s30  ;;  %2812 = vrot.lane.b32.xlu1 %v2719_v30, %s5416_s30 }
 0x5e5   : > { %2818 = vrot.lane.b32.xlu0 %v2720_v33, %s5416_s30  ;;  %2816 = vrot.lane.b32.xlu1 %v2694_v34, %s5416_s30 }
 0x5e9   : > { %2822 = vrot.lane.b32.xlu0 %v2697_v3, %s5416_s30  ;;  %2820 = vrot.lane.b32.xlu1 %v2717_v23, %s5416_s30 }
 0x5ed   : > { %2824 = vrot.lane.b32.xlu1 %v2721_v45, %s5416_s30 }
 0x60f   : > { %v2731_v7 = vpop.permute.xlu0 %2730 }
 0x61b   : > { %v2733_v36 = vpop.permute.xlu1 %2732  ;;  %v2735_v15 = vpop.permute.xlu0 %2734 }
 0x61f   : > { %v2737_v32 = vpop.permute.xlu1 %2736  ;;  %v2739_v40 = vpop.permute.xlu0 %2738 }
 0x623   : > { %v2741_v48 = vpop.permute.xlu1 %2740  ;;  %v2743_v9 = vpop.permute.xlu0 %2742 }
 0x627   : > { %v2745_v51 = vpop.permute.xlu1 %2744  ;;  %v2747_v53 = vpop.permute.xlu0 %2746 }
 0x62b   : > { %v2749_v60 = vpop.permute.xlu1 %2748  ;;  %v2751_v63 = vpop.permute.xlu0 %2750 }
 0x62f   : > { %v2753_v47 = vpop.permute.xlu1 %2752  ;;  %v2767_v17 = vpop.permute.xlu0 %2766 }
 0x630   : > { %v2838_v13 = vsel %vm587_vm1, %v2731_v7, %v2767_v17 }
 0x633   : > { %v2769_v61 = vpop.permute.xlu1 %2768  ;;  %v2771_v8 = vpop.permute.xlu0 %2770 }
 0x634   : > { %v2839_v54 = vsel %vm587_vm1, %v2733_v36, %v2769_v61  ;;  %v2840_v6 = vsel %vm587_vm1, %v2735_v15, %v2771_v8 }
 0x637   : > { %v2773_v35 = vpop.permute.xlu1 %2772  ;;  %v2775_v57 = vpop.permute.xlu0 %2774 }
 0x638   : > { %v2842_v19 = vsel %vm587_vm1, %v2739_v40, %v2775_v57  ;;  %v2841_v55 = vsel %vm587_vm1, %v2737_v32, %v2773_v35 }
 0x63b   : > { %v2777_v62 = vpop.permute.xlu1 %2776  ;;  %v2779_v18 = vpop.permute.xlu0 %2778 }
 0x63c   : > { %v2843_v37 = vsel %vm587_vm1, %v2741_v48, %v2777_v62  ;;  %v2844_v26 = vsel %vm587_vm1, %v2743_v9, %v2779_v18 }
 0x63f   : > { %v2781_v58 = vpop.permute.xlu1 %2780  ;;  %v2783_v46 = vpop.permute.xlu0 %2782 }
 0x640   : > { %v2845_v41 = vsel %vm587_vm1, %v2745_v51, %v2781_v58  ;;  %v2846_v56 = vsel %vm587_vm1, %v2747_v53, %v2783_v46 }
 0x643   : > { %v2785_v1 = vpop.permute.xlu1 %2784  ;;  %v2787_v44 = vpop.permute.xlu0 %2786 }
 0x644   : > { %v2847_v38 = vsel %vm587_vm1, %v2749_v60, %v2785_v1  ;;  %v2848_v3 = vsel %vm587_vm1, %v2751_v63, %v2787_v44 }
 0x647   : > { %v2789_v52 = vpop.permute.xlu1 %2788  ;;  %v2803_v31 = vpop.permute.xlu0 %2802 }
 0x648   : > { %v6966_v30 = vsel %vm600_vm2, %v2838_v13, %v2803_v31  ;;  %v2849_v23 = vsel %vm587_vm1, %v2753_v47, %v2789_v52 }
 0x649   : > { %v2922_v40 = vrot.slane %v6966_v30, 1 }
 0x64b   : > { %v2805_v29 = vpop.permute.xlu1 %2804  ;;  %v2807_v11 = vpop.permute.xlu0 %2806 }
 0x64c   : > { %v6945_v39 = vsel %vm600_vm2, %v2839_v54, %v2805_v29  ;;  %v2852_v22 = vsel %vm600_vm2, %v2840_v6, %v2807_v11 }
 0x64d   : > { %2872 = vrot.lane.b32.xlu0 %v6945_v39, %s5414_s28  ;;  %v2925_v21 = vrot.slane %v2852_v22, 1  ;;  %v3001_v14 = vrot.slane %v2852_v22, 2  ;;  %v2999_v50 = vrot.slane %v6945_v39, 2  ;;  %v2923_v4 = vrot.slane %v6945_v39, 1 }
 0x64f   : > { %v2809_v0 = vpop.permute.xlu1 %2808  ;;  %v2811_v42 = vpop.permute.xlu0 %2810  ;;  %v6988_v36 = vsel %vm750_vm3, %v2999_v50, %v3001_v14  ;;  %v6991_v15 = vsel %vm673_vm4, %v2923_v4, %v2925_v21  ;;  %v7030_v1 = vsel %vm673_vm4, %v2922_v40, %v2923_v4 }
 0x650   : > { %v6951_v43 = vsel %vm600_vm2, %v2842_v19, %v2811_v42  ;;  %v6973_v49 = vsel %vm600_vm2, %v2841_v55, %v2809_v0 }
 0x651   : > { %2876 = vrot.lane.b32.xlu1 %v6951_v43, %s5414_s28  ;;  %v2928_v32 = vrot.slane %v6951_v43, 1  ;;  %v2927_v53 = vrot.slane %v6973_v49, 1  ;;  %v3004_v46 = vrot.slane %v6951_v43, 2 }
 0x653   : > { %v2813_v27 = vpop.permute.xlu1 %2812  ;;  %v2815_v24 = vpop.permute.xlu0 %2814  ;;  %v7034_v54 = vsel %vm673_vm4, %v2927_v53, %v2928_v32 }
 0x654   : > { %v6996_v48 = vsel %vm600_vm2, %v2844_v26, %v2815_v24  ;;  %v2855_v60 = vsel %vm600_vm2, %v2843_v37, %v2813_v27 }
 0x655   : > { %v3074_v62 = vcombine.low %v6966_v30, %v6996_v48  ;;  %v3075_v18 = vcombine.high %v6966_v30, %v6996_v48  ;;  %v2930_v44 = vrot.slane %v2855_v60, 1  ;;  %v3006_v52 = vrot.slane %v2855_v60, 2 }
 0x656   : > { %v2932_v0 = vrot.slane %v6996_v48, 1 }
 0x657   : > { %v2817_v59 = vpop.permute.xlu1 %2816  ;;  %v2819_v25 = vpop.permute.xlu0 %2818  ;;  %v7051_v22 = vrot.slane %v3074_v62, %v5599_v12  ;;  %v7054_v13 = vrot.slane %v3075_v18, %v5599_v12  ;;  %v7071_v21 = vsel %vm673_vm4, %v2928_v32, %v2930_v44 }
 0x658   : > { %v6969_v10 = vsel %vm600_vm2, %v2845_v41, %v2817_v59  ;;  %v2858_v16 = vsel %vm600_vm2, %v2846_v56, %v2819_v25  ;;  %v7063_v41 = vsel %vm750_vm3, %v3004_v46, %v3006_v52 }
 0x659   : > { %v3686_v33 = vcombine.low %v6945_v39, %v6969_v10  ;;  %v3687_v34 = vcombine.high %v6945_v39, %v6969_v10  ;;  %v3011_v28 = vrot.slane %v2858_v16, 2  ;;  %2880 = vrot.lane.b32.xlu0 %v6969_v10, %s5414_s28  ;;  %v3009_v2 = vrot.slane %v6969_v10, 2 }
 0x65a   : > { %v2935_v63 = vrot.slane %v2858_v16, 1  ;;  %v2933_v57 = vrot.slane %v6969_v10, 1 }
 0x65b   : > { %v2821_v45 = vpop.permute.xlu1 %2820  ;;  %v2823_v7 = vpop.permute.xlu0 %2822  ;;  %v7004_v51 = vsel %vm750_vm3, %v3009_v2, %v3011_v28  ;;  %v7077_v59 = vrot.slane %v3686_v33, %v5599_v12 }
 0x65c   : > { %v6999_v9 = vsel %vm600_vm2, %v2848_v3, %v2823_v7  ;;  %v7015_v61 = vsel %vm600_vm2, %v2847_v38, %v2821_v45  ;;  %v4094_v8 = vcombine.low %v6988_v36, %v7004_v51  ;;  %v4095_v35 = vcombine.high %v6988_v36, %v7004_v51 }
 0x65d   : > { %v3702_v47 = vcombine.low %v6951_v43, %v6999_v9  ;;  %v3703_v17 = vcombine.high %v6951_v43, %v6999_v9  ;;  %2896 = vrot.lane.b32.xlu0 %v6945_v39, %s5417_s7  ;;  %2884 = vrot.lane.b32.xlu1 %v6999_v9, %s5414_s28  ;;  %v3090_v29 = vcombine.low %v6973_v49, %v7015_v61  ;;  %v3014_v6 = vrot.slane %v6999_v9, 2 }
 0x65e   : > { %v3091_v42 = vcombine.high %v6973_v49, %v7015_v61  ;;  %v7047_v27 = vsel %vm673_vm4, %v2933_v57, %v2935_v63  ;;  %v2938_v24 = vrot.slane %v6999_v9, 1  ;;  %v7098_v38 = vsel %vm673_vm4, %v2932_v0, %v2933_v57 }
 0x65f   : > { %v2825_v58 = vpop.permute.xlu1 %2824  ;;  %v3854_v55 = vcombine.low %v6991_v15, %v7047_v27  ;;  %v3855_v37 = vcombine.high %v6991_v15, %v7047_v27  ;;  %v7080_v25 = vrot.slane %v3090_v29, %v5599_v12  ;;  %v7101_v3 = vrot.slane %v3702_v47, %v5599_v12 }
 0x660   : > { %v2861_v31 = vsel %vm600_vm2, %v2849_v23, %v2825_v58  ;;  %v7089_v16 = vrot.slane %v3091_v42, %v5599_v12  ;;  %v7104_v23 = vrot.slane %v4094_v8, %v5599_v12  ;;  %v7113_v32 = vrot.slane %v4095_v35, %v5599_v12 }
 0x661   : > { %v2940_v11 = vrot.slane %v2861_v31, 1  ;;  %v3016_v19 = vrot.slane %v2861_v31, 2  ;;  %2904 = vrot.lane.b32.xlu0 %v6969_v10, %s5417_s7  ;;  %2900 = vrot.lane.b32.xlu1 %v6951_v43, %s5417_s7  ;;  %v2937_v60 = vrot.slane %v7015_v61, 1  ;;  %v7125_v63 = vrot.slane %v3854_v55, %v5599_v12 }
 0x662   : > { %v7128_v47 = vrot.slane %v3855_v37, %v5599_v12  ;;  %v3242_v8 = vcombine.low %v7030_v1, %v7098_v38  ;;  %v3243_v35 = vcombine.high %v7030_v1, %v7098_v38  ;;  %v3750_v0 = vcombine.low %v7077_v59, %v7101_v3 }
 0x663   : > { %v7068_v56 = vsel %vm750_vm3, %v3014_v6, %v3016_v19  ;;  %v7074_v14 = vsel %vm673_vm4, %v2938_v24, %v2940_v11  ;;  %v7156_v11 = vrot.slane %v3703_v17, %v5599_v12  ;;  %v2939_v19 = vsel %vm673_vm4, %v2937_v60, %v2938_v24 }
 0x664   : > { %v4110_v4 = vcombine.low %v7063_v41, %v7068_v56  ;;  %v4111_v26 = vcombine.high %v7063_v41, %v7068_v56  ;;  %v3870_v33 = vcombine.low %v7071_v21, %v7074_v14  ;;  %v3871_v28 = vcombine.high %v7071_v21, %v7074_v14 }
 0x665   : > { %2870 = vrot.lane.b32.xlu0 %v6966_v30, %s5414_s28  ;;  %2908 = vrot.lane.b32.xlu1 %v6999_v9, %s5417_s7  ;;  %v3138_v42 = vcombine.low %v7051_v22, %v7080_v25  ;;  %v2998_v55 = vrot.slane %v6966_v30, 2  ;;  %v3258_v37 = vcombine.low %v7034_v54, %v2939_v19  ;;  %v7172_v17 = vrot.slane %v3687_v34, %v5599_v12 }
 0x666   : > { %v7107_v45 = vrot.slane %v4110_v4, %v5599_v12  ;;  %v7110_v7 = vrot.slane %v4111_v26, %v5599_v12  ;;  %v7116_v40 = vrot.slane %v3870_v33, %v5599_v12  ;;  %v7119_v53 = vrot.slane %v3871_v28, %v5599_v12 }
 0x667   : > { %v3259_v4 = vcombine.high %v7034_v54, %v2939_v19  ;;  %v7177_v24 = vrot.slane %v3242_v8, %v5599_v12  ;;  %v3154_v26 = vcombine.low %v7054_v13, %v7089_v16  ;;  %v7184_v33 = vrot.slane %v3243_v35, %v5599_v12 }
 0x668   : > { %v3918_v44 = vcombine.low %v7125_v63, %v7116_v40  ;;  %v3919_v52 = vcombine.high %v7125_v63, %v7116_v40  ;;  %v3934_v31 = vcombine.low %v7128_v47, %v7119_v53  ;;  %v3935_v29 = vcombine.high %v7128_v47, %v7119_v53 }
 0x669   : > { %2878 = vrot.lane.b32.xlu0 %v6996_v48, %s5414_s28  ;;  %2874 = vrot.lane.b32.xlu1 %v6973_v49, %s5414_s28  ;;  %v7187_v28 = vrot.slane %v3258_v37, %v5599_v12  ;;  %v7190_v34 = vrot.slane %v3259_v4, %v5599_v12  ;;  %v3139_v60 = vcombine.high %v7051_v22, %v7080_v25  ;;  %v3003_v58 = vrot.slane %v6973_v49, 2 }
 0x66a   : > { %v7197_v8 = vsel %vm750_vm3, %v2998_v55, %v2999_v50  ;;  %v3766_v35 = vcombine.low %v7172_v17, %v7156_v11  ;;  %v3155_v55 = vcombine.high %v7054_v13, %v7089_v16  ;;  %v3767_v4 = vcombine.high %v7172_v17, %v7156_v11 }
 0x66b   : > { %v7219_v18 = vsel %vm750_vm3, %v3003_v58, %v3004_v46  ;;  %v3008_v50 = vrot.slane %v6996_v48, 2  ;;  %v3013_v43 = vrot.slane %v7015_v61, 2 }
 0x66d   : > { %2894 = vrot.lane.b32.xlu0 %v6966_v30, %s5417_s7  ;;  %2882 = vrot.lane.b32.xlu1 %v7015_v61, %s5414_s28  ;;  %v3751_v30 = vcombine.high %v7077_v59, %v7101_v3  ;;  %v7241_v46 = vsel %vm750_vm3, %v3013_v43, %v3014_v6 }
 0x671   : > { %3050 = vrot.lane.b32.xlu0 %v7197_v8, %s5417_s7  ;;  %2898 = vrot.lane.b32.xlu1 %v6973_v49, %s5417_s7  ;;  %v7231_v49 = vsel %vm750_vm3, %v3008_v50, %v3009_v2 }
 0x675   : > { %3054 = vrot.lane.b32.xlu0 %v7219_v18, %s5417_s7  ;;  %3052 = vrot.lane.b32.xlu1 %v6988_v36, %s5417_s7 }
 0x679   : > { %3058 = vrot.lane.b32.xlu0 %v7231_v49, %s5417_s7  ;;  %3056 = vrot.lane.b32.xlu1 %v7063_v41, %s5417_s7 }
 0x67d   : > { %3062 = vrot.lane.b32.xlu0 %v7241_v46, %s5417_s7  ;;  %3060 = vrot.lane.b32.xlu1 %v7004_v51, %s5417_s7 }
 0x681   : > { %2952 = vrot.lane.b32.xlu0 %v6991_v15, %s5414_s28  ;;  %3064 = vrot.lane.b32.xlu1 %v7068_v56, %s5417_s7 }
 0x685   : > { %2960 = vrot.lane.b32.xlu0 %v7047_v27, %s5414_s28  ;;  %2956 = vrot.lane.b32.xlu1 %v7071_v21, %s5414_s28 }
 0x689   : > { %2976 = vrot.lane.b32.xlu0 %v6991_v15, %s5417_s7  ;;  %2964 = vrot.lane.b32.xlu1 %v7074_v14, %s5414_s28 }
 0x68d   : > { %2984 = vrot.lane.b32.xlu0 %v7047_v27, %s5417_s7  ;;  %2980 = vrot.lane.b32.xlu1 %v7071_v21, %s5417_s7 }
 0x691   : > { %3028 = vrot.lane.b32.xlu0 %v6988_v36, %s5414_s28  ;;  %2988 = vrot.lane.b32.xlu1 %v7074_v14, %s5417_s7 }
 0x695   : > { %3036 = vrot.lane.b32.xlu0 %v7004_v51, %s5414_s28  ;;  %3032 = vrot.lane.b32.xlu1 %v7063_v41, %s5414_s28 }
 0x699   : > { %2950 = vrot.lane.b32.xlu0 %v7030_v1, %s5414_s28  ;;  %3040 = vrot.lane.b32.xlu1 %v7068_v56, %s5414_s28 }
 0x69d   : > { %2958 = vrot.lane.b32.xlu0 %v7098_v38, %s5414_s28  ;;  %2954 = vrot.lane.b32.xlu1 %v7034_v54, %s5414_s28 }
 0x6a1   : > { %2974 = vrot.lane.b32.xlu0 %v7030_v1, %s5417_s7  ;;  %2962 = vrot.lane.b32.xlu1 %v2939_v19, %s5414_s28 }
 0x6a5   : > { %2982 = vrot.lane.b32.xlu0 %v7098_v38, %s5417_s7  ;;  %2978 = vrot.lane.b32.xlu1 %v7034_v54, %s5417_s7 }
 0x6a9   : > { %3026 = vrot.lane.b32.xlu0 %v7197_v8, %s5414_s28  ;;  %2986 = vrot.lane.b32.xlu1 %v2939_v19, %s5417_s7 }
 0x6ad   : > { %3034 = vrot.lane.b32.xlu0 %v7231_v49, %s5414_s28  ;;  %3030 = vrot.lane.b32.xlu1 %v7219_v18, %s5414_s28 }
 0x6b1   : > { %2902 = vrot.lane.b32.xlu0 %v6996_v48, %s5417_s7  ;;  %3038 = vrot.lane.b32.xlu1 %v7241_v46, %s5414_s28 }
 0x6b5   : > { %2906 = vrot.lane.b32.xlu1 %v7015_v61, %s5417_s7 }
 0x6bf   : > { %v2873_v10 = vpop.permute.xlu0 %2872 }
 0x6c3   : > { %v2877_v36 = vpop.permute.xlu1 %2876 }
 0x6cb   : > { %v2881_v2 = vpop.permute.xlu0 %2880 }
 0x6cc   : > { %v3719_v15 = vcombine.high %v2873_v10, %v2881_v2  ;;  %v3718_v9 = vcombine.low %v2873_v10, %v2881_v2  ;;  %v7307_v10 = vrot.slane %v3750_v0, %v5607_v20  ;;  %v3765_v0 = vrot.slane %v3751_v30, %v5607_v20 }
 0x6ce   : > { %v3726_v27 = vrot.slane %v3718_v9, %v5599_v12  ;;  %v3733_v41 = vrot.slane %v3719_v15, %v5599_v12  ;;  %8290 = vst [vmem:[#allocation51_spill] sm:$0xff] %v7307_v10 }
 0x6cf   : > { %v2897_v51 = vpop.permute.xlu0 %2896  ;;  %v2885_v1 = vpop.permute.xlu1 %2884 }
 0x6d0   : > { %v3734_v54 = vcombine.low %v2877_v36, %v2885_v1  ;;  %v3735_v6 = vcombine.high %v2877_v36, %v2885_v1 }
 0x6d2   : > { %v3742_v48 = vrot.slane %v3734_v54, %v5599_v12  ;;  %v3749_v56 = vrot.slane %v3735_v6, %v5599_v12  ;;  %v3774_v6 = vrot.slane %v3766_v35, %v5607_v20 }
 0x6d3   : > { %v2905_v21 = vpop.permute.xlu0 %2904  ;;  %v2901_v14 = vpop.permute.xlu1 %2900 }
 0x6d4   : > { %v3822_v61 = vcombine.low %v2897_v51, %v2905_v21  ;;  %v3823_v38 = vcombine.high %v2897_v51, %v2905_v21  ;;  %v3782_v58 = vcombine.low %v3726_v27, %v3742_v48  ;;  %v3783_v19 = vcombine.high %v3726_v27, %v3742_v48 }
 0x6d5   : > { %v3798_v50 = vcombine.low %v3733_v41, %v3749_v56  ;;  %v3799_v43 = vcombine.high %v3733_v41, %v3749_v56  ;;  %v7330_v27 = vrot.slane %v3767_v4, %v5607_v20 }
 0x6d6   : > { %v7310_v2 = vrot.slane %v3782_v58, %v5607_v20  ;;  %v3797_v36 = vrot.slane %v3783_v19, %v5607_v20  ;;  %v3830_v1 = vrot.slane %v3822_v61, %v5599_v12  ;;  %v3837_v48 = vrot.slane %v3823_v38, %v5599_v12 }
 0x6d7   : > { %v3806_v15 = vrot.slane %v3798_v50, %v5607_v20  ;;  %v7315_v9 = vrot.slane %v3799_v43, %v5607_v20  ;;  %v2871_v51 = vpop.permute.xlu0 %2870  ;;  %v2909_v54 = vpop.permute.xlu1 %2908 }
 0x6d8   : > { %8291 = vst [vmem:[#allocation48_spill] sm:$0xff] %v7310_v2  ;;  %v3838_v56 = vcombine.low %v2901_v14, %v2909_v54  ;;  %v3839_v21 = vcombine.high %v2901_v14, %v2909_v54  ;;  %v3816_v59 = vcombine.low %v3765_v0, %v3797_v36  ;;  %v3817_v3 = vcombine.high %v3765_v0, %v3797_v36 }
 0x6d9   : > { %v3818_v30 = vcombine.low %v3774_v6, %v3806_v15  ;;  %v3819_v61 = vcombine.high %v3774_v6, %v3806_v15  ;;  %v3820_v11 = vcombine.low %v7330_v27, %v7315_v9  ;;  %v3821_v17 = vcombine.high %v7330_v27, %v7315_v9 }
 0x6da   : > { %v3846_v58 = vrot.slane %v3838_v56, %v5599_v12  ;;  %v3853_v35 = vrot.slane %v3839_v21, %v5599_v12  ;;  %v7345_v15 = vrot.slane %v3918_v44, %v5607_v20  ;;  %v3933_v0 = vrot.slane %v3919_v52, %v5607_v20 }
 0x6db   : > { %v2879_v19 = vpop.permute.xlu0 %2878  ;;  %v2875_v4 = vpop.permute.xlu1 %2874  ;;  %v3942_v9 = vrot.slane %v3934_v31, %v5607_v20  ;;  %v3815_v52 = vcombine.high %v7307_v10, %v7310_v2  ;;  %v3949_v31 = vrot.slane %v3935_v29, %v5607_v20 }
 0x6dc   : > { %v3106_v50 = vcombine.low %v2871_v51, %v2879_v19  ;;  %v3107_v38 = vcombine.high %v2871_v51, %v2879_v19  ;;  %v3886_v43 = vcombine.low %v3830_v1, %v3846_v58  ;;  %v3887_v14 = vcombine.high %v3830_v1, %v3846_v58  ;;  %8292 = vst [vmem:[#allocation54_spill] sm:$0xff] %v7345_v15 }
 0x6dd   : > { %v3902_v54 = vcombine.low %v3837_v48, %v3853_v35  ;;  %v3903_v36 = vcombine.high %v3837_v48, %v3853_v35 }
 0x6de   : > { %v7356_v51 = vrot.slane %v3886_v43, %v5607_v20  ;;  %v3901_v1 = vrot.slane %v3887_v14, %v5607_v20  ;;  %v3114_v48 = vrot.slane %v3106_v50, %v5599_v12  ;;  %v3121_v40 = vrot.slane %v3107_v38, %v5599_v12 }
 0x6df   : > { %v3910_v6 = vrot.slane %v3902_v54, %v5607_v20  ;;  %v3917_v44 = vrot.slane %v3903_v36, %v5607_v20  ;;  %v7361_v27 = vpop.permute.xlu0 %2894  ;;  %v2883_v63 = vpop.permute.xlu1 %2882 }
 0x6e0   : > { %8293 = vst [vmem:[#allocation53_spill] sm:$0xff] %v7356_v51  ;;  %v3122_v21 = vcombine.low %v2875_v4, %v2883_v63  ;;  %v3123_v58 = vcombine.high %v2875_v4, %v2883_v63  ;;  %v3951_v35 = vcombine.high %v7356_v51, %v7345_v15  ;;  %v3952_v19 = vcombine.low %v3901_v1, %v3933_v0 }
 0x6e1   : > { %v3953_v50 = vcombine.high %v3901_v1, %v3933_v0  ;;  %v3954_v38 = vcombine.low %v3910_v6, %v3942_v9  ;;  %v3955_v43 = vcombine.high %v3910_v6, %v3942_v9  ;;  %v3956_v53 = vcombine.low %v3917_v44, %v3949_v31 }
 0x6e2   : > { %v3130_v14 = vrot.slane %v3122_v21, %v5599_v12  ;;  %v3137_v54 = vrot.slane %v3123_v58, %v5599_v12  ;;  %v5098_v41 = vpack.i.bf16 %v3951_v35, %v3815_v52  ;;  %v7379_v29 = vpack.i.bf16 %v3952_v19, %v3816_v59 }
 0x6e3   : > { %v3051_v36 = vpop.permute.xlu0 %3050  ;;  %v7377_v47 = vpop.permute.xlu1 %2898  ;;  %v7381_v56 = vpack.i.bf16 %v3953_v50, %v3817_v3  ;;  %v7383_v4 = vpack.i.bf16 %v3954_v38, %v3818_v30  ;;  %v7385_v63 = vpack.i.bf16 %v3955_v43, %v3819_v61  ;;  %v7392_v52 = vrot.slane %v3138_v42, %v5607_v20 }
 0x6e4   : > { %v3170_v0 = vcombine.low %v3114_v48, %v3130_v14  ;;  %v3171_v1 = vcombine.high %v3114_v48, %v3130_v14  ;;  %v3186_v9 = vcombine.low %v3121_v40, %v3137_v54  ;;  %v3187_v6 = vcombine.high %v3121_v40, %v3137_v54  ;;  %5099 = vrot.lane.b32.xlu1 %v5098_v41, %s5410_s27 }
 0x6e5   : > { %8294 = vst [vmem:[#allocation55_spill] sm:$0xff] %v7383_v4  ;;  %8295 = vst [vmem:[#allocation50_spill] sm:$0xff] %v7385_v63  ;;  %v7398_v59 = vrot.slane %v3154_v26, %v5607_v20  ;;  %v7400_v3 = vpack.i.bf16 %v3956_v53, %v3820_v11  ;;  %v3957_v30 = vcombine.high %v3917_v44, %v3949_v31 }
 0x6e6   : > { %v7403_v61 = vrot.slane %v3170_v0, %v5607_v20  ;;  %v7406_v41 = vrot.slane %v3171_v1, %v5607_v20  ;;  %v7409_v48 = vrot.slane %v3186_v9, %v5607_v20  ;;  %v7412_v42 = vrot.slane %v3187_v6, %v5607_v20 }
 0x6e7   : > { %8296 = vst [vmem:[#allocation21_spill] sm:$0xff] %v7400_v3  ;;  %v3055_v40 = vpop.permute.xlu0 %3054  ;;  %v3053_v21 = vpop.permute.xlu1 %3052  ;;  %v7418_v26 = vrot.slane %v3139_v60, %v5607_v20  ;;  %v7424_v11 = vrot.slane %v3155_v55, %v5607_v20  ;;  %v7426_v44 = vpack.i.bf16 %v3957_v30, %v3821_v17 }
 0x6e9   : > { %8297 = vst [vmem:[#allocation40_spill] sm:$0xff] %v7426_v44 }
 0x6eb   : > { %v3059_v55 = vpop.permute.xlu0 %3058  ;;  %v3057_v17 = vpop.permute.xlu1 %3056 }
 0x6ec   : > { %v3618_v19 = vcombine.low %v3051_v36, %v3059_v55  ;;  %v3619_v50 = vcombine.high %v3051_v36, %v3059_v55 }
 0x6ee   : > { %v7445_v1 = vrot.slane %v3618_v19, %v5599_v12  ;;  %v3633_v9 = vrot.slane %v3619_v50, %v5599_v12 }
 0x6ef   : > { %v3063_v38 = vpop.permute.xlu0 %3062  ;;  %v3061_v43 = vpop.permute.xlu1 %3060 }
 0x6f0   : > { %v3634_v14 = vcombine.low %v3055_v40, %v3063_v38  ;;  %v3635_v54 = vcombine.high %v3055_v40, %v3063_v38  ;;  %v4230_v53 = vcombine.low %v3053_v21, %v3061_v43  ;;  %v4231_v0 = vcombine.high %v3053_v21, %v3061_v43 }
 0x6f2   : > { %v7449_v6 = vrot.slane %v3634_v14, %v5599_v12  ;;  %v3649_v30 = vrot.slane %v3635_v54, %v5599_v12  ;;  %v7457_v60 = vrot.slane %v4230_v53, %v5599_v12  ;;  %v4245_v50 = vrot.slane %v4231_v0, %v5599_v12 }
 0x6f3   : > { %v2953_v31 = vpop.permute.xlu0 %2952  ;;  %v3065_v21 = vpop.permute.xlu1 %3064 }
 0x6f4   : > { %v3651_v55 = vcombine.high %v7445_v1, %v7449_v6  ;;  %v3666_v40 = vcombine.low %v3633_v9, %v3649_v30  ;;  %v3667_v38 = vcombine.high %v3633_v9, %v3649_v30  ;;  %v4246_v43 = vcombine.low %v3057_v17, %v3065_v21 }
 0x6f5   : > { %v4247_v19 = vcombine.high %v3057_v17, %v3065_v21 }
 0x6f6   : > { %v7461_v14 = vrot.slane %v3651_v55, %v5607_v20  ;;  %v7464_v54 = vrot.slane %v4246_v43, %v5599_v12  ;;  %v7468_v13 = vrot.slane %v3666_v40, %v5607_v20  ;;  %v7471_v9 = vrot.slane %v3667_v38, %v5607_v20 }
 0x6f7   : > { %v4261_v36 = vrot.slane %v4247_v19, %v5599_v12  ;;  %v2961_v16 = vpop.permute.xlu0 %2960  ;;  %v2957_v17 = vpop.permute.xlu1 %2956 }
 0x6f8   : > { %8298 = vst [vmem:[#allocation36_spill] sm:$0xff] %v7461_v14  ;;  %8299 = vst [vmem:[#allocation46_spill] sm:$0xff] %v7468_v13  ;;  %v3958_v53 = vcombine.low %v2953_v31, %v2961_v16  ;;  %v3959_v30 = vcombine.high %v2953_v31, %v2961_v16  ;;  %v4263_v55 = vcombine.high %v7457_v60, %v7464_v54 }
 0x6f9   : > { %8300 = vst [vmem:[#allocation42_spill] sm:$0xff] %v7471_v9  ;;  %v4278_v21 = vcombine.low %v4245_v50, %v4261_v36  ;;  %v4279_v43 = vcombine.high %v4245_v50, %v4261_v36  ;;  %v7489_v22 = vcombine.high %v7461_v14, %v8231_v5  ;;  %v7493_v36 = vcombine.high %v7468_v13, %v8231_v5 }
 0x6fa   : > { %v7478_v19 = vrot.slane %v4263_v55, %v5607_v20  ;;  %v3966_v31 = vrot.slane %v3958_v53, %v5599_v12 }
 0x6fb   : > { %v7481_v40 = vrot.slane %v4278_v21, %v5607_v20  ;;  %v7484_v38 = vrot.slane %v4279_v43, %v5607_v20  ;;  %v2977_v25 = vpop.permute.xlu0 %2976  ;;  %v2965_v16 = vpop.permute.xlu1 %2964  ;;  %8304 = vst [vmem:[#allocation45_spill] sm:$0xff] %v7493_v36  ;;  %v7501_v43 = vcombine.high %v7471_v9, %v8231_v5 }
 0x6fc   : > { %8301 = vst [vmem:[#allocation49_spill] sm:$0xff] %v7478_v19  ;;  %v3974_v50 = vcombine.low %v2957_v17, %v2965_v16  ;;  %v3975_v55 = vcombine.high %v2957_v17, %v2965_v16  ;;  %v7497_v21 = vcombine.high %v7478_v19, %v8231_v5  ;;  %v3973_v16 = vrot.slane %v3959_v30, %v5599_v12 }
 0x6fd   : > { %8302 = vst [vmem:[#allocation52_spill] sm:$0xff] %v7481_v40  ;;  %8303 = vst [vmem:[#allocation47_spill] sm:$0xff] %v7484_v38  ;;  %v7505_v53 = vcombine.high %v7481_v40, %v8231_v5  ;;  %v7509_v35 = vcombine.high %v7484_v38, %v8231_v5 }
 0x6fe   : > { %8305 = vst [vmem:[#allocation30_spill] sm:$0xff] %v7501_v43  ;;  %v3982_v0 = vrot.slane %v3974_v50, %v5599_v12  ;;  %v3989_v39 = vrot.slane %v3975_v55, %v5599_v12 }
 0x6ff   : > { %8306 = vst [vmem:[#allocation28_spill] sm:$0xff] %v7505_v53  ;;  %8307 = vst [vmem:[#allocation34_spill] sm:$0xff] %v7509_v35  ;;  %v2985_v37 = vpop.permute.xlu0 %2984  ;;  %v2981_v57 = vpop.permute.xlu1 %2980 }
 0x700   : > { %v3991_v15 = vcombine.high %v2977_v25, %v2985_v37  ;;  %v4022_v2 = vcombine.low %v3966_v31, %v3982_v0  ;;  %v4023_v17 = vcombine.high %v3966_v31, %v3982_v0  ;;  %v4038_v10 = vcombine.low %v3973_v16, %v3989_v39 }
 0x701   : > { %v4039_v30 = vcombine.high %v3973_v16, %v3989_v39  ;;  %v3990_v55 = vcombine.low %v2977_v25, %v2985_v37 }
 0x702   : > { %v4005_v14 = vrot.slane %v3991_v15, %v5599_v12  ;;  %v7531_v25 = vrot.slane %v4022_v2, %v5607_v20 }
 0x703   : > { %v3029_v44 = vpop.permute.xlu0 %3028  ;;  %v2989_v3 = vpop.permute.xlu1 %2988  ;;  %v3998_v40 = vrot.slane %v3990_v55, %v5599_v12  ;;  %v7548_v2 = vrot.slane %v4039_v30, %v5607_v20 }
 0x704   : > { %v4006_v13 = vcombine.low %v2981_v57, %v2989_v3  ;;  %v4007_v62 = vcombine.high %v2981_v57, %v2989_v3  ;;  %8308 = vst [vmem:[#allocation32_spill] sm:$0xff] %v7531_v25  ;;  %v4037_v57 = vrot.slane %v4023_v17, %v5607_v20 }
 0x706   : > { %v4014_v51 = vrot.slane %v4006_v13, %v5599_v12  ;;  %v4021_v58 = vrot.slane %v4007_v62, %v5599_v12 }
 0x707   : > { %v3037_v19 = vpop.permute.xlu0 %3036  ;;  %v3033_v0 = vpop.permute.xlu1 %3032 }
 0x708   : > { %v4126_v31 = vcombine.low %v3029_v44, %v3037_v19  ;;  %v4127_v39 = vcombine.high %v3029_v44, %v3037_v19  ;;  %v4054_v16 = vcombine.low %v3998_v40, %v4014_v51  ;;  %v4055_v43 = vcombine.high %v3998_v40, %v4014_v51 }
 0x709   : > { %v4070_v50 = vcombine.low %v4005_v14, %v4021_v58  ;;  %v4071_v37 = vcombine.high %v4005_v14, %v4021_v58  ;;  %v4046_v51 = vrot.slane %v4038_v10, %v5607_v20 }
 0x70a   : > { %v7535_v3 = vrot.slane %v4054_v16, %v5607_v20  ;;  %v4069_v15 = vrot.slane %v4055_v43, %v5607_v20  ;;  %v4134_v58 = vrot.slane %v4126_v31, %v5599_v12  ;;  %v4141_v14 = vrot.slane %v4127_v39, %v5599_v12 }
 0x70b   : > { %v7539_v62 = vrot.slane %v4070_v50, %v5607_v20  ;;  %v7542_v13 = vrot.slane %v4071_v37, %v5607_v20  ;;  %v7544_v44 = vpop.permute.xlu0 %2950  ;;  %v3041_v19 = vpop.permute.xlu1 %3040 }
 0x70c   : > { %8309 = vst [vmem:[#allocation35_spill] sm:$0xff] %v7535_v3  ;;  %v4142_v43 = vcombine.low %v3033_v0, %v3041_v19  ;;  %v4143_v17 = vcombine.high %v3033_v0, %v3041_v19  ;;  %v4088_v50 = vcombine.low %v4037_v57, %v4069_v15  ;;  %v4087_v55 = vcombine.high %v7531_v25, %v7535_v3 }
 0x70d   : > { %v4091_v16 = vcombine.high %v4046_v51, %v7539_v62  ;;  %v4089_v10 = vcombine.high %v4037_v57, %v4069_v15  ;;  %v4092_v30 = vcombine.low %v7548_v2, %v7542_v13  ;;  %v4090_v9 = vcombine.low %v4046_v51, %v7539_v62 }
 0x70e   : > { %v4150_v31 = vrot.slane %v4142_v43, %v5599_v12  ;;  %v4157_v39 = vrot.slane %v4143_v17, %v5599_v12  ;;  %v4093_v0 = vcombine.high %v7548_v2, %v7542_v13  ;;  %v8310_v15 = vcombine.low %v7104_v23, %v7107_v45 }
 0x70f   : > { %v2959_v37 = vpop.permute.xlu0 %2958  ;;  %v2955_v19 = vpop.permute.xlu1 %2954  ;;  %v8312_v62 = vcombine.high %v7104_v23, %v7107_v45  ;;  %v8315_v23 = vcombine.high %v7113_v32, %v7110_v7 }
 0x710   : > { %v3347_v40 = vcombine.high %v7544_v44, %v2959_v37  ;;  %v4190_v3 = vcombine.low %v4134_v58, %v4150_v31  ;;  %v4191_v25 = vcombine.high %v4134_v58, %v4150_v31  ;;  %v4206_v38 = vcombine.low %v4141_v14, %v4157_v39 }
 0x711   : > { %v4207_v57 = vcombine.high %v4141_v14, %v4157_v39  ;;  %v7569_v43 = vrot.slane %v8310_v15, %v5607_v20  ;;  %v4173_v51 = vrot.slane %v8312_v62, %v5607_v20  ;;  %v8314_v39 = vcombine.low %v7113_v32, %v7110_v7 }
 0x712   : > { %v7576_v13 = vrot.slane %v4190_v3, %v5607_v20  ;;  %v4205_v2 = vrot.slane %v4191_v25, %v5607_v20  ;;  %v4214_v58 = vrot.slane %v4206_v38, %v5607_v20  ;;  %v4189_v45 = vrot.slane %v8315_v23, %v5607_v20 }
 0x713   : > { %8311 = vst [vmem:[#allocation33_spill] sm:$0xff] %v7569_v43  ;;  %v4221_v14 = vrot.slane %v4207_v57, %v5607_v20  ;;  %v7581_v17 = vpop.permute.xlu0 %2974  ;;  %v2963_v31 = vpop.permute.xlu1 %2962  ;;  %v4182_v15 = vrot.slane %v8314_v39, %v5607_v20  ;;  %v7594_v38 = vrot.slane %v3347_v40, %v5599_v12 }
 0x714   : > { %8313 = vst [vmem:[#allocation41_spill] sm:$0xff] %v7576_v13  ;;  %v3363_v3 = vcombine.high %v2955_v19, %v2963_v31  ;;  %v4224_v57 = vcombine.low %v4173_v51, %v4205_v2  ;;  %v4223_v62 = vcombine.high %v7569_v43, %v7576_v13  ;;  %v4225_v63 = vcombine.high %v4173_v51, %v4205_v2 }
 0x715   : > { %8316 = vst [vmem:[#allocation39_spill] sm:$0xff] %v7594_v38  ;;  %v4227_v35 = vcombine.high %v4182_v15, %v4214_v58  ;;  %v4228_v4 = vcombine.low %v4189_v45, %v4221_v14  ;;  %v3362_v39 = vcombine.low %v2955_v19, %v2963_v31  ;;  %v4226_v23 = vcombine.low %v4182_v15, %v4214_v58 }
 0x716   : > { %v7599_v36 = vrot.slane %v3363_v3, %v5599_v12  ;;  %v7603_v32 = vpack.i.bf16 %v4224_v57, %v4088_v50  ;;  %v7607_v40 = vpack.i.bf16 %v4223_v62, %v4087_v55  ;;  %v3346_v13 = vcombine.low %v7544_v44, %v2959_v37 }
 0x717   : > { %v7601_v7 = vpop.permute.xlu0 %2982  ;;  %v7605_v25 = vpop.permute.xlu1 %2978  ;;  %v7609_v53 = vpack.i.bf16 %v4227_v35, %v4091_v16  ;;  %v7616_v2 = vpack.i.bf16 %v4225_v63, %v4089_v10  ;;  %v7618_v31 = vpack.i.bf16 %v4228_v4, %v4092_v30  ;;  %v7621_v50 = vrot.slane %v3362_v39, %v5599_v12 }
 0x718   : > { %8317 = vst [vmem:[#allocation22_spill] sm:$0xff] %v7599_v36  ;;  %8318 = vst [vmem:[#allocation31_spill] sm:$0xff] %v7603_v32  ;;  %v3378_v55 = vcombine.low %v7581_v17, %v7601_v7  ;;  %v7629_v44 = vpack.i.bf16 %v4226_v23, %v4090_v9  ;;  %v4229_v37 = vcombine.high %v4189_v45, %v4221_v14 }
 0x719   : > { %8319 = vst [vmem:[#allocation29_spill] sm:$0xff] %v7607_v40  ;;  %8320 = vst [vmem:[#allocation27_spill] sm:$0xff] %v7609_v53  ;;  %v7632_v58 = vrot.slane %v3346_v13, %v5599_v12  ;;  %v3498_v10 = vcombine.low %v7219_v18, %v7241_v46 }
 0x71a   : > { %8321 = vst [vmem:[#allocation25_spill] sm:$0xff] %v7616_v2  ;;  %8322 = vst [vmem:[#allocation23_spill] sm:$0xff] %v7618_v31  ;;  %v7636_v63 = vpack.i.bf16 %v4229_v37, %v4093_v0  ;;  %v7643_v15 = vrot.slane %v3378_v55, %v5599_v12  ;;  %v3482_v0 = vcombine.low %v7197_v8, %v7231_v49 }
 0x71b   : > { %v7625_v35 = vpop.permute.xlu0 %3026  ;;  %v7627_v16 = vpop.permute.xlu1 %2986  ;;  %8323 = vst [vmem:[#allocation11_spill] sm:$0xff] %v7629_v44  ;;  %v3410_v30 = vcombine.low %v7632_v58, %v7621_v50  ;;  %v7657_v3 = vrot.slane %v3498_v10, %v5599_v12 }
 0x71c   : > { %v3394_v4 = vcombine.low %v7605_v25, %v7627_v16  ;;  %8324 = vst [vmem:[#allocation13_spill] sm:$0xff] %v7636_v63  ;;  %v7670_v55 = vrot.slane %v3482_v0, %v5599_v12 }
 0x71d   : > { %v7660_v57 = vrot.slane %v3410_v30, %v5607_v20 }
 0x71e   : > { %v7646_v9 = vrot.slane %v3394_v4, %v5599_v12  ;;  %v3546_v30 = vcombine.low %v7670_v55, %v7657_v3 }
 0x71f   : > { %v7648_v14 = vpop.permute.xlu0 %3034  ;;  %v7650_v13 = vpop.permute.xlu1 %3030 }
 0x720   : > { %v3442_v45 = vcombine.low %v7643_v15, %v7646_v9  ;;  %v3514_v39 = vcombine.low %v7625_v35, %v7648_v14  ;;  %v7691_v31 = vrot.slane %v3546_v30, %v5607_v20 }
 0x722   : > { %v7663_v62 = vrot.slane %v3442_v45, %v5607_v20  ;;  %v7679_v45 = vrot.slane %v3514_v39, %v5599_v12 }
 0x723   : > { %v7667_v23 = vpop.permute.xlu1 %3038  ;;  %v2903_v10 = vpop.permute.xlu0 %2902 }
 0x724   : > { %v3530_v4 = vcombine.low %v7650_v13, %v7667_v23  ;;  %v3210_v51 = vcombine.low %v7361_v27, %v2903_v10  ;;  %v3211_v0 = vcombine.high %v7361_v27, %v2903_v10 }
 0x726   : > { %v7682_v19 = vrot.slane %v3530_v4, %v5599_v12  ;;  %v3218_v4 = vrot.slane %v3210_v51, %v5599_v12  ;;  %v3225_v2 = vrot.slane %v3211_v0, %v5599_v12  ;;  %v8326_v51 = vcombine.low %v7184_v33, %v7190_v34 }
 0x727   : > { %v2907_v43 = vpop.permute.xlu1 %2906 }
 0x728   : > { %v3578_v37 = vcombine.low %v7679_v45, %v7682_v19  ;;  %v3226_v63 = vcombine.low %v7377_v47, %v2907_v43  ;;  %v3227_v44 = vcombine.high %v7377_v47, %v2907_v43 }
 0x72a   : > { %v7694_v39 = vrot.slane %v3578_v37, %v5607_v20  ;;  %v3234_v27 = vrot.slane %v3226_v63, %v5599_v12  ;;  %v3241_v10 = vrot.slane %v3227_v44, %v5599_v12  ;;  %v8325_v37 = vcombine.low %v7177_v24, %v7187_v28 }
 0x72b   : > { %v3330_v63 = vrot.slane %v8326_v51, %v5607_v20 }
 0x72c   : > { %v3274_v40 = vcombine.low %v3218_v4, %v3234_v27  ;;  %v3275_v36 = vcombine.high %v3218_v4, %v3234_v27  ;;  %v3290_v47 = vcombine.low %v3225_v2, %v3241_v10  ;;  %v3291_v43 = vcombine.high %v3225_v2, %v3241_v10 }
 0x72d   : > { %v7706_v30 = vrot.slane %v8325_v37, %v5607_v20  ;;  %v8327_v27 = vcombine.high %v7177_v24, %v7187_v28  ;;  %v8328_v37 = vcombine.high %v7184_v33, %v7190_v34  ;;  %v8329_v24 = vcombine.low %v7457_v60, %v7464_v54 }
 0x72e   : > { %v7713_v44 = vrot.slane %v3274_v40, %v5607_v20  ;;  %v3289_v0 = vrot.slane %v3275_v36, %v5607_v20  ;;  %v3298_v4 = vrot.slane %v3290_v47, %v5607_v20  ;;  %v3305_v2 = vrot.slane %v3291_v43, %v5607_v20 }
 0x72f   : > { %v3321_v10 = vrot.slane %v8327_v27, %v5607_v20  ;;  %v3337_v53 = vrot.slane %v8328_v37, %v5607_v20  ;;  %v7734_v28 = vrot.slane %v8329_v24, %v5607_v20  ;;  %v8330_v33 = vcombine.low %v7398_v59, %v7409_v48 }
 0x730   : > { %v3338_v40 = vcombine.low %v7713_v44, %v7706_v30  ;;  %v3342_v51 = vcombine.low %v3298_v4, %v3330_v63  ;;  %v3339_v36 = vcombine.high %v7713_v44, %v7706_v30  ;;  %v3343_v47 = vcombine.high %v3298_v4, %v3330_v63 }
 0x731   : > { %v3340_v38 = vcombine.low %v3289_v0, %v3321_v10  ;;  %v3341_v43 = vcombine.high %v3289_v0, %v3321_v10  ;;  %v3344_v32 = vcombine.low %v3305_v2, %v3337_v53  ;;  %v8331_v27 = vcombine.high %v7392_v52, %v7403_v61 }
 0x732   : > { %v5133_v34 = vpack.i.bf16 %v3342_v51, %v8330_v33  ;;  %v8332_v63 = vcombine.high %v7398_v59, %v7409_v48  ;;  %v8333_v0 = vcombine.low %v7418_v26, %v7406_v41  ;;  %v8334_v60 = vcombine.high %v7418_v26, %v7406_v41 }
 0x733   : > { %v5103_v37 = vpack.i.bf16 %v3339_v36, %v8331_v27  ;;  %v8335_v24 = vcombine.low %v7424_v11, %v7412_v42  ;;  %v8336_v36 = vcombine.low %v7445_v1, %v7449_v6  ;;  %v3345_v59 = vcombine.high %v3305_v2, %v3337_v53  ;;  %v8345_v27 = vld [vmem:[#allocation34_spill] sm:$0xff] }
 0x734   : > { %v5143_v4 = vpack.i.bf16 %v3343_v47, %v8332_v63  ;;  %v5113_v10 = vpack.i.bf16 %v3340_v38, %v8333_v0  ;;  %v5123_v54 = vpack.i.bf16 %v3341_v43, %v8334_v60  ;;  %5134 = vrot.lane.b32.xlu0 %v5133_v34, %s5406_s21  ;;  %v4294_v48 = vcombine.high %v7734_v28, %v8231_v5  ;;  %v8349_v0 = vld [vmem:[#allocation36_spill] sm:$0xff] }
 0x735   : > { %v5223_v51 = vpack.i.bf16 %v3344_v32, %v8335_v24  ;;  %v7758_v33 = vrot.slane %v8336_v36, %v5607_v20  ;;  %5104 = vrot.lane.b32.xlu1 %v5103_v37, %s5410_s27  ;;  %v8337_v41 = vcombine.high %v7424_v11, %v7412_v42  ;;  %v8338_v53 = vpack.i.bf16 %v7497_v21, %v7489_v22  ;;  %v8340_v11 = vld [vmem:[#allocation45_spill] sm:$0xff]  ;;  %v8346_v37 = vld [vmem:[#allocation30_spill] sm:$0xff]  ;;  %v8351_v36 = vld [vmem:[#allocation52_spill] sm:$0xff] }
 0x736   : > { %v3611_v42 = vcombine.high %v7691_v31, %v7694_v39  ;;  %v3475_v38 = vcombine.high %v7660_v57, %v7663_v62  ;;  %v3531_v22 = vcombine.high %v7650_v13, %v7667_v23  ;;  %v3579_v21 = vcombine.high %v7679_v45, %v7682_v19  ;;  %v8342_v19 = vld [vmem:[#allocation55_spill] sm:$0xff] }
 0x737   : > { %v7767_v26 = vpack.i.bf16 %v3345_v59, %v8337_v41  ;;  %v3682_v1 = vcombine.high %v7758_v33, %v8231_v5  ;;  %v3499_v32 = vcombine.high %v7219_v18, %v7241_v46  ;;  %v3547_v2 = vcombine.high %v7670_v55, %v7657_v3  ;;  %v8352_v59 = vld [vmem:[#allocation46_spill] sm:$0xff] }
 0x738   : > { %5144 = vrot.lane.b32.xlu0 %v5143_v4, %s5404_s20  ;;  %v3395_v47 = vcombine.high %v7605_v25, %v7627_v16  ;;  %v3443_v43 = vcombine.high %v7643_v15, %v7646_v9  ;;  %v3515_v34 = vcombine.high %v7625_v35, %v7648_v14  ;;  %v3483_v18 = vcombine.high %v7197_v8, %v7231_v49  ;;  %v8343_v49 = vld [vmem:[#allocation31_spill] sm:$0xff]  ;;  %v8348_v4 = vld [vmem:[#allocation49_spill] sm:$0xff] }
 0x739   : > { %5109 = vrot.lane.b32.xlu1 %v7379_v29, %s5408_s22  ;;  %v5163_v6 = vpack.i.bf16 %v4294_v48, %v3682_v1  ;;  %v8339_v29 = vld [vmem:[#allocation28_spill] sm:$0xff]  ;;  %v3411_v46 = vcombine.high %v7632_v58, %v7621_v50  ;;  %v3379_v25 = vcombine.high %v7581_v17, %v7601_v7  ;;  %v3545_v16 = vrot.slane %v3531_v22, %v5599_v12  ;;  %v8344_v50 = vld [vmem:[#allocation50_spill] sm:$0xff]  ;;  %v8354_v1 = vld [vmem:[#allocation39_spill] sm:$0xff] }
 0x73a   : > { %v8341_v5 = vpack.i.bf16 %v8339_v29, %v8340_v11  ;;  %v3593_v15 = vrot.slane %v3579_v21, %v5607_v20  ;;  %v3513_v35 = vrot.slane %v3499_v32, %v5599_v12  ;;  %v3561_v9 = vrot.slane %v3547_v2, %v5607_v20  ;;  %v8357_v11 = vld [vmem:[#allocation47_spill] sm:$0xff]  ;;  %v8360_v32 = vld [vmem:[#allocation29_spill] sm:$0xff] }
 0x73b   : > { %v3409_v14 = vrot.slane %v3395_v47, %v5599_v12  ;;  %v3457_v13 = vrot.slane %v3443_v43, %v5607_v20  ;;  %v3529_v8 = vrot.slane %v3515_v34, %v5599_v12  ;;  %v3497_v17 = vrot.slane %v3483_v18, %v5599_v12 }
 0x73c   : > { %5164 = vrot.lane.b32.xlu0 %v5163_v6, %s5410_s27  ;;  %v3425_v7 = vrot.slane %v3411_v46, %v5607_v20  ;;  %v3393_v58 = vrot.slane %v3379_v25, %v5599_v12  ;;  %v3613_v23 = vcombine.high %v3561_v9, %v3593_v15  ;;  %v8347_v63 = vpack.i.bf16 %v8345_v27, %v8346_v37  ;;  %v8355_v6 = vld [vmem:[#allocation22_spill] sm:$0xff] }
 0x73d   : > { %5114 = vrot.lane.b32.xlu1 %v5113_v10, %s5408_s22  ;;  %v3594_v3 = vcombine.low %v3529_v8, %v3545_v16  ;;  %v3562_v55 = vcombine.low %v3497_v17, %v3513_v35  ;;  %v8350_v10 = vpack.i.bf16 %v8348_v4, %v8349_v0  ;;  %v8353_v48 = vpack.i.bf16 %v8351_v36, %v8352_v59 }
 0x73e   : > { %v3458_v45 = vcombine.low %v3393_v58, %v3409_v14  ;;  %v3477_v60 = vcombine.high %v3425_v7, %v3457_v13  ;;  %v3476_v2 = vcombine.low %v3425_v7, %v3457_v13  ;;  %v3595_v47 = vcombine.high %v3529_v8, %v3545_v16  ;;  %v8362_v13 = vld [vmem:[#allocation25_spill] sm:$0xff] }
 0x73f   : > { %v3570_v41 = vrot.slane %v3562_v55, %v5607_v20  ;;  %v3459_v18 = vcombine.high %v3393_v58, %v3409_v14  ;;  %v8366_v58 = vld [vmem:[#allocation21_spill] sm:$0xff] }
 0x740   : > { %5169 = vrot.lane.b32.xlu0 %v8338_v53, %s5409_s24  ;;  %v5208_v24 = vpack.i.bf16 %v3613_v23, %v3477_v60  ;;  %v3466_v12 = vrot.slane %v3458_v45, %v5607_v20  ;;  %v8356_v53 = vcombine.low %v8354_v1, %v8355_v6  ;;  %v3609_v25 = vrot.slane %v3595_v47, %v5607_v20  ;;  %v8367_v23 = vld [vmem:[#allocation13_spill] sm:$0xff] }
 0x741   : > { %5119 = vrot.lane.b32.xlu1 %v7381_v56, %s5409_s24  ;;  %v5183_v56 = vpack.i.bf16 %v3611_v42, %v3475_v38 }
 0x742   : > { %v3434_v42 = vrot.slane %v8356_v53, %v5607_v20 }
 0x744   : > { %5174 = vrot.lane.b32.xlu0 %v8341_v5, %s5404_s20  ;;  %v8358_v5 = vld [vmem:[#allocation42_spill] sm:$0xff]  ;;  %v3478_v22 = vcombine.low %v3434_v42, %v3466_v12  ;;  %v3479_v46 = vcombine.high %v3434_v42, %v3466_v12 }
 0x745   : > { %5124 = vrot.lane.b32.xlu1 %v5123_v54, %s5409_s24  ;;  %v3602_v54 = vrot.slane %v3594_v3, %v5607_v20  ;;  %v8359_v38 = vpack.i.bf16 %v8357_v11, %v8358_v5 }
 0x747   : > { %v3614_v29 = vcombine.low %v3570_v41, %v3602_v54  ;;  %v3615_v34 = vcombine.high %v3570_v41, %v3602_v54 }
 0x748   : > { %5184 = vrot.lane.b32.xlu0 %v5183_v56, %s5410_s27  ;;  %v3612_v56 = vcombine.low %v3561_v9, %v3593_v15  ;;  %v3473_v9 = vrot.slane %v3459_v18, %v5607_v20 }
 0x749   : > { %5129 = vrot.lane.b32.xlu1 %v8342_v19, %s5406_s21  ;;  %v5233_v21 = vpack.i.bf16 %v3614_v29, %v3478_v22  ;;  %v3563_v19 = vcombine.high %v3497_v17, %v3513_v35  ;;  %v5243_v15 = vpack.i.bf16 %v3615_v34, %v3479_v46  ;;  %v8363_v35 = vcombine.high %v8354_v1, %v8355_v6 }
 0x74a   : > { %v5193_v43 = vpack.i.bf16 %v3612_v56, %v3476_v2 }
 0x74b   : > { %v3577_v16 = vrot.slane %v3563_v19, %v5607_v20  ;;  %v3441_v14 = vrot.slane %v8363_v35, %v5607_v20  ;;  %v8368_v20 = vld [vmem:[#allocation40_spill] sm:$0xff] }
 0x74c   : > { %5189 = vrot.lane.b32.xlu0 %v8343_v49, %s5408_s22  ;;  %v8364_v49 = vld [vmem:[#allocation23_spill] sm:$0xff] }
 0x74d   : > { %5139 = vrot.lane.b32.xlu1 %v8344_v50, %s5404_s20  ;;  %v3616_v8 = vcombine.low %v3577_v16, %v3609_v25  ;;  %v8365_v50 = vld [vmem:[#allocation11_spill] sm:$0xff]  ;;  %v3480_v17 = vcombine.low %v3441_v14, %v3473_v9  ;;  %v3617_v3 = vcombine.high %v3577_v16, %v3609_v25  ;;  %v3481_v55 = vcombine.high %v3441_v14, %v3473_v9 }
 0x74f   : > { %v5253_v7 = vpack.i.bf16 %v3616_v8, %v3480_v17  ;;  %v5263_v45 = vpack.i.bf16 %v3617_v3, %v3481_v55 }
 0x750   : > { %5199 = vrot.lane.b32.xlu0 %v8347_v63, %s5405_s11 }
 0x751   : > { %5149 = vrot.lane.b32.xlu1 %v8350_v10, %s5408_s22 }
 0x754   : > { %5209 = vrot.lane.b32.xlu0 %v5208_v24, %s5409_s24 }
 0x755   : > { %5154 = vrot.lane.b32.xlu1 %v8353_v48, %s5406_s21 }
 0x756   : > { %v7883_v27 = vpop.permute.xlu1 %5099 }
 0x758   : > { %5224 = vrot.lane.b32.xlu0 %v5223_v51, %s5407_s18  ;;  %v8361_v51 = vld [vmem:[#allocation27_spill] sm:$0xff] }
 0x759   : > { %5159 = vrot.lane.b32.xlu1 %v8359_v38, %s5407_s18 }
 0x75c   : > { %5234 = vrot.lane.b32.xlu0 %v5233_v21, %s5406_s21 }
 0x75d   : > { %5179 = vrot.lane.b32.xlu1 %v8360_v32, %s5410_s27  ;;  %s5419_s27 = smov [#allocation7]  }
 0x75e   : > { %s5336_s16 = sshll.u32 %s5419_s27, 4  ;;  %s5337_s16 = int_to_ptr.vmem [resolvable:$false] %s5336_s16 }
 0x75f   : > { %s5338_s17 = scalar_lea.vmem %s5337_s16, 256 }
 0x760   : > { %5239 = vrot.lane.b32.xlu0 %v8361_v51, %s5404_s20 }
 0x761   : > { %5194 = vrot.lane.b32.xlu1 %v5193_v43, %s5408_s22  ;;  %s4731_s22 = scalar_lea.sflag [#allocation4], %s5559_s10 }
 0x764   : > { %5244 = vrot.lane.b32.xlu0 %v5243_v15, %s5404_s20  ;;  %s4745_s20 = sshll.u32 %s199_s25, 4  ;;  %s4746_s20 = int_to_ptr.vmem [resolvable:$true] %s4745_s20 }
 0x765   : > { %5204 = vrot.lane.b32.xlu1 %v8362_v13, %s5409_s24  ;;  %s5332_s24 = scalar_lea.vmem %s4746_s20, 128  ;;  %p5339_p1 = scmp.lt.s32.totalorder %s4746_s20, %s5337_s16 }
 0x766   : > { %p5333_p9 = scmp.ne.s32.totalorder %s4746_s20, %s5332_s24  ;;  %p5340_p2 = scmp.lt.s32.totalorder %s5338_s17, %s5332_s24 }
 0x768   : > { %5249 = vrot.lane.b32.xlu0 %v8364_v49, %s5407_s18  ;;  %p5334_p13 = pnand %p5333_p9, %p8384_p11  ;;  %p5341_p0 = por %p5340_p2, %p5339_p1 }
 0x769   : > { %5214 = vrot.lane.b32.xlu1 %v8365_v50, %s5406_s21 }
 0x76a   : > { %p5335_p10 = pneg %p5334_p13 }
 0x76c   : > { %5254 = vrot.lane.b32.xlu0 %v5253_v7, %s5407_s18  ;;  %p5342_p3 = pnand %p5341_p0, %p5335_p10 }
 0x76d   : > { %5219 = vrot.lane.b32.xlu1 %v8366_v58, %s5407_s18  ;;  %s4743_s18 = scalar_lea.hbm %s8088_s3, %s4850_s9 }
 0x770   : > { %5259 = vrot.lane.b32.xlu0 %v8367_v23, %s5405_s11 }
 0x771   : > { %5229 = vrot.lane.b32.xlu1 %v8368_v20, %s5405_s11 }
 0x774   : > { %5264 = vrot.lane.b32.xlu0 %v5263_v45, %s5405_s11 }
 0x778   : > { %5269 = vrot.lane.b32.xlu0 %v7767_v26, %s5405_s11  ;;  %v8369_v26 = vcombine.low %v7392_v52, %v7403_v61 }
 0x7a6   : > { %v5135_v37 = vpop.permute.xlu0 %5134 }
 0x7a7   : > { %v5105_v63 = vpop.permute.xlu1 %5104  ;;  %v5137_v11 = vunpack.i.h.bf16 %v5135_v37  ;;  %v5136_v5 = vunpack.i.l.bf16 %v5135_v37 }
 0x7a8   : > { %v5107_v12 = vunpack.i.h.bf16 %v5105_v63  ;;  %v5106_v36 = vunpack.i.l.bf16 %v5105_v63 }
 0x7aa   : > { %v7885_v4 = vpop.permute.xlu0 %5144  ;;  %v4578_v6 = vsel %vm2331_vm5, %v8369_v26, %v5106_v36  ;;  %v4579_v53 = vsel %vm2331_vm5, %v3338_v40, %v5107_v12  ;;  %v5101_v26 = vunpack.i.l.bf16 %v7883_v27 }
 0x7ab   : > { %v7887_v0 = vpop.permute.xlu1 %5109 }
 0x7ae   : > { %v5165_v10 = vpop.permute.xlu0 %5164 }
 0x7af   : > { %v5115_v60 = vpop.permute.xlu1 %5114  ;;  %v5167_v2 = vunpack.i.h.bf16 %v5165_v10  ;;  %v5166_v47 = vunpack.i.l.bf16 %v5165_v10 }
 0x7b0   : > { %v5117_v59 = vunpack.i.h.bf16 %v5115_v60  ;;  %v5116_v48 = vunpack.i.l.bf16 %v5115_v60 }
 0x7b1   : > { %v4617_v51 = vsel %vm2331_vm5, %v7734_v28, %v5167_v2  ;;  %v4582_v46 = vsel %vm2331_vm5, %v7758_v33, %v5166_v47  ;;  %v8373_v47 = vld [vmem:[#allocation53_spill] sm:$0xff] }
 0x7b2   : > { %v5170_v54 = vpop.permute.xlu0 %5169  ;;  %v4583_v38 = vsel %vm2337_vm6, %v4578_v6, %v5116_v48  ;;  %v4584_v22 = vsel %vm2337_vm6, %v4579_v53, %v5117_v59  ;;  %v5112_v6 = vunpack.i.h.bf16 %v7887_v0  ;;  %v5111_v53 = vunpack.i.l.bf16 %v7887_v0 }
 0x7b3   : > { %v7889_v24 = vpop.permute.xlu1 %5119  ;;  %v5172_v9 = vunpack.i.h.bf16 %v5170_v54  ;;  %v5171_v13 = vunpack.i.l.bf16 %v5170_v54 }
 0x7b6   : > { %v5175_v41 = vpop.permute.xlu0 %5174 }
 0x7b7   : > { %v5125_v1 = vpop.permute.xlu1 %5124  ;;  %v5177_v33 = vunpack.i.h.bf16 %v5175_v41  ;;  %v5176_v7 = vunpack.i.l.bf16 %v5175_v41 }
 0x7b8   : > { %v5127_v42 = vunpack.i.h.bf16 %v5125_v1  ;;  %v5126_v29 = vunpack.i.l.bf16 %v5125_v1  ;;  %v5102_v1 = vunpack.i.h.bf16 %v7883_v27 }
 0x7ba   : > { %v4588_v21 = vsel %vm2343_vm7, %v4583_v38, %v5126_v29  ;;  %v4589_v56 = vsel %vm2343_vm7, %v4584_v22, %v5127_v42  ;;  %v7909_v30 = vpop.permute.xlu0 %5184  ;;  %v5121_v38 = vunpack.i.l.bf16 %v7889_v24 }
 0x7bb   : > { %v7904_v52 = vsel %vm2349_vm8, %v4588_v21, %v5136_v5  ;;  %v7907_v61 = vsel %vm2349_vm8, %v4589_v56, %v5137_v11  ;;  %v7911_v44 = vpop.permute.xlu1 %5129  ;;  %v5122_v5 = vunpack.i.h.bf16 %v7889_v24  ;;  %v5187_v22 = vunpack.i.h.bf16 %v7909_v30  ;;  %v8370_v21 = vld [vmem:[#allocation51_spill] sm:$0xff]  ;;  %v8371_v56 = vld [vmem:[#allocation48_spill] sm:$0xff] }
 0x7bc   : > { %v5186_v27 = vunpack.i.l.bf16 %v7909_v30  ;;  %v8372_v2 = vcombine.low %v8370_v21, %v8371_v56  ;;  %v5131_v30 = vunpack.i.l.bf16 %v7911_v44 }
 0x7be   : > { %v7913_v40 = vpop.permute.xlu0 %5189  ;;  %v4613_v0 = vsel %vm2331_vm5, %v8372_v2, %v5101_v26 }
 0x7bf   : > { %v7915_v32 = vpop.permute.xlu1 %5139  ;;  %v4618_v24 = vsel %vm2337_vm6, %v4613_v0, %v5111_v53 }
 0x7c2   : > { %v5200_v43 = vpop.permute.xlu0 %5199 }
 0x7c3   : > { %v5150_v34 = vpop.permute.xlu1 %5149  ;;  %v5202_v55 = vunpack.i.h.bf16 %v5200_v43  ;;  %v5201_v45 = vunpack.i.l.bf16 %v5200_v43  ;;  %v8374_v43 = vld [vmem:[#allocation54_spill] sm:$0xff] }
 0x7c4   : > { %v5152_v19 = vunpack.i.h.bf16 %v5150_v34  ;;  %v5151_v18 = vunpack.i.l.bf16 %v5150_v34  ;;  %v8375_v34 = vcombine.low %v8373_v47, %v8374_v43 }
 0x7c6   : > { %v4622_v25 = vsel %vm2337_vm6, %v4617_v51, %v5152_v19  ;;  %v4587_v15 = vsel %vm2337_vm6, %v4582_v46, %v5151_v18  ;;  %v7923_v16 = vpop.permute.xlu0 %5209  ;;  %v4614_v19 = vsel %vm2331_vm5, %v8375_v34, %v5102_v1 }
 0x7c7   : > { %v5155_v35 = vpop.permute.xlu1 %5154  ;;  %v4592_v49 = vsel %vm2343_vm7, %v4587_v15, %v5171_v13  ;;  %v4627_v50 = vsel %vm2343_vm7, %v4622_v25, %v5172_v9  ;;  %v4619_v46 = vsel %vm2337_vm6, %v4614_v19, %v5112_v6  ;;  %v5132_v25 = vunpack.i.h.bf16 %v7911_v44 }
 0x7c8   : > { %v5157_v14 = vunpack.i.h.bf16 %v5155_v35  ;;  %v5156_v8 = vunpack.i.l.bf16 %v5155_v35  ;;  %v4623_v13 = vsel %vm2343_vm7, %v4618_v24, %v5121_v38  ;;  %v4624_v35 = vsel %vm2343_vm7, %v4619_v46, %v5122_v5 }
 0x7c9   : > { %v5142_v44 = vunpack.i.h.bf16 %v7915_v32  ;;  %v5212_v1 = vunpack.i.h.bf16 %v7923_v16  ;;  %v5211_v26 = vunpack.i.l.bf16 %v7923_v16 }
 0x7ca   : > { %v4597_v28 = vsel %vm2349_vm8, %v4592_v49, %v5156_v8  ;;  %v4632_v17 = vsel %vm2349_vm8, %v4627_v50, %v5157_v14  ;;  %v7929_v58 = vpop.permute.xlu0 %5224  ;;  %v8376_v49 = vcombine.low %v7691_v31, %v7694_v39 }
 0x7cb   : > { %v5160_v3 = vpop.permute.xlu1 %5159  ;;  %v4637_v37 = vsel %vm2355_vm9, %v4632_v17, %v5177_v33  ;;  %v4602_v63 = vsel %vm2355_vm9, %v4597_v28, %v5176_v7  ;;  %v8377_v28 = vcombine.low %v7660_v57, %v7663_v62  ;;  %v5141_v33 = vunpack.i.l.bf16 %v7915_v32  ;;  %v8378_v7 = vld [vmem:[#allocation33_spill] sm:$0xff] }
 0x7cc   : > { %v5162_v23 = vunpack.i.h.bf16 %v5160_v3  ;;  %v5161_v20 = vunpack.i.l.bf16 %v5160_v3  ;;  %v4581_v50 = vsel %vm2331_vm5, %v8376_v49, %v5187_v22  ;;  %v8379_v3 = vld [vmem:[#allocation41_spill] sm:$0xff]  ;;  %v4628_v57 = vsel %vm2349_vm8, %v4623_v13, %v5131_v30 }
 0x7cd   : > { %v4580_v17 = vsel %vm2331_vm5, %v8377_v28, %v5186_v27  ;;  %v4629_v62 = vsel %vm2349_vm8, %v4624_v35, %v5132_v25  ;;  %v5191_v32 = vunpack.i.l.bf16 %v7913_v40 }
 0x7ce   : > { %v4642_v10 = vsel %vm2361_vm10, %v4637_v37, %v5162_v23  ;;  %v4607_v60 = vsel %vm2361_vm10, %v4602_v63, %v5161_v20  ;;  %v7935_v54 = vpop.permute.xlu0 %5234  ;;  %v8380_v23 = vcombine.low %v8378_v7, %v8379_v3 }
 0x7cf   : > { %v5180_v12 = vpop.permute.xlu1 %5179  ;;  %v4647_v36 = vsel %vm2367_vm11, %v4642_v10, %v5202_v55  ;;  %v4612_v59 = vsel %vm2367_vm11, %v4607_v60, %v5201_v45  ;;  %v8381_v55 = vld [vmem:[#allocation32_spill] sm:$0xff]  ;;  %v8382_v45 = vld [vmem:[#allocation35_spill] sm:$0xff]  ;;  %v5192_v10 = vunpack.i.h.bf16 %v7913_v40  ;;  %v4634_v40 = vsel %vm2355_vm9, %v4629_v62, %v5142_v44 }
 0x7d0   : > { %v4653_v48 = vpack.c.bf16 %v4647_v36, %v4647_v36  ;;  %v4652_v41 = vpack.c.bf16 %v4612_v59, %v4612_v59  ;;  %v5182_v18 = vunpack.i.h.bf16 %v5180_v12  ;;  %v5181_v51 = vunpack.i.l.bf16 %v5180_v12 }
 0x7d1   : > { %v8383_v37 = vcombine.low %v8381_v55, %v8382_v45  ;;  %v5237_v2 = vunpack.i.h.bf16 %v7935_v54  ;;  %v5236_v0 = vunpack.i.l.bf16 %v7935_v54  ;;  %v5227_v62 = vunpack.i.h.bf16 %v7929_v58 }
 0x7d2   : > { %4842 = vmatprep.subr.msk.bf16.mxu1 %vm2418_vm12, %v4653_v48  ;;  %v7944_v42 = vpop.permute.xlu0 %5239  ;;  %v4658_v11 = vsel %vm2418_vm12, %v4652_v41, 0  ;;  %v4616_v20 = vsel %vm2331_vm5, %v8380_v23, %v5182_v18 }
 0x7d3   : > { %v5195_v29 = vpop.permute.xlu1 %5194  ;;  %4674 = vmatpush1.bf16.msra.mxu1 %v4658_v11  ;;  %v4615_v31 = vsel %vm2331_vm5, %v8383_v37, %v5181_v51  ;;  %v4621_v53 = vsel %vm2337_vm6, %v4616_v20, %v5192_v10  ;;  %v5242_v47 = vunpack.i.h.bf16 %v7944_v42  ;;  %v5241_v43 = vunpack.i.l.bf16 %v7944_v42 }
 0x7d4   : > { %v5197_v14 = vunpack.i.h.bf16 %v5195_v29  ;;  %v5196_v8 = vunpack.i.l.bf16 %v5195_v29  ;;  %v4620_v6 = vsel %vm2337_vm6, %v4615_v31, %v5191_v32  ;;  %v4633_v29 = vsel %vm2355_vm9, %v4628_v57, %v5141_v33 }
 0x7d5   : > { %v5226_v10 = vunpack.i.l.bf16 %v7929_v58 }
 0x7d6   : > { %v7963_v15 = vpop.permute.xlu0 %5244  ;;  %v4586_v36 = vsel %vm2337_vm6, %v4581_v50, %v5197_v14  ;;  %v4585_v59 = vsel %vm2337_vm6, %v4580_v17, %v5196_v8 }
 0x7d7   : > { %v5205_v9 = vpop.permute.xlu1 %5204  ;;  %v4591_v38 = vsel %vm2343_vm7, %v4586_v36, %v5212_v1  ;;  %v4590_v22 = vsel %vm2343_vm7, %v4585_v59, %v5211_v26  ;;  %v5247_v34 = vunpack.i.h.bf16 %v7963_v15  ;;  %v5246_v19 = vunpack.i.l.bf16 %v7963_v15 }
 0x7d8   : > { %v5207_v39 = vunpack.i.h.bf16 %v5205_v9  ;;  %v5206_v63 = vunpack.i.l.bf16 %v5205_v9  ;;  %v4595_v46 = vsel %vm2349_vm8, %v4590_v22, %v5236_v0  ;;  %v4596_v24 = vsel %vm2349_vm8, %v4591_v38, %v5237_v2 }
 0x7d9   : > { %v4600_v31 = vsel %vm2355_vm9, %v4595_v46, %v5246_v19  ;;  %v5146_v36 = vunpack.i.l.bf16 %v7885_v4 }
 0x7da   : > { %v5250_v60 = vpop.permute.xlu0 %5249  ;;  %v4625_v11 = vsel %vm2343_vm7, %v4620_v6, %v5206_v63  ;;  %v4626_v5 = vsel %vm2343_vm7, %v4621_v53, %v5207_v39  ;;  %v4601_v39 = vsel %vm2355_vm9, %v4596_v24, %v5247_v34 }
 0x7db   : > { %v5215_v12 = vpop.permute.xlu1 %5214  ;;  %v5252_v9 = vunpack.i.h.bf16 %v5250_v60  ;;  %v5251_v54 = vunpack.i.l.bf16 %v5250_v60  ;;  %v4598_v26 = vsel %vm2355_vm9, %v7904_v52, %v5146_v36  ;;  %v202_v52 = vld [vmem:[%s8087_s2] sm:$0x3] }
 0x7dc   : > { %v5217_v48 = vunpack.i.h.bf16 %v5215_v12  ;;  %v5216_v41 = vunpack.i.l.bf16 %v5215_v12  ;;  %v5147_v12 = vunpack.i.h.bf16 %v7885_v4 }
 0x7de   : > { %v4630_v27 = vsel %vm2349_vm8, %v4625_v11, %v5216_v41  ;;  %v4631_v16 = vsel %vm2349_vm8, %v4626_v5, %v5217_v48  ;;  %v5255_v21 = vpop.permute.xlu0 %5254  ;;  %v4599_v58 = vsel %vm2355_vm9, %v7907_v61, %v5147_v12 }
 0x7df   : > { %v5220_v56 = vpop.permute.xlu1 %5219  ;;  %v4635_v25 = vsel %vm2355_vm9, %v4630_v27, %v5241_v43  ;;  %v4636_v30 = vsel %vm2355_vm9, %v4631_v16, %v5242_v47  ;;  %v5257_v13 = vunpack.i.h.bf16 %v5255_v21  ;;  %v5256_v35 = vunpack.i.l.bf16 %v5255_v21 }
 0x7e0   : > { %v5222_v18 = vunpack.i.h.bf16 %v5220_v56  ;;  %v5221_v51 = vunpack.i.l.bf16 %v5220_v56  ;;  %v4640_v44 = vsel %vm2361_vm10, %v4635_v25, %v5251_v54  ;;  %v4641_v33 = vsel %vm2361_vm10, %v4636_v30, %v5252_v9 }
 0x7e1   : > { %v4605_v32 = vsel %vm2361_vm10, %v4600_v31, %v5256_v35  ;;  %v4606_v60 = vsel %vm2361_vm10, %v4601_v39, %v5257_v13 }
 0x7e2   : > { %v5260_v14 = vpop.permute.xlu0 %5259  ;;  %v4638_v28 = vsel %vm2361_vm10, %v4633_v29, %v5221_v51  ;;  %v4639_v17 = vsel %vm2361_vm10, %v4634_v40, %v5222_v18  ;;  %v4603_v29 = vsel %vm2361_vm10, %v4598_v26, %v5226_v10  ;;  %v4604_v40 = vsel %vm2361_vm10, %v4599_v58, %v5227_v62 }
 0x7e3   : > { %v5230_v42 = vpop.permute.xlu1 %5229  ;;  %v5262_v8 = vunpack.i.h.bf16 %v5260_v14  ;;  %v5261_v49 = vunpack.i.l.bf16 %v5260_v14  ;;  %v5277_v14 = vld [vmem:[%s5565_s26] sm:$0xff] }
 0x7e4   : > { %v5232_v50 = vunpack.i.h.bf16 %v5230_v42  ;;  %v5231_v15 = vunpack.i.l.bf16 %v5230_v42 }
 0x7e5   : > { %v4645_v7 = vsel %vm2367_vm11, %v4640_v44, %v5261_v49  ;;  %v4646_v3 = vsel %vm2367_vm11, %v4641_v33, %v5262_v8 }
 0x7e6   : > { %v4643_v23 = vsel %vm2367_vm11, %v4638_v28, %v5231_v15  ;;  %v4644_v20 = vsel %vm2367_vm11, %v4639_v17, %v5232_v50  ;;  %v5265_v55 = vpop.permute.xlu0 %5264  ;;  %v4651_v45 = vpack.c.bf16 %v4646_v3, %v4645_v7 }
 0x7e7   : > { %v4649_v37 = vpack.c.bf16 %v4644_v20, %v4643_v23  ;;  %v5267_v63 = vunpack.i.h.bf16 %v5265_v55  ;;  %v5266_v57 = vunpack.i.l.bf16 %v5265_v55 }
 0x7e8   : > { %4675 = vmatprep.subr.bf16.mxu1 %v4651_v45 }
 0x7e9   : > { %v4610_v59 = vsel %vm2367_vm11, %v4605_v32, %v5266_v57  ;;  %v4611_v48 = vsel %vm2367_vm11, %v4606_v60, %v5267_v63 }
 0x7ea   : > { %v5270_v41 = vpop.permute.xlu0 %5269  ;;  %v4650_v1 = vpack.c.bf16 %v4611_v48, %v4610_v59 }
 0x7eb   : > { %v5272_v6 = vunpack.i.h.bf16 %v5270_v41  ;;  %v5271_v53 = vunpack.i.l.bf16 %v5270_v41 }
 0x7ec   : > { %4676 = vmatpush1.bf16.msra.mxu1 %v4650_v1 }
 0x7ed   : > { %4677 = vmatprep.subr.bf16.mxu1 %v4649_v37  ;;  %v4608_v4 = vsel %vm2367_vm11, %v4603_v29, %v5271_v53  ;;  %v4609_v11 = vsel %vm2367_vm11, %v4604_v40, %v5272_v6 }
 0x7ee   : > { %v4648_v5 = vpack.c.bf16 %v4609_v11, %v4608_v4 }
 0x7f0   : > { %4678 = vmatpush1.bf16.msra.mxu1 %v4648_v5 }
 0x7f3   : > { %4843 = vmatmul.mubr.msk.bf16.vlgmr.msra.gmra.mxu1 %vm2414_vm13, %v202_v52 }
 0x8b3   : > { %v4697_v61 = vpop.f32.mrf.mxu1 }
 0x8b4   : > { %v4704_v22 = vsel %vm2466_vm14, %v4697_v61, 0.0 }
 0x8b5   : > { %v4699_v38 = vpop.f32.mrf.mxu1 }
 0x8b6   : > { %v4705_v27 = vsel %vm2466_vm14, %v4699_v38, 0.0 }
 0x8b7   : > { %v4706_v16 = vadd.f32 %v4705_v27, %v4704_v22  ;;  %v4701_v21 = vpop.f32.mrf.mxu1 }
 0x8b9   : > { %4707 = vadd.xlane.f32.xlu1 %v4706_v16  ;;  %v4702_v56 = vpop.f32.mrf.mxu1 }
 0x942   : > { %v4708_v2 = vpop.xlane.xlu1 %4707 }
 0x943   : > { %v4709_v0 = vmul.f32 0.00390625, %v4708_v2 }
 0x945   : > { %v4710_v47 = vsub.f32 %v4697_v61, %v4709_v0  ;;  %v4711_v43 = vsub.f32 %v4699_v38, %v4709_v0 }
 0x947   : > { %v4712_v34 = vmul.f32 %v4710_v47, %v4710_v47  ;;  %v4713_v19 = vmul.f32 %v4711_v43, %v4711_v43 }
 0x949   : > { %v4714_v18 = vsel %vm2466_vm14, %v4712_v34, 0.0  ;;  %v4715_v51 = vsel %vm2466_vm14, %v4713_v19, 0.0 }
 0x94a   : > { %v4716_v46 = vadd.f32 %v4715_v51, %v4714_v18 }
 0x94c   : > { %4717 = vadd.xlane.f32.xlu0 %v4716_v46 }
 0x9d5   : > { %v4718_v24 = vpop.xlane.xlu0 %4717 }
 0x9d6   : > { %v4719_v25 = vmul.f32 0.00390625, %v4718_v24 }
 0x9d8   : > { %v4720_v30 = vadd.f32 1e-05, %v4719_v25 }
 0x9da   : > { %5275 = vrsqrt.f32 %v4720_v30 }
 0x9e7   : > { %v5276_v9 = vpop.eup %5275 }
 0x9e8   : > { %v4722_v54 = vmul.f32 %v5276_v9, %v4710_v47  ;;  %v4723_v13 = vmul.f32 %v5276_v9, %v4711_v43 }
 0x9ea   : > { %v4726_v35 = vcombine.low %v4722_v54, %v4723_v13 }
 0x9ec   : > { %v4728_v42 = vadd.f32 %v5277_v14, %v4726_v35 }
 0x9ee   : > { %4729 = vst [vmem:[%s199_s25] sm:$0xff] %v4728_v42 }
 0x9ef   : > { %5345 = shalt.err (!%p5342_p3)
}
 0x9f0   : > { %s5346_s26 = scalar_lea.hbm %s4743_s18, 128  ;;  %s5350_s29 = scalar_lea.hbm %s8088_s3, 256 }
 0x9f1   : > { %p5347_p12 = scmp.ne.s32.totalorder %s4743_s18, %s5346_s26  ;;  %p5351_p4 = scmp.lt.s32.totalorder %s4743_s18, %s8088_s3 }
 0x9f2   : > { %p5352_p6 = scmp.lt.s32.totalorder %s5350_s29, %s5346_s26 }
 0x9f3   : > { %p5348_p5 = pnand %p5347_p12, %p8384_p11 }
 0x9f4   : > { %p5353_p8 = por %p5352_p6, %p5351_p4 }
 0x9f5   : > { %p5349_p7 = pneg %p5348_p5 }
 0x9f7   : > { %p5354_p9 = pnand %p5353_p8, %p5349_p7 }
 0x9f9   : > { %5357 = shalt.err (!%p5354_p9)
}
 0x9fa   : > { %4857 = dma.vmem_to_hbm [thread:$0]  (%p8384_p11), %s4746_s20, 128, %s4743_s18, %s4731_s22  }
 0x9fb PF: > { %s4757_s6 = sand.u32 1, %s5388_s12   ;;  %p8385_p13 = scmp.ne.s32.totalorder %s8166_s19, 0 }
 0x9fc   : > { %p8386_p10 = scmp.ge.s32.totalorder %s5400_s15, 2  ;;  %s4758_s8 = scalar_lea.sflag [#allocation4], %s4757_s6 }
 0x9fe   : > { %p4868_p1 = pnand %p8386_p10, %p8385_p13 }
 0xa00   : > { %p4869_p2 = pneg %p4868_p1 }
 0xa02   : > { %5383 = dma.done.wait (%p4869_p2), %s4758_s8, 128  }
 0xa03   : > { %5385 = vsyncadd (%p4869_p2), %s4758_s8, 4294967168  ;;  %p17_p0 = scmp.ge.s32.totalorder %s5488_s23, 4   ;;  %s8387_s12 = smov %s5392_s13 }
 0xa04   : > { %s8388_s13 = smov %s5396_s14  ;;  %s8389_s14 = smov %s5515_s4 }
 0xa05   : > { %s8390_s15 = smov %s5488_s23  ;;  %19 = sbr.rel (!%p17_p0) target bundleno = 6 (0x6), region = 81 }
 0xa0a   :  { %4763 = vsyncpa [#allocation3], 1 }
 0xa0b   :  { %4765 = vsyncpa [#allocation3 + $0x1], 1 }
 0xa0c   :  { %4766 = vsyncpa [#allocation6], 1 }
 0xa0d   :  { %4767 = vsyncpa [#allocation4], 1 }
 0xa0e   :  { %4769 = vsyncpa [#allocation4 + $0x1], 1 }

</bundles_post_ra>
